<compile_context>
chip_gen: v7x
topology: tpu7x:2x2x1
jax: 0.10.0
libtpu: 0.0.40
codegen_flags: <defaults>
</compile_context>

<pallas_src>
import functools

import jax
import jax.numpy as jnp
import numpy as np
from jax.experimental import pallas as pl
from jax.experimental.pallas import tpu as pltpu

NEG_SLOPE = 0.1  # MLP = Linear + LeakyReLU(negative_slope=0.1)


def _round_up(v, m):
    return ((v + m - 1) // m) * m


def _leaky_relu(h):
    return jnp.where(h > 0, h, NEG_SLOPE * h)


def _biaffine_kernel(mask_ref, x_ref,
                     w_ad_ref, b_ad_ref, w_ah_ref, b_ah_ref,
                     w_rd_ref, b_rd_ref, w_rh_ref, b_rh_ref,
                     w_arc_ref, w_rel_ref,
                     s_arc_ref, s_rel_ref,
                     arc_h_sc, rel_h_sc,
                     *, n_rels, rp, tile_s, fused_rel_minor):
    """One (batch, dependent-token-tile) step of the BiaffineDecoder forward.

    The *_d / rel_h MLP weights are "bias-augmented" host-side (extra channel
    with zero weights + bias 1.0, so LeakyReLU gives exactly 1), reproducing
    the ones-concat of Biaffine bias_x / bias_y. rel_h / w_rel are also
    zero-padded to `rp` (a multiple of 128) so per-relation slices of the
    batched first-stage matmul land on vreg lane boundaries.
    """
    i = pl.program_id(1)

    # --- head-side MLPs: computed once per batch element, cached in VMEM ---
    @pl.when(i == 0)
    def _():
        xx = x_ref[0]                                                          # [S, H]
        arc_h = _leaky_relu(
            jnp.dot(xx, w_ah_ref[...], preferred_element_type=jnp.float32)
            + b_ah_ref[...])                                                   # [S, A]
        rel_h = _leaky_relu(
            jnp.dot(xx, w_rh_ref[...], preferred_element_type=jnp.float32)
            + b_rh_ref[...])                                                   # [S, rp]
        if fused_rel_minor:
            # Store transposed: one XLU transpose per batch instead of one per
            # relation / per dependent tile.
            arc_h_sc[...] = arc_h.T                                            # [A, S]
            rel_h_sc[...] = rel_h.T                                            # [rp, S]
        else:
            arc_h_sc[...] = arc_h                                              # [S, A]
            rel_h_sc[...] = rel_h                                              # [S, rp]

    # --- dependent-side MLPs for this tile of tokens ---
    row0 = pl.multiple_of(i * tile_s, tile_s)
    xt = x_ref[0, pl.ds(row0, tile_s), :]                                      # [T, H]
    arc_d = _leaky_relu(
        jnp.dot(xt, w_ad_ref[...], preferred_element_type=jnp.float32)
        + b_ad_ref[...])                                                       # [T, A+1]
    rel_d = _leaky_relu(
        jnp.dot(xt, w_rd_ref[...], preferred_element_type=jnp.float32)
        + b_rd_ref[...])                                                       # [T, R+1]

    # --- arc biaffine: s_arc[x, y] = [arc_d;1][x] @ W_arc @ arc_h[y]^T ---
    t_arc = jnp.dot(arc_d, w_arc_ref[...], preferred_element_type=jnp.float32)  # [T, A]
    if fused_rel_minor:
        s_arc = jnp.dot(t_arc, arc_h_sc[...], preferred_element_type=jnp.float32)
    else:
        s_arc = jax.lax.dot_general(t_arc, arc_h_sc[...], (((1,), (1,)), ((), ())),
                                    preferred_element_type=jnp.float32)        # [T, S]
    # masked_fill_(~mask.unsqueeze(1), -inf): masks the head axis (y).
    s_arc = jnp.where(mask_ref[0] != 0, s_arc, -jnp.inf)
    s_arc_ref[0] = s_arc.astype(s_arc_ref.dtype)

    # --- rel biaffine: s_rel[x, y, o] = [rel_d;1][x] @ W_rel[o] @ [rel_h;1][y]^T ---
    # n_rels is small & static -> unrolled.
    # TODO(synk): switch to lax.fori_loop(..., unroll=4) for production-sized
    # label sets to bound vreg live ranges.
    if fused_rel_minor:
        rel_h_t = rel_h_sc[...]                                                # [rp, S]
        # Batched first stage: one wide MXU matmul instead of n_rels tiny ones.
        t_big = jnp.dot(rel_d, w_rel_ref[...], preferred_element_type=jnp.float32)  # [T, n_rels*rp]
        slabs = [jnp.dot(t_big[:, o * rp:(o + 1) * rp], rel_h_t,
                         preferred_element_type=jnp.float32)                   # [T, S]
                 for o in range(n_rels)]
        s3 = jnp.stack(slabs, axis=1)                                          # [T, n_rels, S]
        # One in-VMEM minor-dim relayout instead of an HBM round-trip
        # transpose of the whole [B, n_rels, S, S] tensor in XLA.
        s_rel_ref[0] = jnp.swapaxes(s3, 1, 2).astype(s_rel_ref.dtype)          # [T, S, n_rels]
    else:
        rel_h = rel_h_sc[...]                                                  # [S, rp]
        for o in range(n_rels):
            w_o = w_rel_ref[:, pl.ds(o * rp, rp)]                              # [R+1, rp]
            t_o = jnp.dot(rel_d, w_o, preferred_element_type=jnp.float32)      # [T, rp]
            slab = jax.lax.dot_general(t_o, rel_h, (((1,), (1,)), ((), ())),
                                       preferred_element_type=jnp.float32)     # [T, S]
            s_rel_ref[0, o] = slab.astype(s_rel_ref.dtype)


_WEIGHT_KEYS = ('w_ad_t', 'b_ad', 'w_ah_t', 'b_ah',
                'w_rd_t', 'b_rd', 'w_rh_t', 'b_rh',
                'w_arc', 'w_rel_big')


def _run_pallas(x, mask3, params, *, tile, n_tiles, out_dtype,
                fused_rel_minor, single_buffer_weights):
    B, SP, H = x.shape
    n_rels, rp = params['n_rels'], params['rp']
    A = params['w_ah_t'].shape[1]
    weights = [params[k] for k in _WEIGHT_KEYS]

    def weight_spec(arr):
        nd = arr.ndim
        kwargs = {}
        if single_buffer_weights:
            # Constant index_map -> block never changes; one buffer reclaims
            # the VMEM the default double-buffering would hold.
            kwargs['pipeline_mode'] = pl.Buffered(buffer_count=1)
        return pl.BlockSpec(arr.shape, lambda b, i, _nd=nd: (0,) * _nd, **kwargs)

    if fused_rel_minor:
        rel_shape = (B, SP, SP, n_rels)
        rel_spec = pl.BlockSpec((1, tile, SP, n_rels), lambda b, i: (b, i, 0, 0))
        scratch = [pltpu.VMEM((A, SP), jnp.float32),
                   pltpu.VMEM((rp, SP), jnp.float32)]
    else:
        rel_shape = (B, n_rels, SP, SP)
        rel_spec = pl.BlockSpec((1, n_rels, tile, SP), lambda b, i: (b, 0, i, 0))
        scratch = [pltpu.VMEM((SP, A), jnp.float32),
                   pltpu.VMEM((SP, rp), jnp.float32)]

    kernel = functools.partial(_biaffine_kernel, n_rels=n_rels, rp=rp,
                               tile_s=tile, fused_rel_minor=fused_rel_minor)

    in_specs = [
        pl.BlockSpec((1, 1, SP), lambda b, i: (b, 0, 0)),   # mask
        # x: block index constant over the tile axis -> Pallas skips re-copy.
        pl.BlockSpec((1, SP, H), lambda b, i: (b, 0, 0)),
    ] + [weight_spec(w) for w in weights]

    s_arc, s_rel = pl.pallas_call(
        kernel,
        out_shape=(jax.ShapeDtypeStruct((B, SP, SP), out_dtype),
                   jax.ShapeDtypeStruct(rel_shape, out_dtype)),
        grid_spec=pltpu.PrefetchScalarGridSpec(
            num_scalar_prefetch=0,
            grid=(B, n_tiles),
            in_specs=in_specs,
            out_specs=[
                pl.BlockSpec((1, tile, SP), lambda b, i: (b, i, 0)),
                rel_spec,
            ],
            scratch_shapes=scratch),
        compiler_params=pltpu.CompilerParams(
            # Batch axis is independent -> shard across v7x's 2 TensorCores;
            # the tile axis carries the scratch reuse -> "arbitrary".
            dimension_semantics=("parallel", "arbitrary"),
            vmem_limit_bytes=64 * 1024 * 1024),
    )(mask3, x, *weights)

    if not fused_rel_minor:
        # Compatibility fallback only: costs an extra HBM round trip of s_rel.
        s_rel = jnp.transpose(s_rel, (0, 2, 3, 1))
    return s_arc, s_rel


def _spot_check(x, mask3, params, s_arc, s_rel, tol=2e-2):
    """Cheap jnp check of one dependent token (guards the fused relayout path)."""
    leaky = lambda h: jnp.where(h > 0, h, NEG_SLOPE * h)
    rp, n_rels = params['rp'], params['n_rels']
    xb = x[0]                                                          # [S, H]
    ad = leaky(xb[0:1] @ params['w_ad_t'] + params['b_ad'])            # [1, A+1]
    rd = leaky(xb[0:1] @ params['w_rd_t'] + params['b_rd'])            # [1, R+1]
    ah = leaky(xb @ params['w_ah_t'] + params['b_ah'])                 # [S, A]
    rh = leaky(xb @ params['w_rh_t'] + params['b_rh'])                 # [S, rp]
    ref_arc = (ad @ params['w_arc'] @ ah.T)[0]                         # [S]
    ref_arc = jnp.where(mask3[0, 0] != 0, ref_arc, -jnp.inf)
    t = rd @ params['w_rel_big']                                       # [1, n_rels*rp]
    ref_rel = jnp.stack([(t[:, o * rp:(o + 1) * rp] @ rh.T)[0]
                         for o in range(n_rels)], axis=-1)             # [S, n_rels]
    ok = jnp.allclose(s_arc[0, 0].astype(jnp.float32), ref_arc, rtol=tol, atol=tol)
    ok &= jnp.allclose(s_rel[0, 0].astype(jnp.float32), ref_rel, rtol=tol, atol=tol)
    return bool(ok)


def biaffine_dependency_forward(x, mask, params, *, tile_s=128,
                                out_dtype=jnp.float32):
    """x: [B, S, H] f32, mask: [B, S] bool ->
       (s_arc [B, S, S], s_rel [B, S, S, n_rels])."""
    B, S, H = x.shape

    # Pad the token axis so every dependent tile is sublane (8-) aligned and
    # the tile count is exact; production callers should pad S to a multiple
    # of 128 upstream for fully lane-dense stores.
    sp8 = _round_up(S, 8)
    tile = max(8, (min(tile_s, sp8) // 8) * 8)
    spp = _round_up(sp8, tile)
    n_tiles = spp // tile
    xp, maskp = x, mask
    if spp != S:
        xp = jnp.pad(x, ((0, 0), (0, spp - S), (0, 0)))
        maskp = jnp.pad(mask, ((0, 0), (0, spp - S)))
    mask3 = maskp.astype(jnp.int32).reshape(B, 1, spp)

    # Preferred config first; fall back to progressively more conservative
    # configs if this Pallas/Mosaic version rejects (or mis-lowers) the
    # in-kernel minor-dim relayout or single-buffered weights.
    configs = (
        dict(fused_rel_minor=True, single_buffer_weights=True),
        dict(fused_rel_minor=True, single_buffer_weights=False),
        dict(fused_rel_minor=False, single_buffer_weights=False),
    )
    last_err = None
    s_arc = s_rel = None
    for cfg in configs:
        try:
            s_arc, s_rel = _run_pallas(xp, mask3, params, tile=tile,
                                       n_tiles=n_tiles, out_dtype=out_dtype, **cfg)
            s_arc, s_rel = jax.block_until_ready((s_arc, s_rel))
            if not _spot_check(xp, mask3, params, s_arc, s_rel):
                raise RuntimeError('pallas kernel output failed spot check')
            break
        except Exception as e:  # fall back to the next, more conservative config
            last_err = e
            s_arc = s_rel = None
    if s_arc is None:
        raise last_err

    if spp != S:
        s_arc = s_arc[:, :S, :S]
        s_rel = s_rel[:, :S, :S, :]
    return s_arc, s_rel


def make_params(key, hidden_size, n_mlp_arc, n_mlp_rel, n_rels):
    """Deterministic synthetic parameters matching BiaffineDecoder.__init__,
    plus the kernel-side packed/augmented layouts."""
    ks = jax.random.split(key, 10)
    scale = 0.1

    def lin(kw, kb, n_out, n_in):
        w = scale * jax.random.normal(kw, (n_out, n_in), jnp.float32)  # torch Linear: [out, in]
        b = scale * jax.random.normal(kb, (n_out,), jnp.float32)
        return w, b

    w_ad, b_ad = lin(ks[0], ks[1], n_mlp_arc, hidden_size)
    w_ah, b_ah = lin(ks[2], ks[3], n_mlp_arc, hidden_size)
    w_rd, b_rd = lin(ks[4], ks[5], n_mlp_rel, hidden_size)
    w_rh, b_rh = lin(ks[6], ks[7], n_mlp_rel, hidden_size)
    # Biaffine weights: arc [1, A+1, A] (bias_x only), rel [n_rels, R+1, R+1].
    w_arc = scale * jax.random.normal(ks[8], (1, n_mlp_arc + 1, n_mlp_arc), jnp.float32)
    w_rel = scale * jax.random.normal(ks[9], (n_rels, n_mlp_rel + 1, n_mlp_rel + 1), jnp.float32)

    raw = dict(w_ad=w_ad, b_ad=b_ad, w_ah=w_ah, b_ah=b_ah,
               w_rd=w_rd, b_rd=b_rd, w_rh=w_rh, b_rh=b_rh,
               w_arc=w_arc, w_rel=w_rel)

    r1 = n_mlp_rel + 1
    rp = _round_up(r1, 128)   # per-relation lane padding -> vreg-aligned slices

    def augment(w, b, pad_to=None):
        # Extra channel: zero weights + bias 1 -> LeakyReLU gives exactly 1
        # (reproduces the Biaffine ones-concat). Optional zero channels pad
        # the rel head space to a lane multiple (contribute exactly 0).
        w_aug = jnp.concatenate([w, jnp.zeros((1, w.shape[1]), jnp.float32)], axis=0)
        b_aug = jnp.concatenate([b, jnp.ones((1,), jnp.float32)], axis=0)
        if pad_to is not None and pad_to > w_aug.shape[0]:
            extra = pad_to - w_aug.shape[0]
            w_aug = jnp.concatenate([w_aug, jnp.zeros((extra, w.shape[1]), jnp.float32)], axis=0)
            b_aug = jnp.concatenate([b_aug, jnp.zeros((extra,), jnp.float32)], axis=0)
        return w_aug, b_aug

    w_ad_a, b_ad_a = augment(w_ad, b_ad)                 # [A+1, H]
    w_rd_a, b_rd_a = augment(w_rd, b_rd)                 # [R+1, H]
    w_rh_a, b_rh_a = augment(w_rh, b_rh, pad_to=rp)      # [rp, H]

    # Pack the relation biaffine weights for one wide first-stage matmul:
    # w_rel_big[i, o*rp + j] = w_rel[o, i, j], zero-padded to rp per relation.
    w_rel_big = jnp.zeros((r1, n_rels * rp), jnp.float32)
    for o in range(n_rels):
        w_rel_big = w_rel_big.at[:, o * rp:o * rp + r1].set(w_rel[o])

    kernel_params = dict(
        w_ad_t=w_ad_a.T, b_ad=b_ad_a.reshape(1, -1),
        w_ah_t=w_ah.T, b_ah=b_ah.reshape(1, -1),
        w_rd_t=w_rd_a.T, b_rd=b_rd_a.reshape(1, -1),
        w_rh_t=w_rh_a.T, b_rh=b_rh_a.reshape(1, -1),
        w_arc=w_arc[0],          # [A+1, A]
        w_rel_big=w_rel_big,     # [R+1, n_rels*rp]
        n_rels=n_rels, rp=rp,
    )
    return kernel_params, raw


def reference_forward(x, mask, raw):
    """Pure numpy reference mirroring the PyTorch BiaffineDecoder forward."""
    x = np.asarray(x, np.float32)
    mask = np.asarray(mask, bool)

    def mlp(w, b):
        h = x @ np.asarray(w).T + np.asarray(b)
        return np.where(h > 0, h, NEG_SLOPE * h)

    arc_d, arc_h = mlp(raw['w_ad'], raw['b_ad']), mlp(raw['w_ah'], raw['b_ah'])
    rel_d, rel_h = mlp(raw['w_rd'], raw['b_rd']), mlp(raw['w_rh'], raw['b_rh'])
    ones = np.ones(arc_d.shape[:-1] + (1,), np.float32)
    arc_d_b = np.concatenate([arc_d, ones], -1)
    rel_d_b = np.concatenate([rel_d, ones], -1)
    rel_h_b = np.concatenate([rel_h, ones], -1)
    s_arc = np.einsum('bxi,ij,byj->bxy', arc_d_b, np.asarray(raw['w_arc'])[0], arc_h)
    s_arc = np.where(mask[:, None, :], s_arc, -np.inf)
    s_rel = np.einsum('bxi,oij,byj->boxy', rel_d_b, np.asarray(raw['w_rel']), rel_h_b)
    s_rel = np.transpose(s_rel, (0, 2, 3, 1))
    return s_arc, s_rel


if __name__ == "__main__":
    B, S, H = 2, 8, 32
    n_mlp_arc, n_mlp_rel, n_rels = 16, 8, 4

    key = jax.random.PRNGKey(0)
    k_x, k_p = jax.random.split(key)

    x = jax.random.normal(k_x, (B, S, H), jnp.float32)
    lens = np.array([8, 5])
    mask = jnp.asarray(np.arange(S)[None, :] < lens[:, None])  # [B, S] bool

    params, raw = make_params(k_p, H, n_mlp_arc, n_mlp_rel, n_rels)

    s_arc, s_rel = biaffine_dependency_forward(x, mask, params)
    s_arc, s_rel = jax.block_until_ready((s_arc, s_rel))

    ref_arc, ref_rel = reference_forward(x, mask, raw)
    assert s_arc.shape == (B, S, S) and s_rel.shape == (B, S, S, n_rels)
    assert np.allclose(np.asarray(s_arc), ref_arc, rtol=1e-3, atol=1e-3)
    assert np.allclose(np.asarray(s_rel), ref_rel, rtol=1e-3, atol=1e-3)

    print("KERNEL_OK")
</pallas_src>

<mosaic_0001>
module attributes {stable_mosaic.version = 11 : i64} {
  func.func @_biaffine_kernel(%arg0: i32, %arg1: i32, %arg2: memref<1x1x8xi32, #tpu.memory_space<vmem>>, %arg3: memref<1x8x32xf32, #tpu.memory_space<vmem>>, %arg4: memref<32x17xf32, #tpu.memory_space<vmem>>, %arg5: memref<1x17xf32, #tpu.memory_space<vmem>>, %arg6: memref<32x16xf32, #tpu.memory_space<vmem>>, %arg7: memref<1x16xf32, #tpu.memory_space<vmem>>, %arg8: memref<32x9xf32, #tpu.memory_space<vmem>>, %arg9: memref<1x9xf32, #tpu.memory_space<vmem>>, %arg10: memref<32x128xf32, #tpu.memory_space<vmem>>, %arg11: memref<1x128xf32, #tpu.memory_space<vmem>>, %arg12: memref<17x16xf32, #tpu.memory_space<vmem>>, %arg13: memref<9x512xf32, #tpu.memory_space<vmem>>, %arg14: memref<1x8x8xf32, #tpu.memory_space<vmem>>, %arg15: memref<1x8x8x4xf32, #tpu.memory_space<vmem>>, %arg16: memref<16x8xf32, #tpu.memory_space<vmem>>, %arg17: memref<128x8xf32, #tpu.memory_space<vmem>>) attributes {dimension_semantics = [#tpu.dimension_semantics<parallel>, #tpu.dimension_semantics<arbitrary>], iteration_bounds = array<i64: 2, 1>, scalar_prefetch = 0 : i64, scratch_operands = 2 : i64, tpu.core_type = #tpu.core_type<tc>, window_params = [{transform_indices = @transform_0, window_bounds = array<i64: 1, 1, 8>}, {transform_indices = @transform_1, window_bounds = array<i64: 1, 8, 32>}, {pipeline_mode = #tpu.pipeline_mode<synchronous>, transform_indices = @transform_2, window_bounds = array<i64: 32, 17>}, {pipeline_mode = #tpu.pipeline_mode<synchronous>, transform_indices = @transform_3, window_bounds = array<i64: 1, 17>}, {pipeline_mode = #tpu.pipeline_mode<synchronous>, transform_indices = @transform_4, window_bounds = array<i64: 32, 16>}, {pipeline_mode = #tpu.pipeline_mode<synchronous>, transform_indices = @transform_5, window_bounds = array<i64: 1, 16>}, {pipeline_mode = #tpu.pipeline_mode<synchronous>, transform_indices = @transform_6, window_bounds = array<i64: 32, 9>}, {pipeline_mode = #tpu.pipeline_mode<synchronous>, transform_indices = @transform_7, window_bounds = array<i64: 1, 9>}, {pipeline_mode = #tpu.pipeline_mode<synchronous>, transform_indices = @transform_8, window_bounds = array<i64: 32, 128>}, {pipeline_mode = #tpu.pipeline_mode<synchronous>, transform_indices = @transform_9, window_bounds = array<i64: 1, 128>}, {pipeline_mode = #tpu.pipeline_mode<synchronous>, transform_indices = @transform_10, window_bounds = array<i64: 17, 16>}, {pipeline_mode = #tpu.pipeline_mode<synchronous>, transform_indices = @transform_11, window_bounds = array<i64: 9, 512>}, {transform_indices = @transform_12, window_bounds = array<i64: 1, 8, 8>}, {transform_indices = @transform_13, window_bounds = array<i64: 1, 8, 8, 4>}]} {
    %c0_i32 = arith.constant 0 : i32
    %0 = arith.cmpi eq, %arg1, %c0_i32 : i32
    %1 = arith.extui %0 : i1 to i32
    %c0_i32_0 = arith.constant 0 : i32
    %2 = arith.cmpi ne, %1, %c0_i32_0 : i32
    scf.if %2 {
      %c0_42 = arith.constant 0 : index
      %c0_43 = arith.constant 0 : index
      %c0_44 = arith.constant 0 : index
      %63 = vector.load %arg3[%c0_42, %c0_43, %c0_44] : memref<1x8x32xf32, #tpu.memory_space<vmem>>, vector<1x8x32xf32>
      %64 = vector.shape_cast %63 : vector<1x8x32xf32> to vector<8x32xf32>
      %c0_45 = arith.constant 0 : index
      %c0_46 = arith.constant 0 : index
      %65 = vector.load %arg6[%c0_45, %c0_46] : memref<32x16xf32, #tpu.memory_space<vmem>>, vector<32x16xf32>
      %cst_47 = arith.constant dense<0.000000e+00> : vector<8x16xf32>
      %66 = tpu.matmul %64, %65, %cst_47 {dimension_numbers = #tpu.dot_dimension_numbers<[1], [0], [0], [1], [0, 0, 1, 1], [], []>} : vector<8x32xf32>, vector<32x16xf32>, vector<8x16xf32> -> vector<8x16xf32>
      %c0_48 = arith.constant 0 : index
      %c0_49 = arith.constant 0 : index
      %67 = vector.load %arg7[%c0_48, %c0_49] : memref<1x16xf32, #tpu.memory_space<vmem>>, vector<1x16xf32>
      %68 = vector.broadcast %67 : vector<1x16xf32> to vector<8x16xf32>
      %69 = arith.addf %66, %68 : vector<8x16xf32>
      %cst_50 = arith.constant 0.000000e+00 : f32
      %70 = vector.broadcast %cst_50 : f32 to vector<8x16xf32>
      %71 = arith.cmpf ogt, %69, %70 : vector<8x16xf32>
      %cst_51 = arith.constant 1.000000e-01 : f32
      %72 = vector.broadcast %cst_51 : f32 to vector<8x16xf32>
      %73 = arith.mulf %72, %69 : vector<8x16xf32>
      %74 = arith.select %71, %69, %73 : vector<8x16xi1>, vector<8x16xf32>
      %c0_52 = arith.constant 0 : index
      %c0_53 = arith.constant 0 : index
      %75 = vector.load %arg10[%c0_52, %c0_53] : memref<32x128xf32, #tpu.memory_space<vmem>>, vector<32x128xf32>
      %cst_54 = arith.constant dense<0.000000e+00> : vector<8x128xf32>
      %76 = tpu.matmul %64, %75, %cst_54 {dimension_numbers = #tpu.dot_dimension_numbers<[1], [0], [0], [1], [0, 0, 1, 1], [], []>} : vector<8x32xf32>, vector<32x128xf32>, vector<8x128xf32> -> vector<8x128xf32>
      %c0_55 = arith.constant 0 : index
      %c0_56 = arith.constant 0 : index
      %77 = vector.load %arg11[%c0_55, %c0_56] : memref<1x128xf32, #tpu.memory_space<vmem>>, vector<1x128xf32>
      %78 = vector.broadcast %77 : vector<1x128xf32> to vector<8x128xf32>
      %79 = arith.addf %76, %78 : vector<8x128xf32>
      %cst_57 = arith.constant 0.000000e+00 : f32
      %80 = vector.broadcast %cst_57 : f32 to vector<8x128xf32>
      %81 = arith.cmpf ogt, %79, %80 : vector<8x128xf32>
      %cst_58 = arith.constant 1.000000e-01 : f32
      %82 = vector.broadcast %cst_58 : f32 to vector<8x128xf32>
      %83 = arith.mulf %82, %79 : vector<8x128xf32>
      %84 = arith.select %81, %79, %83 : vector<8x128xi1>, vector<8x128xf32>
      %85 = tpu.transpose %74, [1, 0] : vector<8x16xf32> -> vector<16x8xf32>
      %c0_59 = arith.constant 0 : index
      %c0_60 = arith.constant 0 : index
      %86 = vector.load %arg16[%c0_59, %c0_60] : memref<16x8xf32, #tpu.memory_space<vmem>>, vector<16x8xf32>
      tpu.vector_store %arg16[%c0_59, %c0_60], %85 {strides = array<i32>} : memref<16x8xf32, #tpu.memory_space<vmem>>, vector<16x8xf32>,
      %87 = tpu.transpose %84, [1, 0] : vector<8x128xf32> -> vector<128x8xf32>
      %c0_61 = arith.constant 0 : index
      %c0_62 = arith.constant 0 : index
      %88 = vector.load %arg17[%c0_61, %c0_62] : memref<128x8xf32, #tpu.memory_space<vmem>>, vector<128x8xf32>
      tpu.vector_store %arg17[%c0_61, %c0_62], %87 {strides = array<i32>} : memref<128x8xf32, #tpu.memory_space<vmem>>, vector<128x8xf32>,
    } else {
    }
    %c8_i32 = arith.constant 8 : i32
    %3 = arith.muli %arg1, %c8_i32 : i32
    %4 = tpu.assume_multiple %3, 8 : i32
    %c0 = arith.constant 0 : index
    %5 = arith.index_cast %4 : i32 to index
    %c0_1 = arith.constant 0 : index
    %6 = vector.load %arg3[%c0, %5, %c0_1] : memref<1x8x32xf32, #tpu.memory_space<vmem>>, vector<1x8x32xf32>
    %7 = vector.shape_cast %6 : vector<1x8x32xf32> to vector<8x32xf32>
    %c0_2 = arith.constant 0 : index
    %c0_3 = arith.constant 0 : index
    %8 = vector.load %arg4[%c0_2, %c0_3] : memref<32x17xf32, #tpu.memory_space<vmem>>, vector<32x17xf32>
    %cst = arith.constant dense<0.000000e+00> : vector<8x17xf32>
    %9 = tpu.matmul %7, %8, %cst {dimension_numbers = #tpu.dot_dimension_numbers<[1], [0], [0], [1], [0, 0, 1, 1], [], []>} : vector<8x32xf32>, vector<32x17xf32>, vector<8x17xf32> -> vector<8x17xf32>
    %c0_4 = arith.constant 0 : index
    %c0_5 = arith.constant 0 : index
    %10 = vector.load %arg5[%c0_4, %c0_5] : memref<1x17xf32, #tpu.memory_space<vmem>>, vector<1x17xf32>
    %11 = vector.broadcast %10 : vector<1x17xf32> to vector<8x17xf32>
    %12 = arith.addf %9, %11 : vector<8x17xf32>
    %cst_6 = arith.constant 0.000000e+00 : f32
    %13 = vector.broadcast %cst_6 : f32 to vector<8x17xf32>
    %14 = arith.cmpf ogt, %12, %13 : vector<8x17xf32>
    %cst_7 = arith.constant 1.000000e-01 : f32
    %15 = vector.broadcast %cst_7 : f32 to vector<8x17xf32>
    %16 = arith.mulf %15, %12 : vector<8x17xf32>
    %17 = arith.select %14, %12, %16 : vector<8x17xi1>, vector<8x17xf32>
    %c0_8 = arith.constant 0 : index
    %c0_9 = arith.constant 0 : index
    %18 = vector.load %arg8[%c0_8, %c0_9] : memref<32x9xf32, #tpu.memory_space<vmem>>, vector<32x9xf32>
    %cst_10 = arith.constant dense<0.000000e+00> : vector<8x9xf32>
    %19 = tpu.matmul %7, %18, %cst_10 {dimension_numbers = #tpu.dot_dimension_numbers<[1], [0], [0], [1], [0, 0, 1, 1], [], []>} : vector<8x32xf32>, vector<32x9xf32>, vector<8x9xf32> -> vector<8x9xf32>
    %c0_11 = arith.constant 0 : index
    %c0_12 = arith.constant 0 : index
    %20 = vector.load %arg9[%c0_11, %c0_12] : memref<1x9xf32, #tpu.memory_space<vmem>>, vector<1x9xf32>
    %21 = vector.broadcast %20 : vector<1x9xf32> to vector<8x9xf32>
    %22 = arith.addf %19, %21 : vector<8x9xf32>
    %cst_13 = arith.constant 0.000000e+00 : f32
    %23 = vector.broadcast %cst_13 : f32 to vector<8x9xf32>
    %24 = arith.cmpf ogt, %22, %23 : vector<8x9xf32>
    %cst_14 = arith.constant 1.000000e-01 : f32
    %25 = vector.broadcast %cst_14 : f32 to vector<8x9xf32>
    %26 = arith.mulf %25, %22 : vector<8x9xf32>
    %27 = arith.select %24, %22, %26 : vector<8x9xi1>, vector<8x9xf32>
    %c0_15 = arith.constant 0 : index
    %c0_16 = arith.constant 0 : index
    %28 = vector.load %arg12[%c0_15, %c0_16] : memref<17x16xf32, #tpu.memory_space<vmem>>, vector<17x16xf32>
    %cst_17 = arith.constant dense<0.000000e+00> : vector<8x16xf32>
    %29 = tpu.matmul %17, %28, %cst_17 {dimension_numbers = #tpu.dot_dimension_numbers<[1], [0], [0], [1], [0, 0, 1, 1], [], []>} : vector<8x17xf32>, vector<17x16xf32>, vector<8x16xf32> -> vector<8x16xf32>
    %c0_18 = arith.constant 0 : index
    %c0_19 = arith.constant 0 : index
    %30 = vector.load %arg16[%c0_18, %c0_19] : memref<16x8xf32, #tpu.memory_space<vmem>>, vector<16x8xf32>
    %cst_20 = arith.constant dense<0.000000e+00> : vector<8x8xf32>
    %31 = tpu.matmul %29, %30, %cst_20 {dimension_numbers = #tpu.dot_dimension_numbers<[1], [0], [0], [1], [0, 0, 1, 1], [], []>} : vector<8x16xf32>, vector<16x8xf32>, vector<8x8xf32> -> vector<8x8xf32>
    %c0_21 = arith.constant 0 : index
    %c0_22 = arith.constant 0 : index
    %c0_23 = arith.constant 0 : index
    %32 = vector.load %arg2[%c0_21, %c0_22, %c0_23] : memref<1x1x8xi32, #tpu.memory_space<vmem>>, vector<1x1x8xi32>
    %33 = vector.shape_cast %32 : vector<1x1x8xi32> to vector<1x8xi32>
    %c0_i32_24 = arith.constant 0 : i32
    %34 = vector.broadcast %c0_i32_24 : i32 to vector<1x8xi32>
    %35 = arith.cmpi ne, %33, %34 : vector<1x8xi32>
    %cst_25 = arith.constant 0xFF800000 : f32
    %36 = vector.shape_cast %35 : vector<1x8xi1> to vector<1x8xi1>
    %37 = vector.broadcast %36 : vector<1x8xi1> to vector<8x8xi1>
    %38 = vector.broadcast %cst_25 : f32 to vector<8x8xf32>
    %39 = arith.select %37, %31, %38 : vector<8x8xi1>, vector<8x8xf32>
    %c0_26 = arith.constant 0 : index
    %c0_27 = arith.constant 0 : index
    %c0_28 = arith.constant 0 : index
    %40 = vector.load %arg14[%c0_26, %c0_27, %c0_28] : memref<1x8x8xf32, #tpu.memory_space<vmem>>, vector<1x8x8xf32>
    %41 = vector.shape_cast %40 : vector<1x8x8xf32> to vector<8x8xf32>
    %42 = vector.shape_cast %39 : vector<8x8xf32> to vector<1x8x8xf32>
    tpu.vector_store %arg14[%c0_26, %c0_27, %c0_28], %42 {strides = array<i32>} : memref<1x8x8xf32, #tpu.memory_space<vmem>>, vector<1x8x8xf32>,
    %c0_29 = arith.constant 0 : index
    %c0_30 = arith.constant 0 : index
    %43 = vector.load %arg17[%c0_29, %c0_30] : memref<128x8xf32, #tpu.memory_space<vmem>>, vector<128x8xf32>
    %c0_31 = arith.constant 0 : index
    %c0_32 = arith.constant 0 : index
    %44 = vector.load %arg13[%c0_31, %c0_32] : memref<9x512xf32, #tpu.memory_space<vmem>>, vector<9x512xf32>
    %cst_33 = arith.constant dense<0.000000e+00> : vector<8x512xf32>
    %45 = tpu.matmul %27, %44, %cst_33 {dimension_numbers = #tpu.dot_dimension_numbers<[1], [0], [0], [1], [0, 0, 1, 1], [], []>} : vector<8x9xf32>, vector<9x512xf32>, vector<8x512xf32> -> vector<8x512xf32>
    %46 = vector.extract_strided_slice %45 {offsets = [0, 0], sizes = [8, 128], strides = [1, 1]} : vector<8x512xf32> to vector<8x128xf32>
    %cst_34 = arith.constant dense<0.000000e+00> : vector<8x8xf32>
    %47 = tpu.matmul %46, %43, %cst_34 {dimension_numbers = #tpu.dot_dimension_numbers<[1], [0], [0], [1], [0, 0, 1, 1], [], []>} : vector<8x128xf32>, vector<128x8xf32>, vector<8x8xf32> -> vector<8x8xf32>
    %48 = vector.extract_strided_slice %45 {offsets = [0, 128], sizes = [8, 128], strides = [1, 1]} : vector<8x512xf32> to vector<8x128xf32>
    %cst_35 = arith.constant dense<0.000000e+00> : vector<8x8xf32>
    %49 = tpu.matmul %48, %43, %cst_35 {dimension_numbers = #tpu.dot_dimension_numbers<[1], [0], [0], [1], [0, 0, 1, 1], [], []>} : vector<8x128xf32>, vector<128x8xf32>, vector<8x8xf32> -> vector<8x8xf32>
    %50 = vector.extract_strided_slice %45 {offsets = [0, 256], sizes = [8, 128], strides = [1, 1]} : vector<8x512xf32> to vector<8x128xf32>
    %cst_36 = arith.constant dense<0.000000e+00> : vector<8x8xf32>
    %51 = tpu.matmul %50, %43, %cst_36 {dimension_numbers = #tpu.dot_dimension_numbers<[1], [0], [0], [1], [0, 0, 1, 1], [], []>} : vector<8x128xf32>, vector<128x8xf32>, vector<8x8xf32> -> vector<8x8xf32>
    %52 = vector.extract_strided_slice %45 {offsets = [0, 384], sizes = [8, 128], strides = [1, 1]} : vector<8x512xf32> to vector<8x128xf32>
    %cst_37 = arith.constant dense<0.000000e+00> : vector<8x8xf32>
    %53 = tpu.matmul %52, %43, %cst_37 {dimension_numbers = #tpu.dot_dimension_numbers<[1], [0], [0], [1], [0, 0, 1, 1], [], []>} : vector<8x128xf32>, vector<128x8xf32>, vector<8x8xf32> -> vector<8x8xf32>
    %54 = vector.shape_cast %47 : vector<8x8xf32> to vector<8x1x8xf32>
    %55 = vector.shape_cast %49 : vector<8x8xf32> to vector<8x1x8xf32>
    %56 = vector.shape_cast %51 : vector<8x8xf32> to vector<8x1x8xf32>
    %57 = vector.shape_cast %53 : vector<8x8xf32> to vector<8x1x8xf32>
    %58 = tpu.concatenate %54, %55, %56, %57 in 1 : vector<8x1x8xf32>, vector<8x1x8xf32>, vector<8x1x8xf32>, vector<8x1x8xf32> -> vector<8x4x8xf32>
    %59 = tpu.transpose %58, [0, 2, 1] : vector<8x4x8xf32> -> vector<8x8x4xf32>
    %c0_38 = arith.constant 0 : index
    %c0_39 = arith.constant 0 : index
    %c0_40 = arith.constant 0 : index
    %c0_41 = arith.constant 0 : index
    %60 = vector.load %arg15[%c0_38, %c0_39, %c0_40, %c0_41] : memref<1x8x8x4xf32, #tpu.memory_space<vmem>>, vector<1x8x8x4xf32>
    %61 = vector.shape_cast %60 : vector<1x8x8x4xf32> to vector<8x8x4xf32>
    %62 = vector.shape_cast %59 : vector<8x8x4xf32> to vector<1x8x8x4xf32>
    tpu.vector_store %arg15[%c0_38, %c0_39, %c0_40, %c0_41], %62 {strides = array<i32>} : memref<1x8x8x4xf32, #tpu.memory_space<vmem>>, vector<1x8x8x4xf32>,
    return
  }
  func.func @transform_0(%arg0: i32, %arg1: i32) -> (i32, i32, i32) {
    %c0_i32 = arith.constant 0 : i32
    %c0_i32_0 = arith.constant 0 : i32
    %c0_i32_1 = arith.constant 0 : i32
    return %arg0, %c0_i32, %c0_i32_0 : i32, i32, i32
  }
  func.func @transform_1(%arg0: i32, %arg1: i32) -> (i32, i32, i32) {
    %c0_i32 = arith.constant 0 : i32
    %c0_i32_0 = arith.constant 0 : i32
    %c0_i32_1 = arith.constant 0 : i32
    return %arg0, %c0_i32, %c0_i32_0 : i32, i32, i32
  }
  func.func @transform_2(%arg0: i32, %arg1: i32) -> (i32, i32) {
    %c0_i32 = arith.constant 0 : i32
    %c0_i32_0 = arith.constant 0 : i32
    %c0_i32_1 = arith.constant 0 : i32
    return %c0_i32, %c0_i32_0 : i32, i32
  }
  func.func @transform_3(%arg0: i32, %arg1: i32) -> (i32, i32) {
    %c0_i32 = arith.constant 0 : i32
    %c0_i32_0 = arith.constant 0 : i32
    %c0_i32_1 = arith.constant 0 : i32
    return %c0_i32, %c0_i32_0 : i32, i32
  }
  func.func @transform_4(%arg0: i32, %arg1: i32) -> (i32, i32) {
    %c0_i32 = arith.constant 0 : i32
    %c0_i32_0 = arith.constant 0 : i32
    %c0_i32_1 = arith.constant 0 : i32
    return %c0_i32, %c0_i32_0 : i32, i32
  }
  func.func @transform_5(%arg0: i32, %arg1: i32) -> (i32, i32) {
    %c0_i32 = arith.constant 0 : i32
    %c0_i32_0 = arith.constant 0 : i32
    %c0_i32_1 = arith.constant 0 : i32
    return %c0_i32, %c0_i32_0 : i32, i32
  }
  func.func @transform_6(%arg0: i32, %arg1: i32) -> (i32, i32) {
    %c0_i32 = arith.constant 0 : i32
    %c0_i32_0 = arith.constant 0 : i32
    %c0_i32_1 = arith.constant 0 : i32
    return %c0_i32, %c0_i32_0 : i32, i32
  }
  func.func @transform_7(%arg0: i32, %arg1: i32) -> (i32, i32) {
    %c0_i32 = arith.constant 0 : i32
    %c0_i32_0 = arith.constant 0 : i32
    %c0_i32_1 = arith.constant 0 : i32
    return %c0_i32, %c0_i32_0 : i32, i32
  }
  func.func @transform_8(%arg0: i32, %arg1: i32) -> (i32, i32) {
    %c0_i32 = arith.constant 0 : i32
    %c0_i32_0 = arith.constant 0 : i32
    %c0_i32_1 = arith.constant 0 : i32
    return %c0_i32, %c0_i32_0 : i32, i32
  }
  func.func @transform_9(%arg0: i32, %arg1: i32) -> (i32, i32) {
    %c0_i32 = arith.constant 0 : i32
    %c0_i32_0 = arith.constant 0 : i32
    %c0_i32_1 = arith.constant 0 : i32
    return %c0_i32, %c0_i32_0 : i32, i32
  }
  func.func @transform_10(%arg0: i32, %arg1: i32) -> (i32, i32) {
    %c0_i32 = arith.constant 0 : i32
    %c0_i32_0 = arith.constant 0 : i32
    %c0_i32_1 = arith.constant 0 : i32
    return %c0_i32, %c0_i32_0 : i32, i32
  }
  func.func @transform_11(%arg0: i32, %arg1: i32) -> (i32, i32) {
    %c0_i32 = arith.constant 0 : i32
    %c0_i32_0 = arith.constant 0 : i32
    %c0_i32_1 = arith.constant 0 : i32
    return %c0_i32, %c0_i32_0 : i32, i32
  }
  func.func @transform_12(%arg0: i32, %arg1: i32) -> (i32, i32, i32) {
    %c0_i32 = arith.constant 0 : i32
    %c0_i32_0 = arith.constant 0 : i32
    return %arg0, %arg1, %c0_i32 : i32, i32, i32
  }
  func.func @transform_13(%arg0: i32, %arg1: i32) -> (i32, i32, i32, i32) {
    %c0_i32 = arith.constant 0 : i32
    %c0_i32_0 = arith.constant 0 : i32
    %c0_i32_1 = arith.constant 0 : i32
    return %arg0, %arg1, %c0_i32, %c0_i32_0 : i32, i32, i32, i32
  }
}

module attributes {stable_mosaic.version = 11 : i64} {
  func.func @_biaffine_kernel(%arg0: i32, %arg1: i32, %arg2: memref<1x1x8xi32, #tpu.memory_space<vmem>>, %arg3: memref<1x8x32xf32, #tpu.memory_space<vmem>>, %arg4: memref<32x17xf32, #tpu.memory_space<vmem>>, %arg5: memref<1x17xf32, #tpu.memory_space<vmem>>, %arg6: memref<32x16xf32, #tpu.memory_space<vmem>>, %arg7: memref<1x16xf32, #tpu.memory_space<vmem>>, %arg8: memref<32x9xf32, #tpu.memory_space<vmem>>, %arg9: memref<1x9xf32, #tpu.memory_space<vmem>>, %arg10: memref<32x128xf32, #tpu.memory_space<vmem>>, %arg11: memref<1x128xf32, #tpu.memory_space<vmem>>, %arg12: memref<17x16xf32, #tpu.memory_space<vmem>>, %arg13: memref<9x512xf32, #tpu.memory_space<vmem>>, %arg14: memref<1x8x8xf32, #tpu.memory_space<vmem>>, %arg15: memref<1x8x8x4xf32, #tpu.memory_space<vmem>>, %arg16: memref<16x8xf32, #tpu.memory_space<vmem>>, %arg17: memref<128x8xf32, #tpu.memory_space<vmem>>) attributes {dimension_semantics = [#tpu.dimension_semantics<parallel>, #tpu.dimension_semantics<arbitrary>], iteration_bounds = array<i64: 2, 1>, scalar_prefetch = 0 : i64, scratch_operands = 2 : i64, tpu.core_type = #tpu.core_type<tc>, window_params = [{transform_indices = @transform_0, window_bounds = array<i64: 1, 1, 8>}, {transform_indices = @transform_1, window_bounds = array<i64: 1, 8, 32>}, {pipeline_mode = #tpu.pipeline_mode<synchronous>, transform_indices = @transform_2, window_bounds = array<i64: 32, 17>}, {pipeline_mode = #tpu.pipeline_mode<synchronous>, transform_indices = @transform_3, window_bounds = array<i64: 1, 17>}, {pipeline_mode = #tpu.pipeline_mode<synchronous>, transform_indices = @transform_4, window_bounds = array<i64: 32, 16>}, {pipeline_mode = #tpu.pipeline_mode<synchronous>, transform_indices = @transform_5, window_bounds = array<i64: 1, 16>}, {pipeline_mode = #tpu.pipeline_mode<synchronous>, transform_indices = @transform_6, window_bounds = array<i64: 32, 9>}, {pipeline_mode = #tpu.pipeline_mode<synchronous>, transform_indices = @transform_7, window_bounds = array<i64: 1, 9>}, {pipeline_mode = #tpu.pipeline_mode<synchronous>, transform_indices = @transform_8, window_bounds = array<i64: 32, 128>}, {pipeline_mode = #tpu.pipeline_mode<synchronous>, transform_indices = @transform_9, window_bounds = array<i64: 1, 128>}, {pipeline_mode = #tpu.pipeline_mode<synchronous>, transform_indices = @transform_10, window_bounds = array<i64: 17, 16>}, {pipeline_mode = #tpu.pipeline_mode<synchronous>, transform_indices = @transform_11, window_bounds = array<i64: 9, 512>}, {transform_indices = @transform_12, window_bounds = array<i64: 1, 8, 8>}, {transform_indices = @transform_13, window_bounds = array<i64: 1, 8, 8, 4>}]} {
    %c0_i32 = arith.constant 0 : i32
    %0 = arith.cmpi eq, %arg1, %c0_i32 : i32
    %1 = arith.extui %0 : i1 to i32
    %c0_i32_0 = arith.constant 0 : i32
    %2 = arith.cmpi ne, %1, %c0_i32_0 : i32
    scf.if %2 {
      %c0_42 = arith.constant 0 : index
      %c0_43 = arith.constant 0 : index
      %c0_44 = arith.constant 0 : index
      %63 = vector.load %arg3[%c0_42, %c0_43, %c0_44] : memref<1x8x32xf32, #tpu.memory_space<vmem>>, vector<1x8x32xf32>
      %64 = vector.shape_cast %63 : vector<1x8x32xf32> to vector<8x32xf32>
      %c0_45 = arith.constant 0 : index
      %c0_46 = arith.constant 0 : index
      %65 = vector.load %arg6[%c0_45, %c0_46] : memref<32x16xf32, #tpu.memory_space<vmem>>, vector<32x16xf32>
      %cst_47 = arith.constant dense<0.000000e+00> : vector<8x16xf32>
      %66 = tpu.matmul %64, %65, %cst_47 {dimension_numbers = #tpu.dot_dimension_numbers<[1], [0], [0], [1], [0, 0, 1, 1], [], []>} : vector<8x32xf32>, vector<32x16xf32>, vector<8x16xf32> -> vector<8x16xf32>
      %c0_48 = arith.constant 0 : index
      %c0_49 = arith.constant 0 : index
      %67 = vector.load %arg7[%c0_48, %c0_49] : memref<1x16xf32, #tpu.memory_space<vmem>>, vector<1x16xf32>
      %68 = vector.broadcast %67 : vector<1x16xf32> to vector<8x16xf32>
      %69 = arith.addf %66, %68 : vector<8x16xf32>
      %cst_50 = arith.constant 0.000000e+00 : f32
      %70 = vector.broadcast %cst_50 : f32 to vector<8x16xf32>
      %71 = arith.cmpf ogt, %69, %70 : vector<8x16xf32>
      %cst_51 = arith.constant 1.000000e-01 : f32
      %72 = vector.broadcast %cst_51 : f32 to vector<8x16xf32>
      %73 = arith.mulf %72, %69 : vector<8x16xf32>
      %74 = arith.select %71, %69, %73 : vector<8x16xi1>, vector<8x16xf32>
      %c0_52 = arith.constant 0 : index
      %c0_53 = arith.constant 0 : index
      %75 = vector.load %arg10[%c0_52, %c0_53] : memref<32x128xf32, #tpu.memory_space<vmem>>, vector<32x128xf32>
      %cst_54 = arith.constant dense<0.000000e+00> : vector<8x128xf32>
      %76 = tpu.matmul %64, %75, %cst_54 {dimension_numbers = #tpu.dot_dimension_numbers<[1], [0], [0], [1], [0, 0, 1, 1], [], []>} : vector<8x32xf32>, vector<32x128xf32>, vector<8x128xf32> -> vector<8x128xf32>
      %c0_55 = arith.constant 0 : index
      %c0_56 = arith.constant 0 : index
      %77 = vector.load %arg11[%c0_55, %c0_56] : memref<1x128xf32, #tpu.memory_space<vmem>>, vector<1x128xf32>
      %78 = vector.broadcast %77 : vector<1x128xf32> to vector<8x128xf32>
      %79 = arith.addf %76, %78 : vector<8x128xf32>
      %cst_57 = arith.constant 0.000000e+00 : f32
      %80 = vector.broadcast %cst_57 : f32 to vector<8x128xf32>
      %81 = arith.cmpf ogt, %79, %80 : vector<8x128xf32>
      %cst_58 = arith.constant 1.000000e-01 : f32
      %82 = vector.broadcast %cst_58 : f32 to vector<8x128xf32>
      %83 = arith.mulf %82, %79 : vector<8x128xf32>
      %84 = arith.select %81, %79, %83 : vector<8x128xi1>, vector<8x128xf32>
      %85 = tpu.transpose %74, [1, 0] : vector<8x16xf32> -> vector<16x8xf32>
      %c0_59 = arith.constant 0 : index
      %c0_60 = arith.constant 0 : index
      %86 = vector.load %arg16[%c0_59, %c0_60] : memref<16x8xf32, #tpu.memory_space<vmem>>, vector<16x8xf32>
      tpu.vector_store %arg16[%c0_59, %c0_60], %85 {strides = array<i32>} : memref<16x8xf32, #tpu.memory_space<vmem>>, vector<16x8xf32>,
      %87 = tpu.transpose %84, [1, 0] : vector<8x128xf32> -> vector<128x8xf32>
      %c0_61 = arith.constant 0 : index
      %c0_62 = arith.constant 0 : index
      %88 = vector.load %arg17[%c0_61, %c0_62] : memref<128x8xf32, #tpu.memory_space<vmem>>, vector<128x8xf32>
      tpu.vector_store %arg17[%c0_61, %c0_62], %87 {strides = array<i32>} : memref<128x8xf32, #tpu.memory_space<vmem>>, vector<128x8xf32>,
    } else {
    }
    %c8_i32 = arith.constant 8 : i32
    %3 = arith.muli %arg1, %c8_i32 : i32
    %4 = tpu.assume_multiple %3, 8 : i32
    %c0 = arith.constant 0 : index
    %5 = arith.index_cast %4 : i32 to index
    %c0_1 = arith.constant 0 : index
    %6 = vector.load %arg3[%c0, %5, %c0_1] : memref<1x8x32xf32, #tpu.memory_space<vmem>>, vector<1x8x32xf32>
    %7 = vector.shape_cast %6 : vector<1x8x32xf32> to vector<8x32xf32>
    %c0_2 = arith.constant 0 : index
    %c0_3 = arith.constant 0 : index
    %8 = vector.load %arg4[%c0_2, %c0_3] : memref<32x17xf32, #tpu.memory_space<vmem>>, vector<32x17xf32>
    %cst = arith.constant dense<0.000000e+00> : vector<8x17xf32>
    %9 = tpu.matmul %7, %8, %cst {dimension_numbers = #tpu.dot_dimension_numbers<[1], [0], [0], [1], [0, 0, 1, 1], [], []>} : vector<8x32xf32>, vector<32x17xf32>, vector<8x17xf32> -> vector<8x17xf32>
    %c0_4 = arith.constant 0 : index
    %c0_5 = arith.constant 0 : index
    %10 = vector.load %arg5[%c0_4, %c0_5] : memref<1x17xf32, #tpu.memory_space<vmem>>, vector<1x17xf32>
    %11 = vector.broadcast %10 : vector<1x17xf32> to vector<8x17xf32>
    %12 = arith.addf %9, %11 : vector<8x17xf32>
    %cst_6 = arith.constant 0.000000e+00 : f32
    %13 = vector.broadcast %cst_6 : f32 to vector<8x17xf32>
    %14 = arith.cmpf ogt, %12, %13 : vector<8x17xf32>
    %cst_7 = arith.constant 1.000000e-01 : f32
    %15 = vector.broadcast %cst_7 : f32 to vector<8x17xf32>
    %16 = arith.mulf %15, %12 : vector<8x17xf32>
    %17 = arith.select %14, %12, %16 : vector<8x17xi1>, vector<8x17xf32>
    %c0_8 = arith.constant 0 : index
    %c0_9 = arith.constant 0 : index
    %18 = vector.load %arg8[%c0_8, %c0_9] : memref<32x9xf32, #tpu.memory_space<vmem>>, vector<32x9xf32>
    %cst_10 = arith.constant dense<0.000000e+00> : vector<8x9xf32>
    %19 = tpu.matmul %7, %18, %cst_10 {dimension_numbers = #tpu.dot_dimension_numbers<[1], [0], [0], [1], [0, 0, 1, 1], [], []>} : vector<8x32xf32>, vector<32x9xf32>, vector<8x9xf32> -> vector<8x9xf32>
    %c0_11 = arith.constant 0 : index
    %c0_12 = arith.constant 0 : index
    %20 = vector.load %arg9[%c0_11, %c0_12] : memref<1x9xf32, #tpu.memory_space<vmem>>, vector<1x9xf32>
    %21 = vector.broadcast %20 : vector<1x9xf32> to vector<8x9xf32>
    %22 = arith.addf %19, %21 : vector<8x9xf32>
    %cst_13 = arith.constant 0.000000e+00 : f32
    %23 = vector.broadcast %cst_13 : f32 to vector<8x9xf32>
    %24 = arith.cmpf ogt, %22, %23 : vector<8x9xf32>
    %cst_14 = arith.constant 1.000000e-01 : f32
    %25 = vector.broadcast %cst_14 : f32 to vector<8x9xf32>
    %26 = arith.mulf %25, %22 : vector<8x9xf32>
    %27 = arith.select %24, %22, %26 : vector<8x9xi1>, vector<8x9xf32>
    %c0_15 = arith.constant 0 : index
    %c0_16 = arith.constant 0 : index
    %28 = vector.load %arg12[%c0_15, %c0_16] : memref<17x16xf32, #tpu.memory_space<vmem>>, vector<17x16xf32>
    %cst_17 = arith.constant dense<0.000000e+00> : vector<8x16xf32>
    %29 = tpu.matmul %17, %28, %cst_17 {dimension_numbers = #tpu.dot_dimension_numbers<[1], [0], [0], [1], [0, 0, 1, 1], [], []>} : vector<8x17xf32>, vector<17x16xf32>, vector<8x16xf32> -> vector<8x16xf32>
    %c0_18 = arith.constant 0 : index
    %c0_19 = arith.constant 0 : index
    %30 = vector.load %arg16[%c0_18, %c0_19] : memref<16x8xf32, #tpu.memory_space<vmem>>, vector<16x8xf32>
    %cst_20 = arith.constant dense<0.000000e+00> : vector<8x8xf32>
    %31 = tpu.matmul %29, %30, %cst_20 {dimension_numbers = #tpu.dot_dimension_numbers<[1], [0], [0], [1], [0, 0, 1, 1], [], []>} : vector<8x16xf32>, vector<16x8xf32>, vector<8x8xf32> -> vector<8x8xf32>
    %c0_21 = arith.constant 0 : index
    %c0_22 = arith.constant 0 : index
    %c0_23 = arith.constant 0 : index
    %32 = vector.load %arg2[%c0_21, %c0_22, %c0_23] : memref<1x1x8xi32, #tpu.memory_space<vmem>>, vector<1x1x8xi32>
    %33 = vector.shape_cast %32 : vector<1x1x8xi32> to vector<1x8xi32>
    %c0_i32_24 = arith.constant 0 : i32
    %34 = vector.broadcast %c0_i32_24 : i32 to vector<1x8xi32>
    %35 = arith.cmpi ne, %33, %34 : vector<1x8xi32>
    %cst_25 = arith.constant 0xFF800000 : f32
    %36 = vector.shape_cast %35 : vector<1x8xi1> to vector<1x8xi1>
    %37 = vector.broadcast %36 : vector<1x8xi1> to vector<8x8xi1>
    %38 = vector.broadcast %cst_25 : f32 to vector<8x8xf32>
    %39 = arith.select %37, %31, %38 : vector<8x8xi1>, vector<8x8xf32>
    %c0_26 = arith.constant 0 : index
    %c0_27 = arith.constant 0 : index
    %c0_28 = arith.constant 0 : index
    %40 = vector.load %arg14[%c0_26, %c0_27, %c0_28] : memref<1x8x8xf32, #tpu.memory_space<vmem>>, vector<1x8x8xf32>
    %41 = vector.shape_cast %40 : vector<1x8x8xf32> to vector<8x8xf32>
    %42 = vector.shape_cast %39 : vector<8x8xf32> to vector<1x8x8xf32>
    tpu.vector_store %arg14[%c0_26, %c0_27, %c0_28], %42 {strides = array<i32>} : memref<1x8x8xf32, #tpu.memory_space<vmem>>, vector<1x8x8xf32>,
    %c0_29 = arith.constant 0 : index
    %c0_30 = arith.constant 0 : index
    %43 = vector.load %arg17[%c0_29, %c0_30] : memref<128x8xf32, #tpu.memory_space<vmem>>, vector<128x8xf32>
    %c0_31 = arith.constant 0 : index
    %c0_32 = arith.constant 0 : index
    %44 = vector.load %arg13[%c0_31, %c0_32] : memref<9x512xf32, #tpu.memory_space<vmem>>, vector<9x512xf32>
    %cst_33 = arith.constant dense<0.000000e+00> : vector<8x512xf32>
    %45 = tpu.matmul %27, %44, %cst_33 {dimension_numbers = #tpu.dot_dimension_numbers<[1], [0], [0], [1], [0, 0, 1, 1], [], []>} : vector<8x9xf32>, vector<9x512xf32>, vector<8x512xf32> -> vector<8x512xf32>
    %46 = vector.extract_strided_slice %45 {offsets = [0, 0], sizes = [8, 128], strides = [1, 1]} : vector<8x512xf32> to vector<8x128xf32>
    %cst_34 = arith.constant dense<0.000000e+00> : vector<8x8xf32>
    %47 = tpu.matmul %46, %43, %cst_34 {dimension_numbers = #tpu.dot_dimension_numbers<[1], [0], [0], [1], [0, 0, 1, 1], [], []>} : vector<8x128xf32>, vector<128x8xf32>, vector<8x8xf32> -> vector<8x8xf32>
    %48 = vector.extract_strided_slice %45 {offsets = [0, 128], sizes = [8, 128], strides = [1, 1]} : vector<8x512xf32> to vector<8x128xf32>
    %cst_35 = arith.constant dense<0.000000e+00> : vector<8x8xf32>
    %49 = tpu.matmul %48, %43, %cst_35 {dimension_numbers = #tpu.dot_dimension_numbers<[1], [0], [0], [1], [0, 0, 1, 1], [], []>} : vector<8x128xf32>, vector<128x8xf32>, vector<8x8xf32> -> vector<8x8xf32>
    %50 = vector.extract_strided_slice %45 {offsets = [0, 256], sizes = [8, 128], strides = [1, 1]} : vector<8x512xf32> to vector<8x128xf32>
    %cst_36 = arith.constant dense<0.000000e+00> : vector<8x8xf32>
    %51 = tpu.matmul %50, %43, %cst_36 {dimension_numbers = #tpu.dot_dimension_numbers<[1], [0], [0], [1], [0, 0, 1, 1], [], []>} : vector<8x128xf32>, vector<128x8xf32>, vector<8x8xf32> -> vector<8x8xf32>
    %52 = vector.extract_strided_slice %45 {offsets = [0, 384], sizes = [8, 128], strides = [1, 1]} : vector<8x512xf32> to vector<8x128xf32>
    %cst_37 = arith.constant dense<0.000000e+00> : vector<8x8xf32>
    %53 = tpu.matmul %52, %43, %cst_37 {dimension_numbers = #tpu.dot_dimension_numbers<[1], [0], [0], [1], [0, 0, 1, 1], [], []>} : vector<8x128xf32>, vector<128x8xf32>, vector<8x8xf32> -> vector<8x8xf32>
    %54 = vector.shape_cast %47 : vector<8x8xf32> to vector<8x1x8xf32>
    %55 = vector.shape_cast %49 : vector<8x8xf32> to vector<8x1x8xf32>
    %56 = vector.shape_cast %51 : vector<8x8xf32> to vector<8x1x8xf32>
    %57 = vector.shape_cast %53 : vector<8x8xf32> to vector<8x1x8xf32>
    %58 = tpu.concatenate %54, %55, %56, %57 in 1 : vector<8x1x8xf32>, vector<8x1x8xf32>, vector<8x1x8xf32>, vector<8x1x8xf32> -> vector<8x4x8xf32>
    %59 = tpu.transpose %58, [0, 2, 1] : vector<8x4x8xf32> -> vector<8x8x4xf32>
    %c0_38 = arith.constant 0 : index
    %c0_39 = arith.constant 0 : index
    %c0_40 = arith.constant 0 : index
    %c0_41 = arith.constant 0 : index
    %60 = vector.load %arg15[%c0_38, %c0_39, %c0_40, %c0_41] : memref<1x8x8x4xf32, #tpu.memory_space<vmem>>, vector<1x8x8x4xf32>
    %61 = vector.shape_cast %60 : vector<1x8x8x4xf32> to vector<8x8x4xf32>
    %62 = vector.shape_cast %59 : vector<8x8x4xf32> to vector<1x8x8x4xf32>
    tpu.vector_store %arg15[%c0_38, %c0_39, %c0_40, %c0_41], %62 {strides = array<i32>} : memref<1x8x8x4xf32, #tpu.memory_space<vmem>>, vector<1x8x8x4xf32>,
    return
  }
  func.func @transform_0(%arg0: i32, %arg1: i32) -> (i32, i32, i32) {
    %c0_i32 = arith.constant 0 : i32
    %c0_i32_0 = arith.constant 0 : i32
    %c0_i32_1 = arith.constant 0 : i32
    return %arg0, %c0_i32, %c0_i32_0 : i32, i32, i32
  }
  func.func @transform_1(%arg0: i32, %arg1: i32) -> (i32, i32, i32) {
    %c0_i32 = arith.constant 0 : i32
    %c0_i32_0 = arith.constant 0 : i32
    %c0_i32_1 = arith.constant 0 : i32
    return %arg0, %c0_i32, %c0_i32_0 : i32, i32, i32
  }
  func.func @transform_2(%arg0: i32, %arg1: i32) -> (i32, i32) {
    %c0_i32 = arith.constant 0 : i32
    %c0_i32_0 = arith.constant 0 : i32
    %c0_i32_1 = arith.constant 0 : i32
    return %c0_i32, %c0_i32_0 : i32, i32
  }
  func.func @transform_3(%arg0: i32, %arg1: i32) -> (i32, i32) {
    %c0_i32 = arith.constant 0 : i32
    %c0_i32_0 = arith.constant 0 : i32
    %c0_i32_1 = arith.constant 0 : i32
    return %c0_i32, %c0_i32_0 : i32, i32
  }
  func.func @transform_4(%arg0: i32, %arg1: i32) -> (i32, i32) {
    %c0_i32 = arith.constant 0 : i32
    %c0_i32_0 = arith.constant 0 : i32
    %c0_i32_1 = arith.constant 0 : i32
    return %c0_i32, %c0_i32_0 : i32, i32
  }
  func.func @transform_5(%arg0: i32, %arg1: i32) -> (i32, i32) {
    %c0_i32 = arith.constant 0 : i32
    %c0_i32_0 = arith.constant 0 : i32
    %c0_i32_1 = arith.constant 0 : i32
    return %c0_i32, %c0_i32_0 : i32, i32
  }
  func.func @transform_6(%arg0: i32, %arg1: i32) -> (i32, i32) {
    %c0_i32 = arith.constant 0 : i32
    %c0_i32_0 = arith.constant 0 : i32
    %c0_i32_1 = arith.constant 0 : i32
    return %c0_i32, %c0_i32_0 : i32, i32
  }
  func.func @transform_7(%arg0: i32, %arg1: i32) -> (i32, i32) {
    %c0_i32 = arith.constant 0 : i32
    %c0_i32_0 = arith.constant 0 : i32
    %c0_i32_1 = arith.constant 0 : i32
    return %c0_i32, %c0_i32_0 : i32, i32
  }
  func.func @transform_8(%arg0: i32, %arg1: i32) -> (i32, i32) {
    %c0_i32 = arith.constant 0 : i32
    %c0_i32_0 = arith.constant 0 : i32
    %c0_i32_1 = arith.constant 0 : i32
    return %c0_i32, %c0_i32_0 : i32, i32
  }
  func.func @transform_9(%arg0: i32, %arg1: i32) -> (i32, i32) {
    %c0_i32 = arith.constant 0 : i32
    %c0_i32_0 = arith.constant 0 : i32
    %c0_i32_1 = arith.constant 0 : i32
    return %c0_i32, %c0_i32_0 : i32, i32
  }
  func.func @transform_10(%arg0: i32, %arg1: i32) -> (i32, i32) {
    %c0_i32 = arith.constant 0 : i32
    %c0_i32_0 = arith.constant 0 : i32
    %c0_i32_1 = arith.constant 0 : i32
    return %c0_i32, %c0_i32_0 : i32, i32
  }
  func.func @transform_11(%arg0: i32, %arg1: i32) -> (i32, i32) {
    %c0_i32 = arith.constant 0 : i32
    %c0_i32_0 = arith.constant 0 : i32
    %c0_i32_1 = arith.constant 0 : i32
    return %c0_i32, %c0_i32_0 : i32, i32
  }
  func.func @transform_12(%arg0: i32, %arg1: i32) -> (i32, i32, i32) {
    %c0_i32 = arith.constant 0 : i32
    %c0_i32_0 = arith.constant 0 : i32
    return %arg0, %arg1, %c0_i32 : i32, i32, i32
  }
  func.func @transform_13(%arg0: i32, %arg1: i32) -> (i32, i32, i32, i32) {
    %c0_i32 = arith.constant 0 : i32
    %c0_i32_0 = arith.constant 0 : i32
    %c0_i32_1 = arith.constant 0 : i32
    return %arg0, %arg1, %c0_i32, %c0_i32_0 : i32, i32, i32, i32
  }
}

module attributes {stable_mosaic.version = 11 : i64} {
  func.func @_biaffine_kernel(%arg0: i32, %arg1: i32, %arg2: memref<1x1x8xi32, #tpu.memory_space<vmem>>, %arg3: memref<1x8x32xf32, #tpu.memory_space<vmem>>, %arg4: memref<32x17xf32, #tpu.memory_space<vmem>>, %arg5: memref<1x17xf32, #tpu.memory_space<vmem>>, %arg6: memref<32x16xf32, #tpu.memory_space<vmem>>, %arg7: memref<1x16xf32, #tpu.memory_space<vmem>>, %arg8: memref<32x9xf32, #tpu.memory_space<vmem>>, %arg9: memref<1x9xf32, #tpu.memory_space<vmem>>, %arg10: memref<32x128xf32, #tpu.memory_space<vmem>>, %arg11: memref<1x128xf32, #tpu.memory_space<vmem>>, %arg12: memref<17x16xf32, #tpu.memory_space<vmem>>, %arg13: memref<9x512xf32, #tpu.memory_space<vmem>>, %arg14: memref<1x8x8xf32, #tpu.memory_space<vmem>>, %arg15: memref<1x4x8x8xf32, #tpu.memory_space<vmem>>, %arg16: memref<8x16xf32, #tpu.memory_space<vmem>>, %arg17: memref<8x128xf32, #tpu.memory_space<vmem>>) attributes {dimension_semantics = [#tpu.dimension_semantics<parallel>, #tpu.dimension_semantics<arbitrary>], iteration_bounds = array<i64: 2, 1>, scalar_prefetch = 0 : i64, scratch_operands = 2 : i64, tpu.core_type = #tpu.core_type<tc>, window_params = [{transform_indices = @transform_0, window_bounds = array<i64: 1, 1, 8>}, {transform_indices = @transform_1, window_bounds = array<i64: 1, 8, 32>}, {pipeline_mode = #tpu.pipeline_mode<synchronous>, transform_indices = @transform_2, window_bounds = array<i64: 32, 17>}, {pipeline_mode = #tpu.pipeline_mode<synchronous>, transform_indices = @transform_3, window_bounds = array<i64: 1, 17>}, {pipeline_mode = #tpu.pipeline_mode<synchronous>, transform_indices = @transform_4, window_bounds = array<i64: 32, 16>}, {pipeline_mode = #tpu.pipeline_mode<synchronous>, transform_indices = @transform_5, window_bounds = array<i64: 1, 16>}, {pipeline_mode = #tpu.pipeline_mode<synchronous>, transform_indices = @transform_6, window_bounds = array<i64: 32, 9>}, {pipeline_mode = #tpu.pipeline_mode<synchronous>, transform_indices = @transform_7, window_bounds = array<i64: 1, 9>}, {pipeline_mode = #tpu.pipeline_mode<synchronous>, transform_indices = @transform_8, window_bounds = array<i64: 32, 128>}, {pipeline_mode = #tpu.pipeline_mode<synchronous>, transform_indices = @transform_9, window_bounds = array<i64: 1, 128>}, {pipeline_mode = #tpu.pipeline_mode<synchronous>, transform_indices = @transform_10, window_bounds = array<i64: 17, 16>}, {pipeline_mode = #tpu.pipeline_mode<synchronous>, transform_indices = @transform_11, window_bounds = array<i64: 9, 512>}, {transform_indices = @transform_12, window_bounds = array<i64: 1, 8, 8>}, {transform_indices = @transform_13, window_bounds = array<i64: 1, 4, 8, 8>}]} {
    %c0_i32 = arith.constant 0 : i32
    %0 = arith.cmpi eq, %arg1, %c0_i32 : i32
    %1 = arith.extui %0 : i1 to i32
    %c0_i32_0 = arith.constant 0 : i32
    %2 = arith.cmpi ne, %1, %c0_i32_0 : i32
    scf.if %2 {
      %c0_57 = arith.constant 0 : index
      %c0_58 = arith.constant 0 : index
      %c0_59 = arith.constant 0 : index
      %68 = vector.load %arg3[%c0_57, %c0_58, %c0_59] : memref<1x8x32xf32, #tpu.memory_space<vmem>>, vector<1x8x32xf32>
      %69 = vector.shape_cast %68 : vector<1x8x32xf32> to vector<8x32xf32>
      %c0_60 = arith.constant 0 : index
      %c0_61 = arith.constant 0 : index
      %70 = vector.load %arg6[%c0_60, %c0_61] : memref<32x16xf32, #tpu.memory_space<vmem>>, vector<32x16xf32>
      %cst_62 = arith.constant dense<0.000000e+00> : vector<8x16xf32>
      %71 = tpu.matmul %69, %70, %cst_62 {dimension_numbers = #tpu.dot_dimension_numbers<[1], [0], [0], [1], [0, 0, 1, 1], [], []>} : vector<8x32xf32>, vector<32x16xf32>, vector<8x16xf32> -> vector<8x16xf32>
      %c0_63 = arith.constant 0 : index
      %c0_64 = arith.constant 0 : index
      %72 = vector.load %arg7[%c0_63, %c0_64] : memref<1x16xf32, #tpu.memory_space<vmem>>, vector<1x16xf32>
      %73 = vector.broadcast %72 : vector<1x16xf32> to vector<8x16xf32>
      %74 = arith.addf %71, %73 : vector<8x16xf32>
      %cst_65 = arith.constant 0.000000e+00 : f32
      %75 = vector.broadcast %cst_65 : f32 to vector<8x16xf32>
      %76 = arith.cmpf ogt, %74, %75 : vector<8x16xf32>
      %cst_66 = arith.constant 1.000000e-01 : f32
      %77 = vector.broadcast %cst_66 : f32 to vector<8x16xf32>
      %78 = arith.mulf %77, %74 : vector<8x16xf32>
      %79 = arith.select %76, %74, %78 : vector<8x16xi1>, vector<8x16xf32>
      %c0_67 = arith.constant 0 : index
      %c0_68 = arith.constant 0 : index
      %80 = vector.load %arg10[%c0_67, %c0_68] : memref<32x128xf32, #tpu.memory_space<vmem>>, vector<32x128xf32>
      %cst_69 = arith.constant dense<0.000000e+00> : vector<8x128xf32>
      %81 = tpu.matmul %69, %80, %cst_69 {dimension_numbers = #tpu.dot_dimension_numbers<[1], [0], [0], [1], [0, 0, 1, 1], [], []>} : vector<8x32xf32>, vector<32x128xf32>, vector<8x128xf32> -> vector<8x128xf32>
      %c0_70 = arith.constant 0 : index
      %c0_71 = arith.constant 0 : index
      %82 = vector.load %arg11[%c0_70, %c0_71] : memref<1x128xf32, #tpu.memory_space<vmem>>, vector<1x128xf32>
      %83 = vector.broadcast %82 : vector<1x128xf32> to vector<8x128xf32>
      %84 = arith.addf %81, %83 : vector<8x128xf32>
      %cst_72 = arith.constant 0.000000e+00 : f32
      %85 = vector.broadcast %cst_72 : f32 to vector<8x128xf32>
      %86 = arith.cmpf ogt, %84, %85 : vector<8x128xf32>
      %cst_73 = arith.constant 1.000000e-01 : f32
      %87 = vector.broadcast %cst_73 : f32 to vector<8x128xf32>
      %88 = arith.mulf %87, %84 : vector<8x128xf32>
      %89 = arith.select %86, %84, %88 : vector<8x128xi1>, vector<8x128xf32>
      %c0_74 = arith.constant 0 : index
      %c0_75 = arith.constant 0 : index
      %90 = vector.load %arg16[%c0_74, %c0_75] : memref<8x16xf32, #tpu.memory_space<vmem>>, vector<8x16xf32>
      tpu.vector_store %arg16[%c0_74, %c0_75], %79 {strides = array<i32>} : memref<8x16xf32, #tpu.memory_space<vmem>>, vector<8x16xf32>,
      %c0_76 = arith.constant 0 : index
      %c0_77 = arith.constant 0 : index
      %91 = vector.load %arg17[%c0_76, %c0_77] : memref<8x128xf32, #tpu.memory_space<vmem>>, vector<8x128xf32>
      tpu.vector_store %arg17[%c0_76, %c0_77], %89 {strides = array<i32>} : memref<8x128xf32, #tpu.memory_space<vmem>>, vector<8x128xf32>,
    } else {
    }
    %c8_i32 = arith.constant 8 : i32
    %3 = arith.muli %arg1, %c8_i32 : i32
    %4 = tpu.assume_multiple %3, 8 : i32
    %c0 = arith.constant 0 : index
    %5 = arith.index_cast %4 : i32 to index
    %c0_1 = arith.constant 0 : index
    %6 = vector.load %arg3[%c0, %5, %c0_1] : memref<1x8x32xf32, #tpu.memory_space<vmem>>, vector<1x8x32xf32>
    %7 = vector.shape_cast %6 : vector<1x8x32xf32> to vector<8x32xf32>
    %c0_2 = arith.constant 0 : index
    %c0_3 = arith.constant 0 : index
    %8 = vector.load %arg4[%c0_2, %c0_3] : memref<32x17xf32, #tpu.memory_space<vmem>>, vector<32x17xf32>
    %cst = arith.constant dense<0.000000e+00> : vector<8x17xf32>
    %9 = tpu.matmul %7, %8, %cst {dimension_numbers = #tpu.dot_dimension_numbers<[1], [0], [0], [1], [0, 0, 1, 1], [], []>} : vector<8x32xf32>, vector<32x17xf32>, vector<8x17xf32> -> vector<8x17xf32>
    %c0_4 = arith.constant 0 : index
    %c0_5 = arith.constant 0 : index
    %10 = vector.load %arg5[%c0_4, %c0_5] : memref<1x17xf32, #tpu.memory_space<vmem>>, vector<1x17xf32>
    %11 = vector.broadcast %10 : vector<1x17xf32> to vector<8x17xf32>
    %12 = arith.addf %9, %11 : vector<8x17xf32>
    %cst_6 = arith.constant 0.000000e+00 : f32
    %13 = vector.broadcast %cst_6 : f32 to vector<8x17xf32>
    %14 = arith.cmpf ogt, %12, %13 : vector<8x17xf32>
    %cst_7 = arith.constant 1.000000e-01 : f32
    %15 = vector.broadcast %cst_7 : f32 to vector<8x17xf32>
    %16 = arith.mulf %15, %12 : vector<8x17xf32>
    %17 = arith.select %14, %12, %16 : vector<8x17xi1>, vector<8x17xf32>
    %c0_8 = arith.constant 0 : index
    %c0_9 = arith.constant 0 : index
    %18 = vector.load %arg8[%c0_8, %c0_9] : memref<32x9xf32, #tpu.memory_space<vmem>>, vector<32x9xf32>
    %cst_10 = arith.constant dense<0.000000e+00> : vector<8x9xf32>
    %19 = tpu.matmul %7, %18, %cst_10 {dimension_numbers = #tpu.dot_dimension_numbers<[1], [0], [0], [1], [0, 0, 1, 1], [], []>} : vector<8x32xf32>, vector<32x9xf32>, vector<8x9xf32> -> vector<8x9xf32>
    %c0_11 = arith.constant 0 : index
    %c0_12 = arith.constant 0 : index
    %20 = vector.load %arg9[%c0_11, %c0_12] : memref<1x9xf32, #tpu.memory_space<vmem>>, vector<1x9xf32>
    %21 = vector.broadcast %20 : vector<1x9xf32> to vector<8x9xf32>
    %22 = arith.addf %19, %21 : vector<8x9xf32>
    %cst_13 = arith.constant 0.000000e+00 : f32
    %23 = vector.broadcast %cst_13 : f32 to vector<8x9xf32>
    %24 = arith.cmpf ogt, %22, %23 : vector<8x9xf32>
    %cst_14 = arith.constant 1.000000e-01 : f32
    %25 = vector.broadcast %cst_14 : f32 to vector<8x9xf32>
    %26 = arith.mulf %25, %22 : vector<8x9xf32>
    %27 = arith.select %24, %22, %26 : vector<8x9xi1>, vector<8x9xf32>
    %c0_15 = arith.constant 0 : index
    %c0_16 = arith.constant 0 : index
    %28 = vector.load %arg12[%c0_15, %c0_16] : memref<17x16xf32, #tpu.memory_space<vmem>>, vector<17x16xf32>
    %cst_17 = arith.constant dense<0.000000e+00> : vector<8x16xf32>
    %29 = tpu.matmul %17, %28, %cst_17 {dimension_numbers = #tpu.dot_dimension_numbers<[1], [0], [0], [1], [0, 0, 1, 1], [], []>} : vector<8x17xf32>, vector<17x16xf32>, vector<8x16xf32> -> vector<8x16xf32>
    %c0_18 = arith.constant 0 : index
    %c0_19 = arith.constant 0 : index
    %30 = vector.load %arg16[%c0_18, %c0_19] : memref<8x16xf32, #tpu.memory_space<vmem>>, vector<8x16xf32>
    %cst_20 = arith.constant dense<0.000000e+00> : vector<8x8xf32>
    %31 = tpu.matmul %29, %30, %cst_20 {dimension_numbers = #tpu.dot_dimension_numbers<[1], [1], [0], [0], [0, 0, 1, 0], [], []>} : vector<8x16xf32>, vector<8x16xf32>, vector<8x8xf32> -> vector<8x8xf32>
    %c0_21 = arith.constant 0 : index
    %c0_22 = arith.constant 0 : index
    %c0_23 = arith.constant 0 : index
    %32 = vector.load %arg2[%c0_21, %c0_22, %c0_23] : memref<1x1x8xi32, #tpu.memory_space<vmem>>, vector<1x1x8xi32>
    %33 = vector.shape_cast %32 : vector<1x1x8xi32> to vector<1x8xi32>
    %c0_i32_24 = arith.constant 0 : i32
    %34 = vector.broadcast %c0_i32_24 : i32 to vector<1x8xi32>
    %35 = arith.cmpi ne, %33, %34 : vector<1x8xi32>
    %cst_25 = arith.constant 0xFF800000 : f32
    %36 = vector.shape_cast %35 : vector<1x8xi1> to vector<1x8xi1>
    %37 = vector.broadcast %36 : vector<1x8xi1> to vector<8x8xi1>
    %38 = vector.broadcast %cst_25 : f32 to vector<8x8xf32>
    %39 = arith.select %37, %31, %38 : vector<8x8xi1>, vector<8x8xf32>
    %c0_26 = arith.constant 0 : index
    %c0_27 = arith.constant 0 : index
    %c0_28 = arith.constant 0 : index
    %40 = vector.load %arg14[%c0_26, %c0_27, %c0_28] : memref<1x8x8xf32, #tpu.memory_space<vmem>>, vector<1x8x8xf32>
    %41 = vector.shape_cast %40 : vector<1x8x8xf32> to vector<8x8xf32>
    %42 = vector.shape_cast %39 : vector<8x8xf32> to vector<1x8x8xf32>
    tpu.vector_store %arg14[%c0_26, %c0_27, %c0_28], %42 {strides = array<i32>} : memref<1x8x8xf32, #tpu.memory_space<vmem>>, vector<1x8x8xf32>,
    %c0_29 = arith.constant 0 : index
    %c0_30 = arith.constant 0 : index
    %43 = vector.load %arg17[%c0_29, %c0_30] : memref<8x128xf32, #tpu.memory_space<vmem>>, vector<8x128xf32>
    %c0_31 = arith.constant 0 : index
    %c0_32 = arith.constant 0 : index
    %44 = vector.load %arg13[%c0_31, %c0_32] : memref<9x512xf32, #tpu.memory_space<vmem>>, vector<9x128xf32>
    %cst_33 = arith.constant dense<0.000000e+00> : vector<8x128xf32>
    %45 = tpu.matmul %27, %44, %cst_33 {dimension_numbers = #tpu.dot_dimension_numbers<[1], [0], [0], [1], [0, 0, 1, 1], [], []>} : vector<8x9xf32>, vector<9x128xf32>, vector<8x128xf32> -> vector<8x128xf32>
    %cst_34 = arith.constant dense<0.000000e+00> : vector<8x8xf32>
    %46 = tpu.matmul %45, %43, %cst_34 {dimension_numbers = #tpu.dot_dimension_numbers<[1], [1], [0], [0], [0, 0, 1, 0], [], []>} : vector<8x128xf32>, vector<8x128xf32>, vector<8x8xf32> -> vector<8x8xf32>
    %c0_35 = arith.constant 0 : index
    %c0_36 = arith.constant 0 : index
    %c0_37 = arith.constant 0 : index
    %c0_38 = arith.constant 0 : index
    %47 = vector.load %arg15[%c0_35, %c0_36, %c0_37, %c0_38] : memref<1x4x8x8xf32, #tpu.memory_space<vmem>>, vector<1x1x8x8xf32>
    %48 = vector.shape_cast %47 : vector<1x1x8x8xf32> to vector<8x8xf32>
    %49 = vector.shape_cast %46 : vector<8x8xf32> to vector<1x1x8x8xf32>
    tpu.vector_store %arg15[%c0_35, %c0_36, %c0_37, %c0_38], %49 {strides = array<i32>} : memref<1x4x8x8xf32, #tpu.memory_space<vmem>>, vector<1x1x8x8xf32>,
    %c0_39 = arith.constant 0 : index
    %c128 = arith.constant 128 : index
    %50 = vector.load %arg13[%c0_39, %c128] : memref<9x512xf32, #tpu.memory_space<vmem>>, vector<9x128xf32>
    %cst_40 = arith.constant dense<0.000000e+00> : vector<8x128xf32>
    %51 = tpu.matmul %27, %50, %cst_40 {dimension_numbers = #tpu.dot_dimension_numbers<[1], [0], [0], [1], [0, 0, 1, 1], [], []>} : vector<8x9xf32>, vector<9x128xf32>, vector<8x128xf32> -> vector<8x128xf32>
    %cst_41 = arith.constant dense<0.000000e+00> : vector<8x8xf32>
    %52 = tpu.matmul %51, %43, %cst_41 {dimension_numbers = #tpu.dot_dimension_numbers<[1], [1], [0], [0], [0, 0, 1, 0], [], []>} : vector<8x128xf32>, vector<8x128xf32>, vector<8x8xf32> -> vector<8x8xf32>
    %c0_42 = arith.constant 0 : index
    %c1 = arith.constant 1 : index
    %c0_43 = arith.constant 0 : index
    %c0_44 = arith.constant 0 : index
    %53 = vector.load %arg15[%c0_42, %c1, %c0_43, %c0_44] : memref<1x4x8x8xf32, #tpu.memory_space<vmem>>, vector<1x1x8x8xf32>
    %54 = vector.shape_cast %53 : vector<1x1x8x8xf32> to vector<8x8xf32>
    %55 = vector.shape_cast %52 : vector<8x8xf32> to vector<1x1x8x8xf32>
    tpu.vector_store %arg15[%c0_42, %c1, %c0_43, %c0_44], %55 {strides = array<i32>} : memref<1x4x8x8xf32, #tpu.memory_space<vmem>>, vector<1x1x8x8xf32>,
    %c0_45 = arith.constant 0 : index
    %c256 = arith.constant 256 : index
    %56 = vector.load %arg13[%c0_45, %c256] : memref<9x512xf32, #tpu.memory_space<vmem>>, vector<9x128xf32>
    %cst_46 = arith.constant dense<0.000000e+00> : vector<8x128xf32>
    %57 = tpu.matmul %27, %56, %cst_46 {dimension_numbers = #tpu.dot_dimension_numbers<[1], [0], [0], [1], [0, 0, 1, 1], [], []>} : vector<8x9xf32>, vector<9x128xf32>, vector<8x128xf32> -> vector<8x128xf32>
    %cst_47 = arith.constant dense<0.000000e+00> : vector<8x8xf32>
    %58 = tpu.matmul %57, %43, %cst_47 {dimension_numbers = #tpu.dot_dimension_numbers<[1], [1], [0], [0], [0, 0, 1, 0], [], []>} : vector<8x128xf32>, vector<8x128xf32>, vector<8x8xf32> -> vector<8x8xf32>
    %c0_48 = arith.constant 0 : index
    %c2 = arith.constant 2 : index
    %c0_49 = arith.constant 0 : index
    %c0_50 = arith.constant 0 : index
    %59 = vector.load %arg15[%c0_48, %c2, %c0_49, %c0_50] : memref<1x4x8x8xf32, #tpu.memory_space<vmem>>, vector<1x1x8x8xf32>
    %60 = vector.shape_cast %59 : vector<1x1x8x8xf32> to vector<8x8xf32>
    %61 = vector.shape_cast %58 : vector<8x8xf32> to vector<1x1x8x8xf32>
    tpu.vector_store %arg15[%c0_48, %c2, %c0_49, %c0_50], %61 {strides = array<i32>} : memref<1x4x8x8xf32, #tpu.memory_space<vmem>>, vector<1x1x8x8xf32>,
    %c0_51 = arith.constant 0 : index
    %c384 = arith.constant 384 : index
    %62 = vector.load %arg13[%c0_51, %c384] : memref<9x512xf32, #tpu.memory_space<vmem>>, vector<9x128xf32>
    %cst_52 = arith.constant dense<0.000000e+00> : vector<8x128xf32>
    %63 = tpu.matmul %27, %62, %cst_52 {dimension_numbers = #tpu.dot_dimension_numbers<[1], [0], [0], [1], [0, 0, 1, 1], [], []>} : vector<8x9xf32>, vector<9x128xf32>, vector<8x128xf32> -> vector<8x128xf32>
    %cst_53 = arith.constant dense<0.000000e+00> : vector<8x8xf32>
    %64 = tpu.matmul %63, %43, %cst_53 {dimension_numbers = #tpu.dot_dimension_numbers<[1], [1], [0], [0], [0, 0, 1, 0], [], []>} : vector<8x128xf32>, vector<8x128xf32>, vector<8x8xf32> -> vector<8x8xf32>
    %c0_54 = arith.constant 0 : index
    %c3 = arith.constant 3 : index
    %c0_55 = arith.constant 0 : index
    %c0_56 = arith.constant 0 : index
    %65 = vector.load %arg15[%c0_54, %c3, %c0_55, %c0_56] : memref<1x4x8x8xf32, #tpu.memory_space<vmem>>, vector<1x1x8x8xf32>
    %66 = vector.shape_cast %65 : vector<1x1x8x8xf32> to vector<8x8xf32>
    %67 = vector.shape_cast %64 : vector<8x8xf32> to vector<1x1x8x8xf32>
    tpu.vector_store %arg15[%c0_54, %c3, %c0_55, %c0_56], %67 {strides = array<i32>} : memref<1x4x8x8xf32, #tpu.memory_space<vmem>>, vector<1x1x8x8xf32>,
    return
  }
  func.func @transform_0(%arg0: i32, %arg1: i32) -> (i32, i32, i32) {
    %c0_i32 = arith.constant 0 : i32
    %c0_i32_0 = arith.constant 0 : i32
    %c0_i32_1 = arith.constant 0 : i32
    return %arg0, %c0_i32, %c0_i32_0 : i32, i32, i32
  }
  func.func @transform_1(%arg0: i32, %arg1: i32) -> (i32, i32, i32) {
    %c0_i32 = arith.constant 0 : i32
    %c0_i32_0 = arith.constant 0 : i32
    %c0_i32_1 = arith.constant 0 : i32
    return %arg0, %c0_i32, %c0_i32_0 : i32, i32, i32
  }
  func.func @transform_2(%arg0: i32, %arg1: i32) -> (i32, i32) {
    %c0_i32 = arith.constant 0 : i32
    %c0_i32_0 = arith.constant 0 : i32
    %c0_i32_1 = arith.constant 0 : i32
    return %c0_i32, %c0_i32_0 : i32, i32
  }
  func.func @transform_3(%arg0: i32, %arg1: i32) -> (i32, i32) {
    %c0_i32 = arith.constant 0 : i32
    %c0_i32_0 = arith.constant 0 : i32
    %c0_i32_1 = arith.constant 0 : i32
    return %c0_i32, %c0_i32_0 : i32, i32
  }
  func.func @transform_4(%arg0: i32, %arg1: i32) -> (i32, i32) {
    %c0_i32 = arith.constant 0 : i32
    %c0_i32_0 = arith.constant 0 : i32
    %c0_i32_1 = arith.constant 0 : i32
    return %c0_i32, %c0_i32_0 : i32, i32
  }
  func.func @transform_5(%arg0: i32, %arg1: i32) -> (i32, i32) {
    %c0_i32 = arith.constant 0 : i32
    %c0_i32_0 = arith.constant 0 : i32
    %c0_i32_1 = arith.constant 0 : i32
    return %c0_i32, %c0_i32_0 : i32, i32
  }
  func.func @transform_6(%arg0: i32, %arg1: i32) -> (i32, i32) {
    %c0_i32 = arith.constant 0 : i32
    %c0_i32_0 = arith.constant 0 : i32
    %c0_i32_1 = arith.constant 0 : i32
    return %c0_i32, %c0_i32_0 : i32, i32
  }
  func.func @transform_7(%arg0: i32, %arg1: i32) -> (i32, i32) {
    %c0_i32 = arith.constant 0 : i32
    %c0_i32_0 = arith.constant 0 : i32
    %c0_i32_1 = arith.constant 0 : i32
    return %c0_i32, %c0_i32_0 : i32, i32
  }
  func.func @transform_8(%arg0: i32, %arg1: i32) -> (i32, i32) {
    %c0_i32 = arith.constant 0 : i32
    %c0_i32_0 = arith.constant 0 : i32
    %c0_i32_1 = arith.constant 0 : i32
    return %c0_i32, %c0_i32_0 : i32, i32
  }
  func.func @transform_9(%arg0: i32, %arg1: i32) -> (i32, i32) {
    %c0_i32 = arith.constant 0 : i32
    %c0_i32_0 = arith.constant 0 : i32
    %c0_i32_1 = arith.constant 0 : i32
    return %c0_i32, %c0_i32_0 : i32, i32
  }
  func.func @transform_10(%arg0: i32, %arg1: i32) -> (i32, i32) {
    %c0_i32 = arith.constant 0 : i32
    %c0_i32_0 = arith.constant 0 : i32
    %c0_i32_1 = arith.constant 0 : i32
    return %c0_i32, %c0_i32_0 : i32, i32
  }
  func.func @transform_11(%arg0: i32, %arg1: i32) -> (i32, i32) {
    %c0_i32 = arith.constant 0 : i32
    %c0_i32_0 = arith.constant 0 : i32
    %c0_i32_1 = arith.constant 0 : i32
    return %c0_i32, %c0_i32_0 : i32, i32
  }
  func.func @transform_12(%arg0: i32, %arg1: i32) -> (i32, i32, i32) {
    %c0_i32 = arith.constant 0 : i32
    %c0_i32_0 = arith.constant 0 : i32
    return %arg0, %arg1, %c0_i32 : i32, i32, i32
  }
  func.func @transform_13(%arg0: i32, %arg1: i32) -> (i32, i32, i32, i32) {
    %c0_i32 = arith.constant 0 : i32
    %c0_i32_0 = arith.constant 0 : i32
    %c0_i32_1 = arith.constant 0 : i32
    return %arg0, %c0_i32, %arg1, %c0_i32_0 : i32, i32, i32, i32
  }
}

</mosaic_0001>

<bundles_post_ra>
// kernel: tpu_custom_call.1
= control target key start
LH: loop header
LB: loop body
LE: loop exit
PB: predicated region body
PF: predicated region fallthrough
CT: control target
= control target key end

     0   :  { %s4621_s0 = inlined_call_operand.hbm [shape: s32[2,1,8], index: 0, kind: input, shape index: {}]   ;;  %s4622_s1 = inlined_call_operand.hbm [shape: f32[2,8,32], index: 1, kind: input, shape index: {}]   ;;  %s4623_s2 = inlined_call_operand.hbm [shape: f32[32,17], index: 2, kind: input, shape index: {}]   ;;  %s4624_s3 = inlined_call_operand.hbm [shape: f32[1,17], index: 3, kind: input, shape index: {}]   ;;  %s4625_s4 = inlined_call_operand.hbm [shape: f32[32,16], index: 4, kind: input, shape index: {}]   ;;  %s4626_s5 = inlined_call_operand.hbm [shape: f32[1,16], index: 5, kind: input, shape index: {}]   ;;  %s4627_s6 = inlined_call_operand.hbm [shape: f32[32,9], index: 6, kind: input, shape index: {}]   ;;  %s4628_s7 = inlined_call_operand.hbm [shape: f32[1,9], index: 7, kind: input, shape index: {}]   ;;  %s4629_s8 = inlined_call_operand.hbm [shape: f32[32,128], index: 8, kind: input, shape index: {}]   ;;  %s4630_s9 = inlined_call_operand.hbm [shape: f32[1,128], index: 9, kind: input, shape index: {}]   ;;  %s4631_s10 = inlined_call_operand.hbm [shape: f32[17,16], index: 10, kind: input, shape index: {}]   ;;  %s4632_s11 = inlined_call_operand.hbm [shape: f32[9,512], index: 11, kind: input, shape index: {}]   ;;  %s4633_s12 = inlined_call_operand.hbm [shape: f32[2,8,8], index: 12, kind: output, shape index: {0}]   ;;  %s4634_s13 = inlined_call_operand.hbm [shape: f32[2,8,8,4], index: 13, kind: output, shape index: {1}]  }
   0x1   :  { %4650 = sst [smem:[#allocation40_spill]] %s4621_s0 }
   0x2   :  { %4651 = sst [smem:[#allocation41_spill]] %s4622_s1 }
   0x3   :  { %4652 = sst [smem:[#allocation42_spill]] %s4623_s2 }
   0x4   :  { %4653 = sst [smem:[#allocation43_spill]] %s4624_s3 }
   0x5   :  { %4654 = sst [smem:[#allocation44_spill]] %s4625_s4 }
   0x6   :  { %4655 = sst [smem:[#allocation45_spill]] %s4626_s5 }
   0x7   :  { %4656 = sst [smem:[#allocation46_spill]] %s4627_s6 }
   0x8   :  { %4657 = sst [smem:[#allocation47_spill]] %s4628_s7 }
   0x9   :  { %4658 = sst [smem:[#allocation48_spill]] %s4633_s12 }
   0xa   :  { %4659 = sst [smem:[#allocation49_spill]] %s4634_s13 }
   0xb   :  { %19 = vsyncpa [#allocation5], 0 }
   0xc   :  { %21 = vsyncpa [#allocation5 + $0x1], 0 }
   0xd   :  { %22 = vsyncpa [#allocation8], 0 }
   0xe   :  { %24 = vsyncpa [#allocation8 + $0x1], 0 }
   0xf   :  { %25 = vsyncpa [#allocation11], 0 }
  0x10   :  { %26 = vsyncpa [#allocation14], 0 }
  0x11   :  { %27 = vsyncpa [#allocation17], 0 }
  0x12   :  { %28 = vsyncpa [#allocation20], 0 }
  0x13   :  { %29 = vsyncpa [#allocation23], 0 }
  0x14   :  { %30 = vsyncpa [#allocation6], 0 }
  0x15   :  { %32 = vsyncpa [#allocation6 + $0x1], 0 }
  0x16   :  { %33 = vsyncpa [#allocation26], 0 }
  0x17   :  { %35 = vsyncpa [#allocation26 + $0x1], 0  ;;  %s3862_s25 = smov 0   ;;  %s3864_s26 = smov 0  }
  0x18   :  { %s3866_s27 = smov 0   ;;  %s3868_s28 = smov 0  }
  0x19   :  { %s3870_s29 = smov 0   ;;  %s3872_s30 = smov 0  }
  0x1a LB: > { %4660 = sst [smem:[#allocation37_spill]] %s3756_s28  ;;  %s3893_s14 = sadd.s32 4294967295, %s3764_s30   ;;  %s3764_s30 = sphi %s3872_s30, %s41_s30   ;;  %s3760_s29 = sphi %s3870_s29, %s4712_s29   ;;  %s3756_s28 = sphi %s3868_s28, %s4711_s28   ;;  %s3752_s27 = sphi %s3866_s27, %s4710_s27   ;;  %s3748_s26 = sphi %s3864_s26, %s4709_s26   ;;  %s3744_s25 = sphi %s3862_s25, %s4708_s25  }
  0x1b   : > { %4661 = sst [smem:[#allocation38_spill]] %s3893_s14  ;;  %p2610_p0 = scmp.ge.s32.totalorder %s3764_s30, 1 }
  0x1c   : > { %p4644_p1 = scmp.eq.s32.totalorder %s3893_s14, 0  ;;  %p376_p2 = scmp.lt.s32.totalorder %s3764_s30, 3 }
  0x1d   : > { %s3766_s16 = smov [#allocation9]   ;;  %s3767_s19 = smov [#allocation10]  }
  0x1e   : > { %p3898_p3 = pnand %p2610_p0, %p376_p2  ;;  %s388_s17 = sshll.u32 %s3766_s16, 4  ;;  %s3902_s17 = int_to_ptr.vmem [resolvable:$true] %s388_s17 }
  0x1f   : > { %s402_s20 = sshll.u32 %s3767_s19, 4  ;;  %s3768_s21 = smov [#allocation13]   ;;  %s3913_s20 = int_to_ptr.vmem [resolvable:$true] %s402_s20 }
  0x20   : > { %s4662_s15 = scalar_select %p3898_p3, 1, 0 }
  0x21   : > { %p3145_p4 = pneg %p3898_p3  ;;  %s3915_s22 = sshll.u32 %s3768_s21, 4  ;;  %s427_s22 = int_to_ptr.vmem [resolvable:$true] %s3915_s22 }
  0x22   : > { %4663 = sst [smem:[#allocation39_spill]] %s4662_s15  ;;  %s4665_s2 = sld [smem:[#allocation42_spill]] }
  0x23   : > { %p3909_p6 = pnand %p3145_p4, %p4644_p1 }
  0x25   : > { %p3925_p8 = pneg %p3909_p6 }
  0x28   : > { %s3282_s16 = scalar_lea.hbm %s4665_s2, 512 }
  0x29   : > { %p3283_p7 = scmp.ne.s32.totalorder %s4665_s2, %s3282_s16  ;;  %p3289_p11 = scmp.lt.u32.totalorder %s3282_s16, %s4665_s2 }
  0x2b   : > { %p3285_p9 = pnand %p3925_p8, %p3283_p7 }
  0x2d   : > { %p3286_p10 = pneg %p3285_p9 }
  0x2f   : > { %p3291_p12 = pnand %p3289_p11, %p3286_p10 }
  0x31   : > { %3294 = shalt.err (!%p3291_p12)
}
  0x32   : > { %s3295_s12 = scalar_lea.vmem %s3902_s17, 512  ;;  %p3303_p4 = scmp.lt.s32.totalorder %s3902_s17, %s3902_s17 }
  0x33   : > { %p3296_p13 = scmp.ne.s32.totalorder %s3902_s17, %s3295_s12  ;;  %p3304_p5 = scmp.lt.s32.totalorder %s3295_s12, %s3295_s12 }
  0x35   : > { %p3298_p0 = pnand %p3296_p13, %p3925_p8  ;;  %p3305_p7 = por %p3304_p5, %p3303_p4 }
  0x37   : > { %p3299_p2 = pneg %p3298_p0 }
  0x39   : > { %p3306_p9 = pnand %p3305_p7, %p3299_p2 }
  0x3b   : > { %3309 = shalt.err (!%p3306_p9)
}
  0x3c   : > { %s4646_s13 = smov 128   ;;  %s3770_s23 = smov 8  }
  0x3d   : > { %3148 = dma.hbm_to_vmem [thread:$0]  (!%p3909_p6), %s4665_s2, 512, %s3902_s17, [#allocation8], %s4646_s13, %s4646_s13, %s3770_s23  }
  0x3e   : > { %s4667_s3 = sld [smem:[#allocation43_spill]] }
  0x44   : > { %s3310_s12 = scalar_lea.hbm %s4667_s3, 16 }
  0x45   : > { %p3311_p5 = scmp.ne.s32.totalorder %s4667_s3, %s3310_s12  ;;  %p3317_p12 = scmp.lt.u32.totalorder %s3310_s12, %s4667_s3 }
  0x47   : > { %p3313_p10 = pnand %p3311_p5, %p3925_p8 }
  0x49   : > { %p3314_p11 = pneg %p3313_p10 }
  0x4b   : > { %p3319_p13 = pnand %p3317_p12, %p3314_p11 }
  0x4d   : > { %3322 = shalt.err (!%p3319_p13)
}
  0x4e   : > { %s3323_s17 = scalar_lea.vmem %s3913_s20, 16  ;;  %s3330_s1 = scalar_lea.vmem %s3913_s20, 32 }
  0x4f   : > { %p3324_p0 = scmp.ne.s32.totalorder %s3913_s20, %s3323_s17  ;;  %p3331_p7 = scmp.lt.s32.totalorder %s3913_s20, %s3913_s20 }
  0x50   : > { %p3332_p9 = scmp.lt.s32.totalorder %s3330_s1, %s3323_s17 }
  0x51   : > { %p3326_p2 = pnand %p3324_p0, %p3925_p8 }
  0x52   : > { %p3333_p5 = por %p3332_p9, %p3331_p7 }
  0x53   : > { %p3327_p4 = pneg %p3326_p2 }
  0x55   : > { %p3334_p10 = pnand %p3333_p5, %p3327_p4 }
  0x57   : > { %3337 = shalt.err (!%p3334_p10)
}
  0x58   : > { %3151 = dma.hbm_to_vmem [thread:$0]  (!%p3909_p6), %s4667_s3, 16, %s3913_s20, [#allocation11]  }
  0x59   : > { %s4668_s5 = sld [smem:[#allocation45_spill]] }
  0x5f   : > { %s3338_s16 = scalar_lea.hbm %s4668_s5, 16 }
  0x60   : > { %p3339_p11 = scmp.ne.s32.totalorder %s4668_s5, %s3338_s16  ;;  %p3345_p0 = scmp.lt.u32.totalorder %s3338_s16, %s4668_s5 }
  0x62   : > { %p3341_p12 = pnand %p3339_p11, %p3925_p8 }
  0x64   : > { %p3342_p13 = pneg %p3341_p12 }
  0x66   : > { %p3347_p2 = pnand %p3345_p0, %p3342_p13 }
  0x68   : > { %3350 = shalt.err (!%p3347_p2)
}
  0x69   : > { %s3351_s1 = scalar_lea.vmem %s427_s22, 16  ;;  %s3358_s20 = scalar_lea.vmem %s427_s22, 32 }
  0x6a   : > { %p3352_p4 = scmp.ne.s32.totalorder %s427_s22, %s3351_s1  ;;  %p3359_p5 = scmp.lt.s32.totalorder %s427_s22, %s427_s22 }
  0x6b   : > { %p3360_p10 = scmp.lt.s32.totalorder %s3358_s20, %s3351_s1 }
  0x6c   : > { %p3354_p7 = pnand %p3352_p4, %p3925_p8 }
  0x6d   : > { %p3361_p1 = por %p3360_p10, %p3359_p5 }
  0x6e   : > { %p3355_p9 = pneg %p3354_p7 }
  0x70   : > { %p3362_p3 = pnand %p3361_p1, %p3355_p9 }
  0x72   : > { %3365 = shalt.err (!%p3362_p3)
}
  0x73   : > { %3157 = dma.hbm_to_vmem [thread:$0]  (!%p3909_p6), %s4668_s5, 16, %s427_s22, [#allocation14]  }
  0x74   : > { %s3771_s15 = smov [#allocation16]   ;;  %s3772_s16 = smov [#allocation19]  }
  0x75   : > { %s450_s24 = sshll.u32 %s3771_s15, 4  ;;  %s474_s19 = sshll.u32 %s3772_s16, 4  ;;  %s451_s24 = int_to_ptr.vmem [resolvable:$true] %s450_s24  ;;  %s475_s19 = int_to_ptr.vmem [resolvable:$true] %s474_s19 }
  0x76   : > { %s4669_s7 = sld [smem:[#allocation47_spill]] }
  0x7c   : > { %s3366_s17 = scalar_lea.hbm %s4669_s7, 16 }
  0x7d   : > { %p3367_p1 = scmp.ne.s32.totalorder %s4669_s7, %s3366_s17  ;;  %p3373_p12 = scmp.lt.u32.totalorder %s3366_s17, %s4669_s7 }
  0x7f   : > { %p3369_p3 = pnand %p3367_p1, %p3925_p8 }
  0x81   : > { %p3370_p11 = pneg %p3369_p3 }
  0x83   : > { %p3375_p13 = pnand %p3373_p12, %p3370_p11 }
  0x85   : > { %3378 = shalt.err (!%p3375_p13)
}
  0x86   : > { %s3379_s22 = scalar_lea.vmem %s451_s24, 16  ;;  %s3386_s14 = scalar_lea.vmem %s451_s24, 32 }
  0x87   : > { %p3380_p0 = scmp.ne.s32.totalorder %s451_s24, %s3379_s22  ;;  %p3387_p7 = scmp.lt.s32.totalorder %s451_s24, %s451_s24 }
  0x88   : > { %p3388_p9 = scmp.lt.s32.totalorder %s3386_s14, %s3379_s22 }
  0x89   : > { %p3382_p2 = pnand %p3380_p0, %p3925_p8 }
  0x8a   : > { %p3389_p5 = por %p3388_p9, %p3387_p7 }
  0x8b   : > { %p3383_p4 = pneg %p3382_p2 }
  0x8d   : > { %p3390_p10 = pnand %p3389_p5, %p3383_p4 }
  0x8f   : > { %3393 = shalt.err (!%p3390_p10)
}
  0x90   : > { %3163 = dma.hbm_to_vmem [thread:$0]  (!%p3909_p6), %s4669_s7, 16, %s451_s24, [#allocation17]  }
  0x91   : > { %s3394_s12 = scalar_lea.hbm %s4630_s9, 16 }
  0x92   : > { %p3395_p1 = scmp.ne.s32.totalorder %s4630_s9, %s3394_s12  ;;  %p3401_p12 = scmp.lt.u32.totalorder %s3394_s12, %s4630_s9 }
  0x94   : > { %p3397_p3 = pnand %p3395_p1, %p3925_p8 }
  0x96   : > { %p3398_p11 = pneg %p3397_p3 }
  0x98   : > { %p3403_p13 = pnand %p3401_p12, %p3398_p11 }
  0x9a   : > { %3406 = shalt.err (!%p3403_p13)
}
  0x9b   : > { %s3407_s22 = scalar_lea.vmem %s475_s19, 16  ;;  %s3414_s24 = scalar_lea.vmem %s475_s19, 32 }
  0x9c   : > { %p3408_p0 = scmp.ne.s32.totalorder %s475_s19, %s3407_s22  ;;  %p3415_p7 = scmp.lt.s32.totalorder %s475_s19, %s475_s19 }
  0x9d   : > { %p3416_p9 = scmp.lt.s32.totalorder %s3414_s24, %s3407_s22 }
  0x9e   : > { %p3410_p2 = pnand %p3408_p0, %p3925_p8 }
  0x9f   : > { %p3417_p5 = por %p3416_p9, %p3415_p7 }
  0xa0   : > { %p3411_p4 = pneg %p3410_p2 }
  0xa2   : > { %p3418_p10 = pnand %p3417_p5, %p3411_p4 }
  0xa4   : > { %3421 = shalt.err (!%p3418_p10)
}
  0xa5   : > { %3169 = dma.hbm_to_vmem [thread:$0]  (!%p3909_p6), %s4630_s9, 16, %s475_s19, [#allocation20]  }
  0xa6   : > { %s3773_s16 = smov [#allocation12]   ;;  %s3774_s21 = smov [#allocation15]  }
  0xa7   : > { %s412_s13 = sshll.u32 %s3773_s16, 4  ;;  %s436_s12 = sshll.u32 %s3774_s21, 4  ;;  %s413_s13 = int_to_ptr.vmem [resolvable:$true] %s412_s13  ;;  %s437_s12 = int_to_ptr.vmem [resolvable:$true] %s436_s12 }
  0xa8   : > { %s4670_s4 = sld [smem:[#allocation44_spill]] }
  0xae   : > { %s3422_s20 = scalar_lea.hbm %s4670_s4, 512 }
  0xaf   : > { %p3423_p1 = scmp.ne.s32.totalorder %s4670_s4, %s3422_s20  ;;  %p3429_p12 = scmp.lt.u32.totalorder %s3422_s20, %s4670_s4 }
  0xb1   : > { %p3425_p3 = pnand %p3423_p1, %p3925_p8 }
  0xb3   : > { %p3426_p11 = pneg %p3425_p3 }
  0xb5   : > { %p3431_p13 = pnand %p3429_p12, %p3426_p11 }
  0xb7   : > { %3434 = shalt.err (!%p3431_p13)
}
  0xb8   : > { %s3435_s19 = scalar_lea.vmem %s413_s13, 512  ;;  %p3443_p7 = scmp.lt.s32.totalorder %s413_s13, %s413_s13 }
  0xb9   : > { %p3436_p0 = scmp.ne.s32.totalorder %s413_s13, %s3435_s19  ;;  %p3444_p9 = scmp.lt.s32.totalorder %s3435_s19, %s3435_s19 }
  0xbb   : > { %p3438_p2 = pnand %p3436_p0, %p3925_p8  ;;  %p3445_p5 = por %p3444_p9, %p3443_p7 }
  0xbd   : > { %p3439_p4 = pneg %p3438_p2 }
  0xbf   : > { %p3446_p10 = pnand %p3445_p5, %p3439_p4 }
  0xc1   : > { %3449 = shalt.err (!%p3446_p10)
}
  0xc2   : > { %s4671_s15 = smov 128   ;;  %s4672_s6 = sld [smem:[#allocation46_spill]] }
  0xc3   : > { %3154 = dma.hbm_to_vmem [thread:$0]  (!%p3909_p6), %s4670_s4, 512, %s413_s13, [#allocation11], %s4671_s15, %s4671_s15, %s3770_s23  }
  0xc8   : > { %s3450_s20 = scalar_lea.hbm %s4672_s6, 512 }
  0xc9   : > { %p3451_p1 = scmp.ne.s32.totalorder %s4672_s6, %s3450_s20  ;;  %p3457_p12 = scmp.lt.u32.totalorder %s3450_s20, %s4672_s6 }
  0xcb   : > { %p3453_p3 = pnand %p3451_p1, %p3925_p8 }
  0xcd   : > { %p3454_p11 = pneg %p3453_p3 }
  0xcf   : > { %p3459_p13 = pnand %p3457_p12, %p3454_p11 }
  0xd1   : > { %3462 = shalt.err (!%p3459_p13)
}
  0xd2   : > { %s3463_s19 = scalar_lea.vmem %s437_s12, 512  ;;  %p3471_p7 = scmp.lt.s32.totalorder %s437_s12, %s437_s12 }
  0xd3   : > { %p3464_p0 = scmp.ne.s32.totalorder %s437_s12, %s3463_s19  ;;  %p3472_p9 = scmp.lt.s32.totalorder %s3463_s19, %s3463_s19 }
  0xd5   : > { %p3466_p2 = pnand %p3464_p0, %p3925_p8  ;;  %p3473_p5 = por %p3472_p9, %p3471_p7 }
  0xd7   : > { %p3467_p4 = pneg %p3466_p2 }
  0xd9   : > { %p3474_p10 = pnand %p3473_p5, %p3467_p4 }
  0xdb   : > { %3477 = shalt.err (!%p3474_p10)
}
  0xdc   : > { %3160 = dma.hbm_to_vmem [thread:$0]  (!%p3909_p6), %s4672_s6, 512, %s437_s12, [#allocation14], %s4671_s15, %s4671_s15, %s3770_s23  }
  0xdd   : > { %s3775_s21 = smov [#allocation18]   ;;  %s3776_s1 = smov [#allocation21]  }
  0xde   : > { %s460_s17 = sshll.u32 %s3775_s21, 4  ;;  %s484_s20 = sshll.u32 %s3776_s1, 4  ;;  %s461_s17 = int_to_ptr.vmem [resolvable:$true] %s460_s17  ;;  %s485_s20 = int_to_ptr.vmem [resolvable:$true] %s484_s20 }
  0xdf   : > { %s3478_s24 = scalar_lea.hbm %s4629_s8, 512 }
  0xe0   : > { %p3479_p1 = scmp.ne.s32.totalorder %s4629_s8, %s3478_s24  ;;  %p3485_p12 = scmp.lt.u32.totalorder %s3478_s24, %s4629_s8 }
  0xe2   : > { %p3481_p3 = pnand %p3479_p1, %p3925_p8 }
  0xe4   : > { %p3482_p11 = pneg %p3481_p3 }
  0xe6   : > { %p3487_p13 = pnand %p3485_p12, %p3482_p11 }
  0xe8   : > { %3490 = shalt.err (!%p3487_p13)
}
  0xe9   : > { %s3491_s12 = scalar_lea.vmem %s461_s17, 512  ;;  %p3499_p7 = scmp.lt.s32.totalorder %s461_s17, %s461_s17 }
  0xea   : > { %p3492_p0 = scmp.ne.s32.totalorder %s461_s17, %s3491_s12  ;;  %p3500_p9 = scmp.lt.s32.totalorder %s3491_s12, %s3491_s12 }
  0xec   : > { %p3494_p2 = pnand %p3492_p0, %p3925_p8  ;;  %p3501_p5 = por %p3500_p9, %p3499_p7 }
  0xee   : > { %p3495_p4 = pneg %p3494_p2 }
  0xf0   : > { %p3502_p10 = pnand %p3501_p5, %p3495_p4 }
  0xf2   : > { %3505 = shalt.err (!%p3502_p10)
}
  0xf3   : > { %3166 = dma.hbm_to_vmem [thread:$0]  (!%p3909_p6), %s4629_s8, 512, %s461_s17, [#allocation17], %s4671_s15, %s4671_s15, %s3770_s23  }
  0xf4   : > { %s3506_s0 = scalar_lea.hbm %s4631_s10, 384 }
  0xf5   : > { %p3507_p1 = scmp.ne.s32.totalorder %s4631_s10, %s3506_s0  ;;  %p3513_p12 = scmp.lt.u32.totalorder %s3506_s0, %s4631_s10 }
  0xf7   : > { %p3509_p3 = pnand %p3507_p1, %p3925_p8 }
  0xf9   : > { %p3510_p11 = pneg %p3509_p3 }
  0xfb   : > { %p3515_p13 = pnand %p3513_p12, %p3510_p11 }
  0xfd   : > { %3518 = shalt.err (!%p3515_p13)
}
  0xfe   : > { %s3519_s13 = scalar_lea.vmem %s485_s20, 384  ;;  %p3527_p7 = scmp.lt.s32.totalorder %s485_s20, %s485_s20 }
  0xff   : > { %p3520_p0 = scmp.ne.s32.totalorder %s485_s20, %s3519_s13  ;;  %p3528_p9 = scmp.lt.s32.totalorder %s3519_s13, %s3519_s13 }
 0x101   : > { %p3522_p2 = pnand %p3520_p0, %p3925_p8  ;;  %p3529_p5 = por %p3528_p9, %p3527_p7 }
 0x103   : > { %p3523_p4 = pneg %p3522_p2 }
 0x105   : > { %p3530_p10 = pnand %p3529_p5, %p3523_p4 }
 0x107   : > { %3533 = shalt.err (!%p3530_p10)
}
 0x108   : > { %3172 = dma.hbm_to_vmem [thread:$0]  (!%p3909_p6), %s4631_s10, 384, %s485_s20, [#allocation20], %s4671_s15, %s4671_s15, %s3770_s23  }
 0x109   : > { %s3777_s2 = smov [#allocation22]   ;;  %s3534_s0 = scalar_lea.hbm %s4632_s11, 1024 }
 0x10a   : > { %s497_s16 = sshll.u32 %s3777_s2, 4  ;;  %p3535_p1 = scmp.ne.s32.totalorder %s4632_s11, %s3534_s0  ;;  %s498_s16 = int_to_ptr.vmem [resolvable:$true] %s497_s16 }
 0x10b   : > { %p3541_p12 = scmp.lt.u32.totalorder %s3534_s0, %s4632_s11 }
 0x10c   : > { %p3537_p3 = pnand %p3535_p1, %p3925_p8 }
 0x10e   : > { %p3538_p11 = pneg %p3537_p3 }
 0x110   : > { %p3543_p13 = pnand %p3541_p12, %p3538_p11 }
 0x112   : > { %3546 = shalt.err (!%p3543_p13)
}
 0x113   : > { %s3547_s23 = scalar_lea.vmem %s498_s16, 1024  ;;  %p3555_p7 = scmp.lt.s32.totalorder %s498_s16, %s498_s16 }
 0x114   : > { %p3548_p0 = scmp.ne.s32.totalorder %s498_s16, %s3547_s23  ;;  %p3556_p9 = scmp.lt.s32.totalorder %s3547_s23, %s3547_s23 }
 0x116   : > { %p3550_p2 = pnand %p3548_p0, %p3925_p8  ;;  %p3557_p5 = por %p3556_p9, %p3555_p7 }
 0x118   : > { %p3551_p4 = pneg %p3550_p2 }
 0x11a   : > { %p3558_p10 = pnand %p3557_p5, %p3551_p4 }
 0x11c   : > { %3561 = shalt.err (!%p3558_p10)
}
 0x11d   : > { %s3778_s15 = smov 512   ;;  %s4673_s20 = sld [smem:[#allocation38_spill]] }
 0x11e   : > { %s3779_s28 = smov 32   ;;  %s2609_s12 = sadd.s32 4294967294, %s3764_s30  }
 0x11f   : > { %3175 = dma.hbm_to_vmem [thread:$0]  (!%p3909_p6), %s4632_s11, 1024, %s498_s16, [#allocation23], %s3778_s15, %s3778_s15, %s3779_s28  }
 0x120   : > { %s53_s2 = sadd.s32 1, %s3760_s29  ;;  %s60_s21 = sadd.s32 1, %s3752_s27 }
 0x121   : > { %p55_p8 = scmp.ge.s32.totalorder %s53_s2, 2  ;;  %p67_p1 = scmp.ne.s32.totalorder %s3752_s27, %s3748_s26 }
 0x122   : > { %p68_p3 = scmp.eq.s32.totalorder %s3764_s30, 0  ;;  %p73_p12 = scmp.ne.s32.totalorder %s3748_s26, %s3744_s25 }
 0x123   : > { %s4714_s2 = smov (%p55_p8, %s53_s2), 0  ;;  %p335_p6 = scmp.eq.s32.totalorder %s4673_s20, 1 }
 0x124   : > { %p4138_p11 = por %p68_p3, %p67_p1  ;;  %s57_s18 = ssub.s32 %s3760_s29, %s4714_s2 }
 0x125   : > { %p58_p13 = scmp.eq.s32.totalorder %s57_s18, 0  ;;  %p4675_p0 = scmp.eq.s32.totalorder %s4673_s20, 0 }
 0x126   : > { %p4153_p4 = por %p335_p6, %p67_p1  ;;  %p341_p7 = scmp.eq.s32.totalorder %s2609_s12, 1 }
 0x127   : > { %p4149_p2 = por %p4675_p0, %p73_p12  ;;  %p3200_p5 = scmp.lt.s32.totalorder %s3764_s30, 2 }
 0x128   : > { %s4677_s0 = scalar_select %p4153_p4, 1, 0 }
 0x129   : > { %s4676_s16 = scalar_select %p4149_p2, 1, 0 }
 0x12a   : > { %s4158_s22 = scalar_select %p58_p13, %s3752_s27, %s60_s21  }
 0x12b   : > { %p4160_p9 = por %p341_p7, %p73_p12  ;;  %s4166_s14 = sand.u32 1, %s3752_s27  }
 0x12c   : > { %s2622_s19 = sshll.u32 %s3760_s29, 4  ;;  %s4679_s20 = sld [smem:[#allocation40_spill]] }
 0x12d   : > { %s4678_s24 = scalar_select %p4160_p9, 1, 0 }
 0x12e   : > { %s514_s13 = scalar_lea.vmem [#allocation4], %s4166_s14  ;;  %p4179_p10 = pnand %p3200_p5, %p4138_p11 }
 0x12f   : > { %s521_s17 = sshll.u32 %s514_s13, 4  ;;  %s512_s23 = scalar_lea.sflag [#allocation5], %s4166_s14  ;;  %s4175_s17 = int_to_ptr.vmem [resolvable:$true] %s521_s17 }
 0x130   : > { %p3564_p1 = pneg %p4179_p10 }
 0x132   : > { %s4172_s28 = scalar_lea.hbm %s4679_s20, %s2622_s19  ;;  %s3567_s1 = scalar_lea.hbm %s4679_s20, 32 }
 0x133   : > { %s3562_s19 = scalar_lea.hbm %s4172_s28, 16  ;;  %p3568_p11 = scmp.lt.u32.totalorder %s4172_s28, %s4679_s20 }
 0x134   : > { %p3563_p8 = scmp.ne.s32.totalorder %s4172_s28, %s3562_s19  ;;  %p3569_p6 = scmp.lt.u32.totalorder %s3567_s1, %s3562_s19 }
 0x135   : > { %p3571_p0 = scmp.lt.u32.totalorder %s3562_s19, %s4172_s28 }
 0x136   : > { %p3565_p3 = pnand %p3564_p1, %p3563_p8  ;;  %p3570_p13 = por %p3569_p6, %p3568_p11 }
 0x138   : > { %p3566_p12 = pneg %p3565_p3  ;;  %p3572_p7 = por %p3571_p0, %p3570_p13 }
 0x13a   : > { %p3573_p5 = pnand %p3572_p7, %p3566_p12 }
 0x13c   : > { %3576 = shalt.err (!%p3573_p5)
}
 0x13d   : > { %s3577_s21 = scalar_lea.vmem %s4175_s17, 16  ;;  %s3780_s15 = smov [#allocation4]  }
 0x13e   : > { %p3578_p8 = scmp.ne.s32.totalorder %s4175_s17, %s3577_s21  ;;  %s3582_s13 = sshll.u32 %s3780_s15, 4  ;;  %s3583_s13 = int_to_ptr.vmem [resolvable:$false] %s3582_s13 }
 0x13f   : > { %s3584_s3 = scalar_lea.vmem %s3583_s13, 32  ;;  %p3585_p4 = scmp.lt.s32.totalorder %s4175_s17, %s3583_s13 }
 0x140   : > { %p3580_p3 = pnand %p3578_p8, %p3564_p1  ;;  %p3586_p11 = scmp.lt.s32.totalorder %s3584_s3, %s3577_s21 }
 0x142   : > { %p3581_p9 = pneg %p3580_p3  ;;  %p3587_p6 = por %p3586_p11, %p3585_p4 }
 0x144   : > { %p3588_p13 = pnand %p3587_p6, %p3581_p9 }
 0x146   : > { %3591 = shalt.err (!%p3588_p13)
}
 0x147   : > { %3179 = dma.hbm_to_vmem [thread:$0]  (!%p4179_p10), %s4172_s28, 16, %s4175_s17, %s512_s23  }
 0x148   : > { %s2624_s4 = sshll.u32 %s3760_s29, 7  ;;  %s4681_s15 = sld [smem:[#allocation41_spill]] }
 0x149   : > { %s4682_s13 = sshll.u32 %s4166_s14, 3  ;;  %s4683_s5 = sand.u32 1, %s3764_s30  }
 0x14a   : > { %s532_s21 = scalar_lea.vmem [#allocation7], %s4682_s13  ;;  %s529_s6 = scalar_lea.sflag [#allocation8], %s4683_s5 }
 0x14b   : > { %s539_s3 = sshll.u32 %s532_s21, 4  ;;  %s540_s3 = int_to_ptr.vmem [resolvable:$true] %s539_s3 }
 0x14e   : > { %s4215_s18 = scalar_lea.hbm %s4681_s15, %s2624_s4  ;;  %s3597_s23 = scalar_lea.hbm %s4681_s15, 256 }
 0x14f   : > { %s3592_s7 = scalar_lea.hbm %s4215_s18, 128  ;;  %p3598_p0 = scmp.lt.u32.totalorder %s4215_s18, %s4681_s15 }
 0x150   : > { %p3593_p4 = scmp.ne.s32.totalorder %s4215_s18, %s3592_s7  ;;  %p3599_p7 = scmp.lt.u32.totalorder %s3597_s23, %s3592_s7 }
 0x151   : > { %p3601_p8 = scmp.lt.u32.totalorder %s3592_s7, %s4215_s18 }
 0x152   : > { %p3595_p9 = pnand %p3593_p4, %p3564_p1  ;;  %p3600_p5 = por %p3599_p7, %p3598_p0 }
 0x154   : > { %p3596_p12 = pneg %p3595_p9  ;;  %p3602_p3 = por %p3601_p8, %p3600_p5 }
 0x156   : > { %p3603_p11 = pnand %p3602_p3, %p3596_p12 }
 0x158   : > { %3606 = shalt.err (!%p3603_p11)
}
 0x159   : > { %s3607_s5 = scalar_lea.vmem %s540_s3, 128  ;;  %s3781_s19 = smov [#allocation7]  }
 0x15a   : > { %p3608_p6 = scmp.ne.s32.totalorder %s540_s3, %s3607_s5  ;;  %s3612_s1 = sshll.u32 %s3781_s19, 4  ;;  %s3613_s1 = int_to_ptr.vmem [resolvable:$false] %s3612_s1 }
 0x15b   : > { %s3614_s13 = scalar_lea.vmem %s3613_s1, 256  ;;  %p3615_p9 = scmp.lt.s32.totalorder %s540_s3, %s3613_s1 }
 0x15c   : > { %p3610_p13 = pnand %p3608_p6, %p3564_p1  ;;  %p3616_p2 = scmp.lt.s32.totalorder %s3614_s13, %s3607_s5 }
 0x15e   : > { %p3611_p4 = pneg %p3610_p13  ;;  %p3617_p0 = por %p3616_p2, %p3615_p9 }
 0x160   : > { %p3618_p7 = pnand %p3617_p0, %p3611_p4 }
 0x162   : > { %3621 = shalt.err (!%p3618_p7)
}
 0x163   : > { %3182 = dma.hbm_to_vmem [thread:$0]  (!%p4179_p10), %s4215_s18, 128, %s540_s3, %s529_s6  }
 0x164   : > { %s4684_s7 = sld [smem:[#allocation39_spill]] }
 0x16a   : > { %p4685_p12 = scmp.ne.s32.totalorder %s4684_s7, 0 }
 0x16b   : > { %s4243_s21 = sand.u32 (!%p4685_p12), 1, %s3748_s26   ;;  %p4686_p1 = scmp.ne.s32.totalorder (!%p4685_p12), %s4676_s16, 0 }
 0x16c   : > { %548 = sbr.rel (%p4685_p12) target bundleno = 1484 (0x5cc), region = 68  ;;  %s551_s28 = scalar_lea.sflag (!%p4685_p12), [#allocation5], %s4243_s21 }
 0x16d   : > { %s553_s17 = scalar_lea.vmem (!%p4685_p12), [#allocation4], %s4243_s21 }
 0x173   : > { %3703 = dma.done.wait (%p4686_p1), %s551_s28, 16  }
 0x174   : > { %3705 = vsyncadd (%p4686_p1), %s551_s28, 4294967280  ;;  %s4687_s23 = sld [smem:[#allocation38_spill]]  ;;  %s2626_s12 = sshll.u32 %s4243_s21, 3 }
 0x175   : > { %s4255_s3 = scalar_lea.vmem [#allocation7], %s2626_s12 }
 0x17a   : > { %s558_s6 = sand.u32 1, %s4687_s23  }
 0x17b   : > { %s559_s18 = scalar_lea.sflag [#allocation8], %s558_s6 }
 0x17c   : > { %3707 = dma.done.wait (%p4686_p1), %s559_s18, 128  }
 0x17d   : > { %3709 = vsyncadd (%p4686_p1), %s559_s18, 4294967168  ;;  %p4688_p2 = scmp.eq.s32.totalorder %s4687_s23, 0 }
 0x17f   : > { %3711 = dma.done.wait (%p4688_p2), [#allocation8], 512   ;;  %p4689_p10 = pmov %p4688_p2 }
 0x180   : > { %p4690_p5 = pmov %p4688_p2 }
 0x181   : > { %3713 = vsyncadd (%p4689_p10), [#allocation8], 4294966784 }
 0x182   : > { %3715 = dma.done.wait (%p4690_p5), [#allocation11], 528   ;;  %p4691_p8 = pmov %p4688_p2 }
 0x183   : > { %p4692_p3 = pmov %p4688_p2 }
 0x184   : > { %3717 = vsyncadd (%p4691_p8), [#allocation11], 4294966768 }
 0x185   : > { %3719 = dma.done.wait (%p4692_p3), [#allocation14], 528   ;;  %p4693_p11 = pmov %p4688_p2 }
 0x186   : > { %p4694_p6 = pmov %p4688_p2 }
 0x187   : > { %3721 = vsyncadd (%p4693_p11), [#allocation14], 4294966768 }
 0x188   : > { %3723 = dma.done.wait (%p4694_p6), [#allocation17], 528   ;;  %p4695_p13 = pmov %p4688_p2 }
 0x189   : > { %p4696_p4 = pmov %p4688_p2 }
 0x18a   : > { %3725 = vsyncadd (%p4695_p13), [#allocation17], 4294966768 }
 0x18b   : > { %3727 = dma.done.wait (%p4696_p4), [#allocation20], 400   ;;  %p4697_p9 = pmov %p4688_p2 }
 0x18c   : > { %p4698_p0 = pmov %p4688_p2 }
 0x18d   : > { %3729 = vsyncadd (%p4697_p9), [#allocation20], 4294966896 }
 0x18e   : > { %3731 = dma.done.wait (%p4698_p0), [#allocation23], 1024   ;;  %p4699_p7 = pmov %p4698_p0 }
 0x18f   : > { %v3782_v0 = vmov 0.0|0.0   ;;  %vm3783_vm0 = vmmov 0   ;;  %v3784_v1 = vmov 0.0   ;;  %v660_v2 = vld [vmem:[#allocation12] sm:$0xff]  ;;  %v661_v3 = vld [vmem:[#allocation12 + $0x8] sm:$0xff]  ;;  %v662_v4 = vld [vmem:[#allocation12 + $0x10] sm:$0xff] }
 0x190   : > { %3733 = vsyncadd (%p4699_p7), [#allocation23], 4294966272  ;;  %2959 = vmatprep.subr.bf16.mxu0 %v3782_v0  ;;  %2767 = vmatprep.mubr.msk.f32.mxu0 %vm3783_vm0, %v3784_v1  ;;  %v2960_v5 = vpack.c.bf16 %v661_v3, %v660_v2  ;;  %v663_v6 = vld [vmem:[#allocation12 + $0x18] sm:$0xff]  ;;  %v748_v8 = vld [vmem:[#allocation18] sm:$0xff]  ;;  %vm671_vm1 = vcmask 261120   ;;  %vm1097_vm2 = vcmask 1040384  }
 0x191   : > { %2965 = vmatprep.subr.bf16.mxu1 %v3782_v0  ;;  %2778 = vmatprep.mubr.msk.f32.mxu1 %vm3783_vm0, %v3784_v1  ;;  %v2963_v7 = vpack.c.bf16 %v663_v6, %v662_v4  ;;  %v749_v9 = vld [vmem:[#allocation18 + $0x8] sm:$0xff]  ;;  %v750_v10 = vld [vmem:[#allocation18 + $0x10] sm:$0xff]  ;;  %v918_v11 = vld [vmem:[#allocation9] sm:$0xff]  ;;  %vm1093_vm5 = vcmask 138240   ;;  %vm3785_vm7 = vmmov 1   ;;  %vm1282_vm10 = vcmask 72704  }
 0x192   : > { %2961 = vmatpush3.bf16.msra.mxu0 %v2960_v5  ;;  %v919_v12 = vld [vmem:[#allocation9 + $0x8] sm:$0xff]  ;;  %v2966_v13 = vpack.c.bf16 %v749_v9, %v748_v8  ;;  %v751_v14 = vld [vmem:[#allocation18 + $0x18] sm:$0xff]  ;;  %v920_v18 = vld [vmem:[#allocation9 + $0x10] sm:$0xff]  ;;  %vm864_vm11 = vcmask 64512   ;;  %vm1173_vm12 = vcmask 130048   ;;  %s4414_s16 = scalar_lea.vmem [#allocation24], %s2626_s12 }
 0x193   : > { %2962 = vmatprep.subr.bf16.mxu0 %v3782_v0  ;;  %v2969_v15 = vpack.c.bf16 %v751_v14, %v750_v10  ;;  %v659_v16 = vld [vmem:[%s4255_s3] sm:$0xff]  ;;  %v2972_v17 = vpack.c.bf16 %v919_v12, %v918_v11  ;;  %v1006_v21 = vld [vmem:[#allocation15] sm:$0xff]  ;;  %v2639_v31 = vld [vmem:[#allocation13] ss:$0 sm:$0xff]  ;;  %vm2056_vm15 = vcmask 1041408   ;;  %s4702_s14 = sld [smem:[#allocation37_spill]] }
 0x194   : > { %2967 = vmatpush3.bf16.msra.mxu1 %v2966_v13  ;;  %v921_v19 = vld [vmem:[#allocation9 + $0x18] sm:$0xff]  ;;  %v1007_v22 = vld [vmem:[#allocation15 + $0x8] sm:$0xff]  ;;  %v2643_v37 = vld [vmem:[#allocation10] ss:$0 sm:$0xff]  ;;  %s4703_s1 = sld [smem:[#allocation48_spill]]  ;;  %s2359_s7 = sshll.u32 %s4414_s16, 4  ;;  %s2360_s7 = int_to_ptr.vmem [resolvable:$true] %s2359_s7 }
 0x195   : > { %2968 = vmatprep.subr.bf16.mxu1 %v3782_v0  ;;  %v2975_v20 = vpack.c.bf16 %v921_v19, %v920_v18  ;;  %v2978_v23 = vpack.c.bf16 %v1007_v22, %v1006_v21  ;;  %v1008_v24 = vld [vmem:[#allocation15 + $0x10] sm:$0xff]  ;;  %v1009_v25 = vld [vmem:[#allocation15 + $0x18] sm:$0xff]  ;;  %v1090_v27 = vld [vmem:[#allocation21] sm:$0xff]  ;;  %s2340_s28 = scalar_lea.sflag [#allocation6], %s4243_s21  ;;  %p4704_p1 = scmp.ne.s32.totalorder %s4677_s0, 0 }
 0x196   : > { %2964 = vmatpush3.bf16.msra.mxu0 %v2963_v7  ;;  %v2981_v26 = vpack.c.bf16 %v1009_v25, %v1008_v24  ;;  %v1091_v28 = vld [vmem:[#allocation21 + $0x8] sm:$0xff]  ;;  %v1092_v30 = vld [vmem:[#allocation21 + $0x10] sm:$0x1]  ;;  %v2641_v45 = vld [vmem:[#allocation19] ss:$0 sm:$0xff]  ;;  %s3788_s23 = smov [#allocation24]  }
 0x197   : > { %2971 = vmatprep.subr.bf16.mxu0 %v3782_v0  ;;  %v2984_v29 = vpack.c.bf16 %v1091_v28, %v1090_v27  ;;  %v1277_v48 = vld [vmem:[#allocation22 + $0x18] sm:$0xff]  ;;  %v1276_v50 = vld [vmem:[#allocation22 + $0x10] sm:$0xff]  ;;  %vm4316_vm8 = vmpackc.low %vm1097_vm2, %vm3785_vm7  ;;  %s3626_s6 = sshll.u32 %s3788_s23, 4  ;;  %s3627_s6 = int_to_ptr.vmem [resolvable:$false] %s3626_s6 }
 0x198   : > { %2970 = vmatpush3.bf16.msra.mxu1 %v2969_v15  ;;  %v1281_v49 = vld [vmem:[#allocation22 + $0x38] sm:$0x1]  ;;  %v1280_v51 = vld [vmem:[#allocation22 + $0x30] sm:$0x1]  ;;  %v2645_v56 = vld [vmem:[#allocation16] ss:$0 sm:$0xff]  ;;  %p3629_p5 = scmp.lt.s32.totalorder %s2360_s7, %s3627_s6 }
 0x199   : > { %2768 = vmatmul.mubr.msk.f32.vlgmr.msra.gmra.mrb[0].mxu0 %vm671_vm1, %v659_v16  ;;  %2977 = vmatprep.subr.bf16.mxu1 %v3782_v0  ;;  %v2995_v54 = vpack.c.bf16 %v1281_v49, %v1277_v48  ;;  %v2998_v55 = vpack.c.bf16 %v1280_v51, %v1276_v50  ;;  %v1275_v2 = vld [vmem:[#allocation22 + $0x8] sm:$0xff]  ;;  %s2658_s4 = sshll.u32 %s4702_s14, 7  ;;  %s3628_s12 = scalar_lea.vmem %s3627_s6, 256 }
 0x19a   : > { %2973 = vmatpush3.bf16.msra.mxu0 %v2972_v17  ;;  %2789 = vmatprep.mubr.msk.f32.mxu0 %vm3783_vm0, %v3784_v1  ;;  %v1279_v3 = vld [vmem:[#allocation22 + $0x28] sm:$0x1]  ;;  %s4536_s13 = scalar_lea.hbm %s4703_s1, %s2658_s4 }
 0x19b   : > { %2974 = vmatprep.subr.bf16.mxu0 %v3782_v0  ;;  %2779 = vmatmul.mubr.msk.f32.vlgmr.msra.gmra.mrb[0].mxu1 %vm671_vm1, %v659_v16  ;;  %v2989_v6 = vpack.c.bf16 %v1279_v3, %v1275_v2 }
 0x19c   : > { %2800 = vmatprep.mubr.msk.f32.mxu1 %vm3783_vm0, %v3784_v1  ;;  %2979 = vmatpush3.bf16.msra.mxu1 %v2978_v23 }
 0x19d   : > { %2980 = vmatprep.subr.bf16.mxu1 %v3782_v0 }
 0x19e   : > { %2976 = vmatpush3.bf16.msra.mxu0 %v2975_v20 }
 0x19f   : > { %2983 = vmatprep.subr.bf16.mxu0 %v3782_v0 }
 0x1a0   : > { %2982 = vmatpush3.bf16.msra.mxu1 %v2981_v26 }
 0x1a1   : > { %2790 = vmatmul.mubr.msk.f32.vlgmr.msra.gmra.mrb[2].mxu0 %vm671_vm1, %v659_v16  ;;  %2986 = vmatprep.subr.bf16.mxu1 %v3782_v0 }
 0x1a2   : > { %2809 = vmatprep.mubr.msk.f32.mxu0 %vm3783_vm0, %v3784_v1  ;;  %2985 = vmatpush3.bf16.msra.mxu0 %v2984_v29 }
 0x1a3   : > { %2801 = vmatmul.mubr.msk.f32.vlgmr.msra.gmra.mrb[2].mxu1 %vm671_vm1, %v659_v16  ;;  %2807 = vmatprep.subr.mxu0 %v3784_v1 }
 0x1a4   : > { %2816 = vmatprep.mubr.msk.f32.mxu1 %vm3783_vm0, %v3784_v1 }
 0x1a6   : > { %2808 = vmatpush3.msk.msra.mxu0 %vm1097_vm2, %v1092_v30 }
 0x1a7   : > { %2997 = vmatprep.subr.msk.bf16.mxu0 %vm4316_vm8, %v2995_v54 }
 0x26c   : > { %v741_v32 = vpop.f32.mrb[0].mxu0 }
 0x26d   : > { %v742_v33 = vadd.f32 %v2639_v31, %v741_v32  ;;  %v2769_v34 = vpop.f32.mrb[1].mxu0 }
 0x26e   : > { %v825_v42 = vpop.f32.mrb[0].mxu1 }
 0x26f   : > { %vm745_vm3 = vcmp.gt.f32.partialorder %v742_v33, 0.0  ;;  %v746_v35 = vmul.f32 0.1, %v742_v33  ;;  %v2780_v43 = vpop.f32.mrb[1].mxu1  ;;  %v826_v46 = vadd.f32 %v2641_v45, %v825_v42 }
 0x271   : > { %v747_v36 = vsel %vm745_vm3, %v742_v33, %v746_v35  ;;  %vm829_vm6 = vcmp.gt.f32.partialorder %v826_v46, 0.0  ;;  %v830_v47 = vmul.f32 0.1, %v826_v46 }
 0x272   : > { %832 = vxpose.xlu0.b32.start.end [1/1] (short) (narrow) %v747_v36, 16 }
 0x273   : > { %v831_v52 = vsel %vm829_vm6, %v826_v46, %v830_v47  ;;  %v1274_v46 = vld [vmem:[#allocation22] sm:$0xff] }
 0x274   : > { %v999_v38 = vpop.f32.mrb[2].mxu0  ;;  %v1278_v47 = vld [vmem:[#allocation22 + $0x20] sm:$0x1] }
 0x275   : > { %v1000_v39 = vadd.f32 %v2643_v37, %v999_v38  ;;  %v2791_v40 = vpop.f32.mrb[3].mxu0  ;;  %v2992_v50 = vpack.c.bf16 %v1278_v47, %v1274_v46 }
 0x276   : > { %v1083_v57 = vpop.f32.mrb[2].mxu1 }
 0x277   : > { %vm1003_vm4 = vcmp.gt.f32.partialorder %v1000_v39, 0.0  ;;  %v1004_v41 = vmul.f32 0.1, %v1000_v39  ;;  %867 = vxpose.xlu0.b32.start.end [1/1] (short) %v831_v52, 128  ;;  %v1084_v58 = vadd.f32 %v2645_v56, %v1083_v57  ;;  %v2802_v59 = vpop.f32.mrb[3].mxu1  ;;  %v1247_v56 = vld [vmem:[%s553_s17] sm:$0x1] }
 0x278   : > { %vm1248_vm13 = vcmp.ne.s32.totalorder %v1247_v56, 0  ;;  %v3786_v59 = vmov 0   ;;  %s3622_s17 = scalar_lea.vmem %s2360_s7, 128 }
 0x279   : > { %v1005_v44 = vsel %vm1003_vm4, %v1000_v39, %v1004_v41  ;;  %vm1087_vm9 = vcmp.gt.f32.partialorder %v1084_v58, 0.0  ;;  %v1088_v60 = vmul.f32 0.1, %v1084_v58  ;;  %p3623_p12 = scmp.ne.s32.totalorder %s2360_s7, %s3622_s17  ;;  %p3630_p8 = scmp.lt.s32.totalorder %s3628_s12, %s3622_s17 }
 0x27a   : > { %2810 = vmatmul.mubr.msk.f32.vlgmr.msra.gmra.mrb[4].mxu0 %vm1093_vm5, %v1005_v44 }
 0x27b   : > { %1433 = vmatprep.mubr.f32.mxu0 %v3784_v1  ;;  %3000 = vmatpush1.bf16.msk.msra.mxu0 %vm4316_vm8, %v2998_v55  ;;  %v4325_v61 = vsel %vm1087_vm9, %v1084_v58, %v1088_v60  ;;  %v1250_v55 = vlaneseq  ;;  %v1249_v60 = vsel %vm1248_vm13, 1, %v3786_v59  ;;  %p3624_p2 = pnand %p3623_p12, %p4704_p1  ;;  %p3631_p3 = por %p3630_p8, %p3629_p5 }
 0x27c   : > { %3025 = vmatprep.subr.bf16.mxu0 %v3782_v0 }
 0x27d   : > { %v1251_v57 = vshrl.u32 %v1250_v55, 7  ;;  %p3625_p10 = pneg %p3624_p2 }
 0x27e   : > { %2655 = vmatmul.mubr.msk.f32.vlgmr.msra.gmra.mrb[6].mxu0 %vm1282_vm10, %v4325_v61 }
 0x27f   : > { %2886 = vmatprep.mubr.msk.f32.mxu0 %vm3783_vm0, %v3784_v1  ;;  %v4409_v58 = vsub.s32 0, %v1251_v57  ;;  %p3632_p11 = pnand %p3631_p3, %p3625_p10 }
 0x2f2   : > { %v848_v62 = vpop.trf.xlu0 }
 0x2f3   : > { %865 = vst.msk [vmem:[#allocation2] sm:$0xff] %vm864_vm11, %v848_v62 }
 0x2f6   : > { %v849_v63 = vpop.trf.xlu0 }
 0x2f7   : > { %866 = vst.msk [vmem:[#allocation2 + $0x8] sm:$0xff] %vm864_vm11, %v849_v63 }
 0x2fa   : > { %v1171_v4 = vld [vmem:[#allocation2] sm:$0xff]  ;;  %v883_v8 = vpop.trf.xlu0 }
 0x2fb   : > { %899 = vst.msk [vmem:[#allocation3] sm:$0xff] %vm864_vm11, %v883_v8 }
 0x2fe   : > { %v1172_v5 = vld [vmem:[#allocation2 + $0x8] sm:$0xff]  ;;  %v884_v9 = vpop.trf.xlu0 }
 0x2ff   : > { %v2987_v7 = vpack.c.bf16 %v1172_v5, %v1171_v4  ;;  %900 = vst.msk [vmem:[#allocation3 + $0x8] sm:$0xff] %vm864_vm11, %v884_v9 }
 0x301   : > { %2988 = vmatpush3.bf16.msra.mxu1 %v2987_v7 }
 0x302   : > { %2991 = vmatprep.subr.msk.bf16.mxu1 %vm4316_vm8, %v2989_v6  ;;  %v885_v10 = vpop.trf.xlu0  ;;  %v1258_v11 = vld [vmem:[#allocation3] sm:$0xff] }
 0x303   : > { %901 = vst.msk [vmem:[#allocation3 + $0x10] sm:$0xff] %vm864_vm11, %v885_v10 }
 0x306   : > { %v886_v12 = vpop.trf.xlu0  ;;  %v1259_v13 = vld [vmem:[#allocation3 + $0x8] sm:$0xff] }
 0x307   : > { %902 = vst.msk [vmem:[#allocation3 + $0x18] sm:$0xff] %vm864_vm11, %v886_v12  ;;  %v4339_v14 = vpack.c.bf16 %v1259_v13, %v1258_v11 }
 0x309   : > { %3027 = vmatpush3.bf16.msra.mxu0 %v4339_v14 }
 0x30a   : > { %v887_v15 = vpop.trf.xlu0  ;;  %3028 = vmatprep.subr.bf16.mxu0 %v3782_v0  ;;  %v1260_v16 = vld [vmem:[#allocation3 + $0x10] sm:$0xff] }
 0x30b   : > { %903 = vst.msk [vmem:[#allocation3 + $0x20] sm:$0xff] %vm864_vm11, %v887_v15 }
 0x30e   : > { %v888_v17 = vpop.trf.xlu0  ;;  %v1261_v18 = vld [vmem:[#allocation3 + $0x18] sm:$0xff] }
 0x30f   : > { %904 = vst.msk [vmem:[#allocation3 + $0x28] sm:$0xff] %vm864_vm11, %v888_v17  ;;  %v4345_v19 = vpack.c.bf16 %v1261_v18, %v1260_v16 }
 0x311   : > { %3030 = vmatpush3.bf16.msra.mxu0 %v4345_v19 }
 0x312   : > { %v889_v20 = vpop.trf.xlu0  ;;  %3031 = vmatprep.subr.bf16.mxu0 %v3782_v0  ;;  %v1262_v21 = vld [vmem:[#allocation3 + $0x20] sm:$0xff] }
 0x313   : > { %905 = vst.msk [vmem:[#allocation3 + $0x30] sm:$0xff] %vm864_vm11, %v889_v20 }
 0x316   : > { %v890_v22 = vpop.trf.xlu0  ;;  %v1263_v23 = vld [vmem:[#allocation3 + $0x28] sm:$0xff] }
 0x317   : > { %906 = vst.msk [vmem:[#allocation3 + $0x38] sm:$0xff] %vm864_vm11, %v890_v22  ;;  %v4351_v24 = vpack.c.bf16 %v1263_v23, %v1262_v21 }
 0x319   : > { %3033 = vmatpush3.bf16.msra.mxu0 %v4351_v24 }
 0x31a   : > { %v891_v25 = vpop.trf.xlu0  ;;  %3034 = vmatprep.subr.bf16.mxu0 %v3782_v0  ;;  %v1264_v26 = vld [vmem:[#allocation3 + $0x30] sm:$0xff] }
 0x31b   : > { %907 = vst.msk [vmem:[#allocation3 + $0x40] sm:$0xff] %vm864_vm11, %v891_v25 }
 0x31e   : > { %v892_v27 = vpop.trf.xlu0  ;;  %v1265_v28 = vld [vmem:[#allocation3 + $0x38] sm:$0xff] }
 0x31f   : > { %908 = vst.msk [vmem:[#allocation3 + $0x48] sm:$0xff] %vm864_vm11, %v892_v27  ;;  %v4357_v29 = vpack.c.bf16 %v1265_v28, %v1264_v26 }
 0x321   : > { %3036 = vmatpush3.bf16.msra.mxu0 %v4357_v29 }
 0x322   : > { %v893_v30 = vpop.trf.xlu0  ;;  %3037 = vmatprep.subr.bf16.mxu0 %v3782_v0  ;;  %v1266_v31 = vld [vmem:[#allocation3 + $0x40] sm:$0xff] }
 0x323   : > { %909 = vst.msk [vmem:[#allocation3 + $0x50] sm:$0xff] %vm864_vm11, %v893_v30 }
 0x326   : > { %v894_v32 = vpop.trf.xlu0  ;;  %v1267_v33 = vld [vmem:[#allocation3 + $0x48] sm:$0xff] }
 0x327   : > { %910 = vst.msk [vmem:[#allocation3 + $0x58] sm:$0xff] %vm864_vm11, %v894_v32  ;;  %v4363_v34 = vpack.c.bf16 %v1267_v33, %v1266_v31 }
 0x329   : > { %3039 = vmatpush3.bf16.msra.mxu0 %v4363_v34 }
 0x32a   : > { %v895_v35 = vpop.trf.xlu0  ;;  %3040 = vmatprep.subr.bf16.mxu0 %v3782_v0  ;;  %v1268_v36 = vld [vmem:[#allocation3 + $0x50] sm:$0xff] }
 0x32b   : > { %911 = vst.msk [vmem:[#allocation3 + $0x60] sm:$0xff] %vm864_vm11, %v895_v35 }
 0x32e   : > { %v896_v37 = vpop.trf.xlu0  ;;  %v1269_v38 = vld [vmem:[#allocation3 + $0x58] sm:$0xff] }
 0x32f   : > { %912 = vst.msk [vmem:[#allocation3 + $0x68] sm:$0xff] %vm864_vm11, %v896_v37  ;;  %v4369_v39 = vpack.c.bf16 %v1269_v38, %v1268_v36 }
 0x331   : > { %3042 = vmatpush3.bf16.msra.mxu0 %v4369_v39 }
 0x332   : > { %v897_v40 = vpop.trf.xlu0  ;;  %3043 = vmatprep.subr.bf16.mxu0 %v3782_v0  ;;  %v1270_v41 = vld [vmem:[#allocation3 + $0x60] sm:$0xff] }
 0x333   : > { %913 = vst.msk [vmem:[#allocation3 + $0x70] sm:$0xff] %vm864_vm11, %v897_v40 }
 0x336   : > { %v898_v42 = vpop.trf.xlu0  ;;  %v1271_v43 = vld [vmem:[#allocation3 + $0x68] sm:$0xff] }
 0x337   : > { %914 = vst.msk [vmem:[#allocation3 + $0x78] sm:$0xff] %vm864_vm11, %v898_v42  ;;  %v4375_v44 = vpack.c.bf16 %v1271_v43, %v1270_v41 }
 0x339   : > { %3045 = vmatpush3.bf16.msra.mxu0 %v4375_v44 }
 0x33a   : > { %3046 = vmatprep.subr.bf16.mxu0 %v3782_v0  ;;  %v1272_v45 = vld [vmem:[#allocation3 + $0x70] sm:$0xff] }
 0x33e   : > { %v1273_v48 = vld [vmem:[#allocation3 + $0x78] sm:$0xff] }
 0x33f   : > { %v4379_v49 = vpack.c.bf16 %v1273_v48, %v1272_v45 }
 0x341   : > { %3048 = vmatpush3.bf16.msra.mxu0 %v4379_v49 }
 0x342   : > { %3073 = vmatprep.subr.bf16.mxu0 %v3782_v0 }
 0x34d   : > { %v1167_v51 = vpop.f32.mrb[4].mxu0 }
 0x34e   : > { %v2811_v52 = vpop.f32.mrb[5].mxu0  ;;  %2817 = vmatmul.mubr.msk.f32.vlgmr.msra.gmra.mrb[4].mxu1 %vm1173_vm12, %v1167_v51 }
 0x34f   : > { %2994 = vmatpush1.bf16.msk.msra.mxu1 %vm4316_vm8, %v2992_v50  ;;  %1362 = vmatprep.mubr.f32.mxu1 %v3784_v1 }
 0x350   : > { %3001 = vmatprep.subr.bf16.mxu1 %v3782_v0 }
 0x351   : > { %v1435_v53 = vpop.f32.mrb[6].mxu0 }
 0x352   : > { %2652 = vmatmul.mubr.msk.f32.vlgmr.msra.gmra.mrb[6].mxu1 %vm1282_vm10, %v4325_v61  ;;  %v1437_v54 = vpop.f32.mrb[7].mxu0  ;;  %v1253_v61 = vrot.slane %v1249_v60, %v4409_v58 }
 0x353   : > { %3003 = vmatpush3.bf16.msra.mxu1 %v4339_v14  ;;  %2851 = vmatprep.mubr.msk.f32.mxu1 %vm3783_vm0, %v3784_v1 }
 0x354   : > { %3004 = vmatprep.subr.bf16.mxu1 %v3782_v0  ;;  %vm1254_vm14 = vcmp.eq.s32.totalorder %v1253_v61, 1 }
 0x357   : > { %3006 = vmatpush3.bf16.msra.mxu1 %v4345_v19 }
 0x358   : > { %3007 = vmatprep.subr.bf16.mxu1 %v3782_v0 }
 0x35b   : > { %3009 = vmatpush3.bf16.msra.mxu1 %v4351_v24 }
 0x35c   : > { %3010 = vmatprep.subr.bf16.mxu1 %v3782_v0 }
 0x35f   : > { %3012 = vmatpush3.bf16.msra.mxu1 %v4357_v29 }
 0x360   : > { %3013 = vmatprep.subr.bf16.mxu1 %v3782_v0 }
 0x363   : > { %3015 = vmatpush3.bf16.msra.mxu1 %v4363_v34 }
 0x364   : > { %3016 = vmatprep.subr.bf16.mxu1 %v3782_v0 }
 0x367   : > { %3018 = vmatpush3.bf16.msra.mxu1 %v4369_v39 }
 0x368   : > { %3019 = vmatprep.subr.bf16.mxu1 %v3782_v0 }
 0x36b   : > { %3021 = vmatpush3.bf16.msra.mxu1 %v4375_v44 }
 0x36c   : > { %3022 = vmatprep.subr.bf16.mxu1 %v3782_v0 }
 0x36f   : > { %3024 = vmatpush3.bf16.msra.mxu1 %v4379_v49 }
 0x370   : > { %3049 = vmatprep.subr.bf16.mxu1 %v3782_v0 }
 0x421   : > { %v1243_v62 = vpop.f32.mrb[4].mxu1 }
 0x422   : > { %v1255_v63 = vsel %vm1254_vm14, %v1243_v62, -inf  ;;  %v2818_v2 = vpop.f32.mrb[5].mxu1 }
 0x423   : > { %1257 = vst.msk [vmem:[%s4414_s16] sm:$0xff] %vm864_vm11, %v1255_v63 }
 0x425   : > { %v1364_v3 = vpop.f32.mrb[6].mxu1 }
 0x426   : > { %v1366_v4 = vpop.f32.mrb[7].mxu1  ;;  %2852 = vmatmul.mubr.f32.vlgmr.msra.gmra.mrb[8].mxu1 %v1364_v3 }
 0x427   : > { %3051 = vmatpush3.bf16.msra.mxu1 %v4339_v14  ;;  %2887 = vmatmul.mubr.f32.vlgmr.msra.gmra.mrb[8].mxu0 %v1366_v4 }
 0x428   : > { %3075 = vmatpush3.bf16.msra.mxu0 %v4339_v14  ;;  %3052 = vmatprep.subr.bf16.mxu1 %v3782_v0 }
 0x429   : > { %3076 = vmatprep.subr.bf16.mxu0 %v3782_v0  ;;  %2921 = vmatprep.mubr.msk.f32.mxu1 %vm3783_vm0, %v3784_v1 }
 0x42a   : > { %2956 = vmatprep.mubr.msk.f32.mxu0 %vm3783_vm0, %v3784_v1  ;;  %v3787_v1 = vmov 1966171168   ;;  %vm2065_vm0 = vcmask 1042432  }
 0x42b   : > { %3054 = vmatpush3.bf16.msra.mxu1 %v4345_v19  ;;  %v1723_v5 = vunpack.c.l.s4 %v3787_v1 }
 0x42c   : > { %3078 = vmatpush3.bf16.msra.mxu0 %v4345_v19  ;;  %3055 = vmatprep.subr.bf16.mxu1 %v3782_v0 }
 0x42d   : > { %3079 = vmatprep.subr.bf16.mxu0 %v3782_v0  ;;  %v1724_v6 = vunpack.c.0.s8 %v1723_v5 }
 0x42f   : > { %3057 = vmatpush3.bf16.msra.mxu1 %v4351_v24  ;;  %v4452_v7 = vsub.s32 %v1724_v6, %v1251_v57 }
 0x430   : > { %3081 = vmatpush3.bf16.msra.mxu0 %v4351_v24  ;;  %3058 = vmatprep.subr.bf16.mxu1 %v3782_v0 }
 0x431   : > { %3082 = vmatprep.subr.bf16.mxu0 %v3782_v0 }
 0x433   : > { %3060 = vmatpush3.bf16.msra.mxu1 %v4357_v29 }
 0x434   : > { %3084 = vmatpush3.bf16.msra.mxu0 %v4357_v29  ;;  %3061 = vmatprep.subr.bf16.mxu1 %v3782_v0 }
 0x435   : > { %3085 = vmatprep.subr.bf16.mxu0 %v3782_v0 }
 0x437   : > { %3063 = vmatpush3.bf16.msra.mxu1 %v4363_v34 }
 0x438   : > { %3087 = vmatpush3.bf16.msra.mxu0 %v4363_v34  ;;  %3064 = vmatprep.subr.bf16.mxu1 %v3782_v0 }
 0x439   : > { %3088 = vmatprep.subr.bf16.mxu0 %v3782_v0 }
 0x43b   : > { %3066 = vmatpush3.bf16.msra.mxu1 %v4369_v39 }
 0x43c   : > { %3090 = vmatpush3.bf16.msra.mxu0 %v4369_v39  ;;  %3067 = vmatprep.subr.bf16.mxu1 %v3782_v0 }
 0x43d   : > { %3091 = vmatprep.subr.bf16.mxu0 %v3782_v0 }
 0x43f   : > { %3069 = vmatpush3.bf16.msra.mxu1 %v4375_v44 }
 0x440   : > { %3093 = vmatpush3.bf16.msra.mxu0 %v4375_v44  ;;  %3070 = vmatprep.subr.bf16.mxu1 %v3782_v0 }
 0x441   : > { %3094 = vmatprep.subr.bf16.mxu0 %v3782_v0 }
 0x443   : > { %3072 = vmatpush3.bf16.msra.mxu1 %v4379_v49 }
 0x444   : > { %3096 = vmatpush3.bf16.msra.mxu0 %v4379_v49 }
 0x446   : > { %2922 = vmatmul.mubr.f32.vlgmr.msra.gmra.mrb[10].mxu1 %v1435_v53 }
 0x447   : > { %2957 = vmatmul.mubr.f32.vlgmr.msra.gmra.mrb[10].mxu0 %v1437_v54 }
 0x4f9   : > { %v1506_v8 = vpop.f32.mrb[8].mxu1 }
 0x4fa   : > { %v1721_v9 = vcombine.high %v1506_v8, %v1506_v8  ;;  %v1728_v10 = vrot.slane %v1506_v8, %v4452_v7  ;;  %v2853_v11 = vpop.f32.mrb[9].mxu1  ;;  %v1576_v12 = vpop.f32.mrb[8].mxu0 }
 0x4fb   : > { %v1779_v13 = vcombine.high %v1576_v12, %v1576_v12  ;;  %v1786_v0 = vrot.slane %v1576_v12, %v4452_v7  ;;  %v2888_v14 = vpop.f32.mrb[9].mxu0 }
 0x4fc   : > { %v1735_v15 = vrot.slane %v1721_v9, %v4452_v7  ;;  %v1736_v16 = vcombine.high %v1728_v10, %v1728_v10  ;;  %v1744_v17 = vrot.slane %v1728_v10, %v4452_v7 }
 0x4fd   : > { %v1793_v18 = vrot.slane %v1779_v13, %v4452_v7  ;;  %v1794_v19 = vcombine.high %v1786_v0, %v1786_v0  ;;  %v1802_v20 = vrot.slane %v1786_v0, %v4452_v7 }
 0x4fe   : > { %v1737_v21 = vcombine.high %v1735_v15, %v1735_v15  ;;  %v1758_v22 = vrot.slane %v1736_v16, %v4452_v7  ;;  %v1751_v27 = vrot.slane %v1735_v15, %v4452_v7  ;;  %v1766_v29 = vcombine.high %v1744_v17, %v1744_v17 }
 0x4ff   : > { %v1795_v23 = vcombine.high %v1793_v18, %v1793_v18  ;;  %v1809_v24 = vrot.slane %v1793_v18, %v4452_v7  ;;  %v1816_v25 = vrot.slane %v1794_v19, %v4452_v7  ;;  %v1824_v26 = vcombine.high %v1802_v20, %v1802_v20 }
 0x500   : > { %v1765_v28 = vrot.slane %v1737_v21, %v4452_v7  ;;  %v1931_v30 = vrot.slane %v1802_v20, %v4409_v58  ;;  %v1768_v35 = vcombine.high %v1758_v22, %v1758_v22  ;;  %v1767_v43 = vcombine.high %v1751_v27, %v1751_v27 }
 0x501   : > { %v1823_v31 = vrot.slane %v1795_v23, %v4452_v7  ;;  %v1825_v32 = vcombine.high %v1809_v24, %v1809_v24  ;;  %v1826_v33 = vcombine.high %v1816_v25, %v1816_v25  ;;  %v1935_v34 = vrot.slane %v1816_v25, %v4409_v58 }
 0x502   : > { %v1939_v36 = vrot.slane %v1824_v26, %v4409_v58  ;;  %v1947_v37 = vrot.slane %v1809_v24, %v4409_v58  ;;  %v2048_v38 = vsel %vm1097_vm2, %v1744_v17, %v1931_v30  ;;  %v1769_v49 = vcombine.high %v1765_v28, %v1765_v28 }
 0x503   : > { %v1827_v39 = vcombine.high %v1823_v31, %v1823_v31  ;;  %v2049_v40 = vsel %vm1097_vm2, %v1758_v22, %v1935_v34  ;;  %v1943_v41 = vrot.slane %v1826_v33, %v4409_v58  ;;  %v1951_v42 = vrot.slane %v1823_v31, %v4409_v58 }
 0x504   : > { %v2050_v44 = vsel %vm1097_vm2, %v1766_v29, %v1939_v36  ;;  %v2052_v45 = vsel %vm1097_vm2, %v1751_v27, %v1947_v37  ;;  %v1955_v46 = vrot.slane %v1825_v32, %v4409_v58 }
 0x505   : > { %v2051_v47 = vsel %vm1097_vm2, %v1768_v35, %v1943_v41  ;;  %v2053_v48 = vsel %vm1097_vm2, %v1765_v28, %v1951_v42  ;;  %v1959_v50 = vrot.slane %v1827_v39, %v4409_v58 }
 0x506   : > { %v4481_v51 = vsel %vm1097_vm2, %v1767_v43, %v1955_v46 }
 0x507   : > { %v4484_v52 = vsel %vm1097_vm2, %v1769_v49, %v1959_v50 }
 0x519   : > { %v1646_v53 = vpop.f32.mrb[10].mxu1 }
 0x51a   : > { %v1829_v54 = vcombine.high %v1646_v53, %v1646_v53  ;;  %v1836_v55 = vrot.slane %v1646_v53, %v4452_v7  ;;  %v2923_v56 = vpop.f32.mrb[11].mxu1  ;;  %v1716_v57 = vpop.f32.mrb[10].mxu0 }
 0x51b   : > { %v1879_v59 = vcombine.high %v1716_v57, %v1716_v57  ;;  %v1886_v60 = vrot.slane %v1716_v57, %v4452_v7  ;;  %v2958_v61 = vpop.f32.mrb[11].mxu0 }
 0x51c   : > { %v1843_v62 = vrot.slane %v1829_v54, %v4452_v7  ;;  %v1844_v63 = vcombine.high %v1836_v55, %v1836_v55  ;;  %v1852_v2 = vrot.slane %v1836_v55, %v4452_v7 }
 0x51d   : > { %v1893_v3 = vrot.slane %v1879_v59, %v4452_v7  ;;  %v1894_v4 = vcombine.high %v1886_v60, %v1886_v60  ;;  %v1902_v1 = vrot.slane %v1886_v60, %v4452_v7 }
 0x51e   : > { %v1845_v5 = vcombine.high %v1843_v62, %v1843_v62  ;;  %v1859_v6 = vrot.slane %v1843_v62, %v4452_v7  ;;  %v1866_v8 = vrot.slane %v1844_v63, %v4452_v7  ;;  %v1874_v9 = vcombine.high %v1852_v2, %v1852_v2 }
 0x51f   : > { %v1971_v10 = vrot.slane %v1852_v2, %v4409_v58  ;;  %v1895_v11 = vcombine.high %v1893_v3, %v1893_v3  ;;  %v1909_v12 = vrot.slane %v1893_v3, %v4452_v7  ;;  %v1916_v13 = vrot.slane %v1894_v4, %v4452_v7 }
 0x520   : > { %v1873_v0 = vrot.slane %v1845_v5, %v4452_v7  ;;  %v1875_v14 = vcombine.high %v1859_v6, %v1859_v6  ;;  %v1876_v15 = vcombine.high %v1866_v8, %v1866_v8  ;;  %v1924_v16 = vcombine.high %v1902_v1, %v1902_v1 }
 0x521   : > { %v2011_v17 = vrot.slane %v1902_v1, %v4409_v58  ;;  %v2057_v18 = vsel %vm2056_vm15, %v2048_v38, %v1971_v10  ;;  %v1975_v19 = vrot.slane %v1866_v8, %v4409_v58  ;;  %v2015_v20 = vrot.slane %v1916_v13, %v4409_v58 }
 0x522   : > { %v1926_v21 = vcombine.high %v1916_v13, %v1916_v13  ;;  %v1983_v22 = vrot.slane %v1876_v15, %v4409_v58  ;;  %v1979_v23 = vrot.slane %v1874_v9, %v4409_v58  ;;  %v2019_v24 = vrot.slane %v1924_v16, %v4409_v58 }
 0x523   : > { %v2066_v25 = vsel %vm2065_vm0, %v2057_v18, %v2011_v17  ;;  %v2058_v26 = vsel %vm2056_vm15, %v2049_v40, %v1975_v19  ;;  %v1987_v27 = vrot.slane %v1859_v6, %v4409_v58  ;;  %v2027_v28 = vrot.slane %v1909_v12, %v4409_v58 }
 0x524   : > { %2074 = vxpose.xlu1.b32.start.end [1/1] (short) (narrow) %v2066_v25, 8  ;;  %v2067_v29 = vsel %vm2065_vm0, %v2058_v26, %v2015_v20  ;;  %v2023_v30 = vrot.slane %v1926_v21, %v4409_v58  ;;  %v2060_v31 = vsel %vm2056_vm15, %v2051_v47, %v1983_v22  ;;  %v2059_v32 = vsel %vm2056_vm15, %v2050_v44, %v1979_v23 }
 0x525   : > { %v2068_v33 = vsel %vm2065_vm0, %v2059_v32, %v2019_v24  ;;  %v2061_v34 = vsel %vm2056_vm15, %v2052_v45, %v1987_v27  ;;  %v1923_v35 = vrot.slane %v1895_v11, %v4452_v7  ;;  %v1991_v36 = vrot.slane %v1873_v0, %v4409_v58 }
 0x526   : > { %v2069_v37 = vsel %vm2065_vm0, %v2060_v31, %v2023_v30  ;;  %v2070_v38 = vsel %vm2065_vm0, %v2061_v34, %v2027_v28  ;;  %v1925_v39 = vcombine.high %v1909_v12, %v1909_v12  ;;  %v1995_v40 = vrot.slane %v1875_v14, %v4409_v58 }
 0x527   : > { %2170 = vxpose.xlu0.b32.start.end [1/1] (short) (narrow) %v2069_v37, 8  ;;  %v2031_v41 = vrot.slane %v1923_v35, %v4409_v58  ;;  %v2062_v42 = vsel %vm2056_vm15, %v2053_v48, %v1991_v36  ;;  %v1877_v43 = vcombine.high %v1873_v0, %v1873_v0  ;;  %v1927_v44 = vcombine.high %v1923_v35, %v1923_v35 }
 0x528   : > { %2106 = vxpose.xlu1.b32.start.end [1/1] (short) (narrow) %v2067_v29, 8  ;;  %v2035_v7 = vrot.slane %v1925_v39, %v4409_v58  ;;  %v2063_v45 = vsel %vm2056_vm15, %v4481_v51, %v1995_v40 }
 0x529   : > { %v2071_v46 = vsel %vm2065_vm0, %v2062_v42, %v2031_v41  ;;  %v1999_v47 = vrot.slane %v1877_v43, %v4409_v58  ;;  %v2039_v49 = vrot.slane %v1927_v44, %v4409_v58 }
 0x52a   : > { %v2072_v48 = vsel %vm2065_vm0, %v2063_v45, %v2035_v7 }
 0x52b   : > { %v2064_v50 = vsel %vm2056_vm15, %v4484_v52, %v1999_v47 }
 0x52c   : > { %2138 = vxpose.xlu1.b32.start.end [1/1] (short) (narrow) %v2068_v33, 8  ;;  %v2073_v53 = vsel %vm2065_vm0, %v2064_v50, %v2039_v49 }
 0x530   : > { %2202 = vxpose.xlu1.b32.start.end [1/1] (short) (narrow) %v2070_v38, 8 }
 0x534   : > { %2234 = vxpose.xlu1.b32.start.end [1/1] (short) (narrow) %v2071_v46, 8 }
 0x538   : > { %2266 = vxpose.xlu1.b32.start.end [1/1] (short) (narrow) %v2072_v48, 8 }
 0x53c   : > { %2298 = vxpose.xlu1.b32.start.end [1/1] (short) (narrow) %v2073_v53, 8 }
 0x53d   : > { %3635 = shalt.err (!%p3632_p11)
}
 0x53e   : > { %s3636_s18 = scalar_lea.hbm %s4536_s13, 128  ;;  %s3640_s4 = scalar_lea.hbm %s4703_s1, 256 }
 0x53f   : > { %p3637_p6 = scmp.ne.s32.totalorder %s4536_s13, %s3636_s18  ;;  %p3641_p9 = scmp.lt.u32.totalorder %s4536_s13, %s4703_s1 }
 0x540   : > { %p3642_p0 = scmp.lt.u32.totalorder %s3640_s4, %s3636_s18  ;;  %p3644_p12 = scmp.lt.u32.totalorder %s3636_s18, %s4536_s13 }
 0x541   : > { %p3638_p13 = pnand %p3637_p6, %p4704_p1 }
 0x542   : > { %p3643_p7 = por %p3642_p0, %p3641_p9 }
 0x543   : > { %p3639_p4 = pneg %p3638_p13 }
 0x544   : > { %p3645_p2 = por %p3644_p12, %p3643_p7 }
 0x546   : > { %p3646_p10 = pnand %p3645_p2, %p3639_p4 }
 0x548   : > { %3649 = shalt.err (!%p3646_p10)
}
 0x549   : > { %3141 = dma.vmem_to_hbm [thread:$0]  (%p4704_p1), %s2360_s7, 128, %s4536_s13, %s2340_s28   ;;  %vm2330_vm1 = vcmask 31744  }
 0x54a   : > { %s2638_s17 = sshll.u32 %s4243_s21, 6  ;;  %s2663_s7 = sshll.u32 %s4702_s14, 10 }
 0x54b   : > { %s653_s23 = scalar_lea.vmem [#allocation25], %s2638_s17  ;;  %s4705_s12 = sld [smem:[#allocation49_spill]] }
 0x54c   : > { %s2374_s13 = sshll.u32 %s653_s23, 4  ;;  %s2345_s3 = scalar_lea.sflag [#allocation26], %s4243_s21  ;;  %s4565_s13 = int_to_ptr.vmem [resolvable:$true] %s2374_s13 }
 0x54d   : > { %s3650_s16 = scalar_lea.vmem %s4565_s13, 1024  ;;  %s3789_s14 = smov [#allocation25]  }
 0x54e   : > { %p3651_p5 = scmp.ne.s32.totalorder %s4565_s13, %s3650_s16  ;;  %s3654_s4 = sshll.u32 %s3789_s14, 4  ;;  %s3655_s4 = int_to_ptr.vmem [resolvable:$false] %s3654_s4 }
 0x54f   : > { %s3656_s5 = scalar_lea.vmem %s3655_s4, 2048  ;;  %p3657_p11 = scmp.lt.s32.totalorder %s4565_s13, %s3655_s4 }
 0x550   : > { %p3652_p8 = pnand %p3651_p5, %p4704_p1  ;;  %p3658_p6 = scmp.lt.s32.totalorder %s3656_s5, %s3650_s16 }
 0x551   : > { %s4571_s18 = scalar_lea.hbm %s4705_s12, %s2663_s7 }
 0x552   : > { %p3653_p3 = pneg %p3652_p8  ;;  %p3659_p13 = por %p3658_p6, %p3657_p11 }
 0x554   : > { %p3660_p4 = pnand %p3659_p13, %p3653_p3 }
 0x5a4   : > { %v2090_v58 = vpop.trf.xlu1 }
 0x5a5   : > { %2331 = vst.msk [vmem:[%s653_s23] sm:$0xff] %vm2330_vm1, %v2090_v58 }
 0x5a7   : > { %v2186_v51 = vpop.trf.xlu0 }
 0x5a8   : > { %v2122_v52 = vpop.trf.xlu1  ;;  %2334 = vst.msk [vmem:[%s653_s23 + $0x18] sm:$0xff] %vm2330_vm1, %v2186_v51 }
 0x5a9   : > { %2332 = vst.msk [vmem:[%s653_s23 + $0x8] sm:$0xff] %vm2330_vm1, %v2122_v52 }
 0x5ac   : > { %v2154_v54 = vpop.trf.xlu1 }
 0x5ad   : > { %2333 = vst.msk [vmem:[%s653_s23 + $0x10] sm:$0xff] %vm2330_vm1, %v2154_v54 }
 0x5b0   : > { %v2218_v55 = vpop.trf.xlu1 }
 0x5b1   : > { %2335 = vst.msk [vmem:[%s653_s23 + $0x20] sm:$0xff] %vm2330_vm1, %v2218_v55 }
 0x5b4   : > { %v2250_v56 = vpop.trf.xlu1 }
 0x5b5   : > { %2336 = vst.msk [vmem:[%s653_s23 + $0x28] sm:$0xff] %vm2330_vm1, %v2250_v56 }
 0x5b8   : > { %v2282_v57 = vpop.trf.xlu1 }
 0x5b9   : > { %2337 = vst.msk [vmem:[%s653_s23 + $0x30] sm:$0xff] %vm2330_vm1, %v2282_v57 }
 0x5bc   : > { %v2314_v59 = vpop.trf.xlu1 }
 0x5bd   : > { %2338 = vst.msk [vmem:[%s653_s23 + $0x38] sm:$0xff] %vm2330_vm1, %v2314_v59 }
 0x5be   : > { %3663 = shalt.err (!%p3660_p4)
}
 0x5bf   : > { %s3664_s19 = scalar_lea.hbm %s4571_s18, 1024  ;;  %s3668_s7 = scalar_lea.hbm %s4705_s12, 2048 }
 0x5c0   : > { %p3665_p9 = scmp.ne.s32.totalorder %s4571_s18, %s3664_s19  ;;  %p3669_p12 = scmp.lt.u32.totalorder %s4571_s18, %s4705_s12 }
 0x5c1   : > { %p3670_p2 = scmp.lt.u32.totalorder %s3668_s7, %s3664_s19  ;;  %p3672_p5 = scmp.lt.u32.totalorder %s3664_s19, %s4571_s18 }
 0x5c2   : > { %p3666_p0 = pnand %p3665_p9, %p4704_p1 }
 0x5c3   : > { %p3671_p10 = por %p3670_p2, %p3669_p12 }
 0x5c4   : > { %p3667_p7 = pneg %p3666_p0 }
 0x5c5   : > { %p3673_p8 = por %p3672_p5, %p3671_p10 }
 0x5c7   : > { %p3674_p3 = pnand %p3673_p8, %p3667_p7 }
 0x5c9   : > { %3677 = shalt.err (!%p3674_p3)
}
 0x5ca   : > { %s3790_s16 = smov 128   ;;  %s3791_s14 = smov 8  }
 0x5cb   : > { %3142 = dma.vmem_to_hbm [thread:$0]  (%p4704_p1), %s4565_s13, 1024, %s4571_s18, %s2345_s3, %s3790_s16, %s3790_s16, %s3791_s14  }
 0x5cc PF: > { %s2389_s4 = sand.u32 1, %s3744_s25   ;;  %p4706_p11 = scmp.ne.s32.totalorder %s4678_s24, 0 }
 0x5cd   : > { %p4707_p6 = scmp.ge.s32.totalorder %s3764_s30, 2  ;;  %s2390_s5 = scalar_lea.sflag [#allocation6], %s2389_s4 }
 0x5cf   : > { %p3184_p13 = pnand %p4707_p6, %p4706_p11 }
 0x5d1   : > { %3735 = dma.done.wait (!%p3184_p13), %s2390_s5, 128  }
 0x5d2   : > { %3737 = vsyncadd (!%p3184_p13), %s2390_s5, 4294967168  ;;  %s2399_s19 = scalar_lea.sflag [#allocation26], %s2389_s4 }
 0x5d3   : > { %3739 = dma.done.wait (!%p3184_p13), %s2399_s19, 1024  }
 0x5d4   : > { %3741 = vsyncadd (!%p3184_p13), %s2399_s19, 4294966272  ;;  %s41_s30 = sadd.s32 1, %s3764_s30   ;;  %s4708_s25 = smov %s3748_s26 }
 0x5d5   : > { %p38_p4 = scmp.ge.s32.totalorder %s41_s30, 4   ;;  %s4709_s26 = smov %s3752_s27 }
 0x5d6   : > { %s4710_s27 = smov %s4158_s22  ;;  %s4711_s28 = smov %s3760_s29 }
 0x5d7   : > { %s4712_s29 = smov %s4714_s2  ;;  %40 = sbr.rel (!%p38_p4) target bundleno = 26 (0x1a), region = 188 }
 0x5de   :  { %2404 = vsyncpa [#allocation5], 1 }
 0x5df   :  { %2406 = vsyncpa [#allocation5 + $0x1], 1 }
 0x5e0   :  { %2407 = vsyncpa [#allocation8], 1 }
 0x5e1   :  { %2409 = vsyncpa [#allocation8 + $0x1], 1 }
 0x5e2   :  { %2410 = vsyncpa [#allocation11], 1 }
 0x5e3   :  { %2411 = vsyncpa [#allocation14], 1 }
 0x5e4   :  { %2412 = vsyncpa [#allocation17], 1 }
 0x5e5   :  { %2413 = vsyncpa [#allocation20], 1 }
 0x5e6   :  { %2414 = vsyncpa [#allocation23], 1 }
 0x5e7   :  { %2415 = vsyncpa [#allocation6], 1 }
 0x5e8   :  { %2417 = vsyncpa [#allocation6 + $0x1], 1 }
 0x5e9   :  { %2418 = vsyncpa [#allocation26], 1 }
 0x5ea   :  { %2420 = vsyncpa [#allocation26 + $0x1], 1 }

// kernel: tpu_custom_call.1
= control target key start
LH: loop header
LB: loop body
LE: loop exit
PB: predicated region body
PF: predicated region fallthrough
CT: control target
= control target key end

     0   :  { %s4621_s0 = inlined_call_operand.hbm [shape: s32[2,1,8], index: 0, kind: input, shape index: {}]   ;;  %s4622_s1 = inlined_call_operand.hbm [shape: f32[2,8,32], index: 1, kind: input, shape index: {}]   ;;  %s4623_s2 = inlined_call_operand.hbm [shape: f32[32,17], index: 2, kind: input, shape index: {}]   ;;  %s4624_s3 = inlined_call_operand.hbm [shape: f32[1,17], index: 3, kind: input, shape index: {}]   ;;  %s4625_s4 = inlined_call_operand.hbm [shape: f32[32,16], index: 4, kind: input, shape index: {}]   ;;  %s4626_s5 = inlined_call_operand.hbm [shape: f32[1,16], index: 5, kind: input, shape index: {}]   ;;  %s4627_s6 = inlined_call_operand.hbm [shape: f32[32,9], index: 6, kind: input, shape index: {}]   ;;  %s4628_s7 = inlined_call_operand.hbm [shape: f32[1,9], index: 7, kind: input, shape index: {}]   ;;  %s4629_s8 = inlined_call_operand.hbm [shape: f32[32,128], index: 8, kind: input, shape index: {}]   ;;  %s4630_s9 = inlined_call_operand.hbm [shape: f32[1,128], index: 9, kind: input, shape index: {}]   ;;  %s4631_s10 = inlined_call_operand.hbm [shape: f32[17,16], index: 10, kind: input, shape index: {}]   ;;  %s4632_s11 = inlined_call_operand.hbm [shape: f32[9,512], index: 11, kind: input, shape index: {}]   ;;  %s4633_s12 = inlined_call_operand.hbm [shape: f32[2,8,8], index: 12, kind: output, shape index: {0}]   ;;  %s4634_s13 = inlined_call_operand.hbm [shape: f32[2,8,8,4], index: 13, kind: output, shape index: {1}]  }
   0x1   :  { %4650 = sst [smem:[#allocation40_spill]] %s4621_s0 }
   0x2   :  { %4651 = sst [smem:[#allocation41_spill]] %s4622_s1 }
   0x3   :  { %4652 = sst [smem:[#allocation42_spill]] %s4623_s2 }
   0x4   :  { %4653 = sst [smem:[#allocation43_spill]] %s4624_s3 }
   0x5   :  { %4654 = sst [smem:[#allocation44_spill]] %s4625_s4 }
   0x6   :  { %4655 = sst [smem:[#allocation45_spill]] %s4626_s5 }
   0x7   :  { %4656 = sst [smem:[#allocation46_spill]] %s4627_s6 }
   0x8   :  { %4657 = sst [smem:[#allocation47_spill]] %s4628_s7 }
   0x9   :  { %4658 = sst [smem:[#allocation48_spill]] %s4633_s12 }
   0xa   :  { %4659 = sst [smem:[#allocation49_spill]] %s4634_s13 }
   0xb   :  { %19 = vsyncpa [#allocation5], 0 }
   0xc   :  { %21 = vsyncpa [#allocation5 + $0x1], 0 }
   0xd   :  { %22 = vsyncpa [#allocation8], 0 }
   0xe   :  { %24 = vsyncpa [#allocation8 + $0x1], 0 }
   0xf   :  { %25 = vsyncpa [#allocation11], 0 }
  0x10   :  { %26 = vsyncpa [#allocation14], 0 }
  0x11   :  { %27 = vsyncpa [#allocation17], 0 }
  0x12   :  { %28 = vsyncpa [#allocation20], 0 }
  0x13   :  { %29 = vsyncpa [#allocation23], 0 }
  0x14   :  { %30 = vsyncpa [#allocation6], 0 }
  0x15   :  { %32 = vsyncpa [#allocation6 + $0x1], 0 }
  0x16   :  { %33 = vsyncpa [#allocation26], 0 }
  0x17   :  { %35 = vsyncpa [#allocation26 + $0x1], 0  ;;  %s3862_s25 = smov 0   ;;  %s3864_s26 = smov 0  }
  0x18   :  { %s3866_s27 = smov 0   ;;  %s3868_s28 = smov 0  }
  0x19   :  { %s3870_s29 = smov 0   ;;  %s3872_s30 = smov 0  }
  0x1a LB: > { %4660 = sst [smem:[#allocation37_spill]] %s3756_s28  ;;  %s3893_s14 = sadd.s32 4294967295, %s3764_s30   ;;  %s3764_s30 = sphi %s3872_s30, %s41_s30   ;;  %s3760_s29 = sphi %s3870_s29, %s4712_s29   ;;  %s3756_s28 = sphi %s3868_s28, %s4711_s28   ;;  %s3752_s27 = sphi %s3866_s27, %s4710_s27   ;;  %s3748_s26 = sphi %s3864_s26, %s4709_s26   ;;  %s3744_s25 = sphi %s3862_s25, %s4708_s25  }
  0x1b   : > { %4661 = sst [smem:[#allocation38_spill]] %s3893_s14  ;;  %p2610_p0 = scmp.ge.s32.totalorder %s3764_s30, 1 }
  0x1c   : > { %p4644_p1 = scmp.eq.s32.totalorder %s3893_s14, 0  ;;  %p376_p2 = scmp.lt.s32.totalorder %s3764_s30, 3 }
  0x1d   : > { %s3766_s16 = smov [#allocation9]   ;;  %s3767_s19 = smov [#allocation10]  }
  0x1e   : > { %p3898_p3 = pnand %p2610_p0, %p376_p2  ;;  %s388_s17 = sshll.u32 %s3766_s16, 4  ;;  %s3902_s17 = int_to_ptr.vmem [resolvable:$true] %s388_s17 }
  0x1f   : > { %s402_s20 = sshll.u32 %s3767_s19, 4  ;;  %s3768_s21 = smov [#allocation13]   ;;  %s3913_s20 = int_to_ptr.vmem [resolvable:$true] %s402_s20 }
  0x20   : > { %s4662_s15 = scalar_select %p3898_p3, 1, 0 }
  0x21   : > { %p3145_p4 = pneg %p3898_p3  ;;  %s3915_s22 = sshll.u32 %s3768_s21, 4  ;;  %s427_s22 = int_to_ptr.vmem [resolvable:$true] %s3915_s22 }
  0x22   : > { %4663 = sst [smem:[#allocation39_spill]] %s4662_s15  ;;  %s4665_s2 = sld [smem:[#allocation42_spill]] }
  0x23   : > { %p3909_p6 = pnand %p3145_p4, %p4644_p1 }
  0x25   : > { %p3925_p8 = pneg %p3909_p6 }
  0x28   : > { %s3282_s16 = scalar_lea.hbm %s4665_s2, 512 }
  0x29   : > { %p3283_p7 = scmp.ne.s32.totalorder %s4665_s2, %s3282_s16  ;;  %p3289_p11 = scmp.lt.u32.totalorder %s3282_s16, %s4665_s2 }
  0x2b   : > { %p3285_p9 = pnand %p3925_p8, %p3283_p7 }
  0x2d   : > { %p3286_p10 = pneg %p3285_p9 }
  0x2f   : > { %p3291_p12 = pnand %p3289_p11, %p3286_p10 }
  0x31   : > { %3294 = shalt.err (!%p3291_p12)
}
  0x32   : > { %s3295_s12 = scalar_lea.vmem %s3902_s17, 512  ;;  %p3303_p4 = scmp.lt.s32.totalorder %s3902_s17, %s3902_s17 }
  0x33   : > { %p3296_p13 = scmp.ne.s32.totalorder %s3902_s17, %s3295_s12  ;;  %p3304_p5 = scmp.lt.s32.totalorder %s3295_s12, %s3295_s12 }
  0x35   : > { %p3298_p0 = pnand %p3296_p13, %p3925_p8  ;;  %p3305_p7 = por %p3304_p5, %p3303_p4 }
  0x37   : > { %p3299_p2 = pneg %p3298_p0 }
  0x39   : > { %p3306_p9 = pnand %p3305_p7, %p3299_p2 }
  0x3b   : > { %3309 = shalt.err (!%p3306_p9)
}
  0x3c   : > { %s4646_s13 = smov 128   ;;  %s3770_s23 = smov 8  }
  0x3d   : > { %3148 = dma.hbm_to_vmem [thread:$0]  (!%p3909_p6), %s4665_s2, 512, %s3902_s17, [#allocation8], %s4646_s13, %s4646_s13, %s3770_s23  }
  0x3e   : > { %s4667_s3 = sld [smem:[#allocation43_spill]] }
  0x44   : > { %s3310_s12 = scalar_lea.hbm %s4667_s3, 16 }
  0x45   : > { %p3311_p5 = scmp.ne.s32.totalorder %s4667_s3, %s3310_s12  ;;  %p3317_p12 = scmp.lt.u32.totalorder %s3310_s12, %s4667_s3 }
  0x47   : > { %p3313_p10 = pnand %p3311_p5, %p3925_p8 }
  0x49   : > { %p3314_p11 = pneg %p3313_p10 }
  0x4b   : > { %p3319_p13 = pnand %p3317_p12, %p3314_p11 }
  0x4d   : > { %3322 = shalt.err (!%p3319_p13)
}
  0x4e   : > { %s3323_s17 = scalar_lea.vmem %s3913_s20, 16  ;;  %s3330_s1 = scalar_lea.vmem %s3913_s20, 32 }
  0x4f   : > { %p3324_p0 = scmp.ne.s32.totalorder %s3913_s20, %s3323_s17  ;;  %p3331_p7 = scmp.lt.s32.totalorder %s3913_s20, %s3913_s20 }
  0x50   : > { %p3332_p9 = scmp.lt.s32.totalorder %s3330_s1, %s3323_s17 }
  0x51   : > { %p3326_p2 = pnand %p3324_p0, %p3925_p8 }
  0x52   : > { %p3333_p5 = por %p3332_p9, %p3331_p7 }
  0x53   : > { %p3327_p4 = pneg %p3326_p2 }
  0x55   : > { %p3334_p10 = pnand %p3333_p5, %p3327_p4 }
  0x57   : > { %3337 = shalt.err (!%p3334_p10)
}
  0x58   : > { %3151 = dma.hbm_to_vmem [thread:$0]  (!%p3909_p6), %s4667_s3, 16, %s3913_s20, [#allocation11]  }
  0x59   : > { %s4668_s5 = sld [smem:[#allocation45_spill]] }
  0x5f   : > { %s3338_s16 = scalar_lea.hbm %s4668_s5, 16 }
  0x60   : > { %p3339_p11 = scmp.ne.s32.totalorder %s4668_s5, %s3338_s16  ;;  %p3345_p0 = scmp.lt.u32.totalorder %s3338_s16, %s4668_s5 }
  0x62   : > { %p3341_p12 = pnand %p3339_p11, %p3925_p8 }
  0x64   : > { %p3342_p13 = pneg %p3341_p12 }
  0x66   : > { %p3347_p2 = pnand %p3345_p0, %p3342_p13 }
  0x68   : > { %3350 = shalt.err (!%p3347_p2)
}
  0x69   : > { %s3351_s1 = scalar_lea.vmem %s427_s22, 16  ;;  %s3358_s20 = scalar_lea.vmem %s427_s22, 32 }
  0x6a   : > { %p3352_p4 = scmp.ne.s32.totalorder %s427_s22, %s3351_s1  ;;  %p3359_p5 = scmp.lt.s32.totalorder %s427_s22, %s427_s22 }
  0x6b   : > { %p3360_p10 = scmp.lt.s32.totalorder %s3358_s20, %s3351_s1 }
  0x6c   : > { %p3354_p7 = pnand %p3352_p4, %p3925_p8 }
  0x6d   : > { %p3361_p1 = por %p3360_p10, %p3359_p5 }
  0x6e   : > { %p3355_p9 = pneg %p3354_p7 }
  0x70   : > { %p3362_p3 = pnand %p3361_p1, %p3355_p9 }
  0x72   : > { %3365 = shalt.err (!%p3362_p3)
}
  0x73   : > { %3157 = dma.hbm_to_vmem [thread:$0]  (!%p3909_p6), %s4668_s5, 16, %s427_s22, [#allocation14]  }
  0x74   : > { %s3771_s15 = smov [#allocation16]   ;;  %s3772_s16 = smov [#allocation19]  }
  0x75   : > { %s450_s24 = sshll.u32 %s3771_s15, 4  ;;  %s474_s19 = sshll.u32 %s3772_s16, 4  ;;  %s451_s24 = int_to_ptr.vmem [resolvable:$true] %s450_s24  ;;  %s475_s19 = int_to_ptr.vmem [resolvable:$true] %s474_s19 }
  0x76   : > { %s4669_s7 = sld [smem:[#allocation47_spill]] }
  0x7c   : > { %s3366_s17 = scalar_lea.hbm %s4669_s7, 16 }
  0x7d   : > { %p3367_p1 = scmp.ne.s32.totalorder %s4669_s7, %s3366_s17  ;;  %p3373_p12 = scmp.lt.u32.totalorder %s3366_s17, %s4669_s7 }
  0x7f   : > { %p3369_p3 = pnand %p3367_p1, %p3925_p8 }
  0x81   : > { %p3370_p11 = pneg %p3369_p3 }
  0x83   : > { %p3375_p13 = pnand %p3373_p12, %p3370_p11 }
  0x85   : > { %3378 = shalt.err (!%p3375_p13)
}
  0x86   : > { %s3379_s22 = scalar_lea.vmem %s451_s24, 16  ;;  %s3386_s14 = scalar_lea.vmem %s451_s24, 32 }
  0x87   : > { %p3380_p0 = scmp.ne.s32.totalorder %s451_s24, %s3379_s22  ;;  %p3387_p7 = scmp.lt.s32.totalorder %s451_s24, %s451_s24 }
  0x88   : > { %p3388_p9 = scmp.lt.s32.totalorder %s3386_s14, %s3379_s22 }
  0x89   : > { %p3382_p2 = pnand %p3380_p0, %p3925_p8 }
  0x8a   : > { %p3389_p5 = por %p3388_p9, %p3387_p7 }
  0x8b   : > { %p3383_p4 = pneg %p3382_p2 }
  0x8d   : > { %p3390_p10 = pnand %p3389_p5, %p3383_p4 }
  0x8f   : > { %3393 = shalt.err (!%p3390_p10)
}
  0x90   : > { %3163 = dma.hbm_to_vmem [thread:$0]  (!%p3909_p6), %s4669_s7, 16, %s451_s24, [#allocation17]  }
  0x91   : > { %s3394_s12 = scalar_lea.hbm %s4630_s9, 16 }
  0x92   : > { %p3395_p1 = scmp.ne.s32.totalorder %s4630_s9, %s3394_s12  ;;  %p3401_p12 = scmp.lt.u32.totalorder %s3394_s12, %s4630_s9 }
  0x94   : > { %p3397_p3 = pnand %p3395_p1, %p3925_p8 }
  0x96   : > { %p3398_p11 = pneg %p3397_p3 }
  0x98   : > { %p3403_p13 = pnand %p3401_p12, %p3398_p11 }
  0x9a   : > { %3406 = shalt.err (!%p3403_p13)
}
  0x9b   : > { %s3407_s22 = scalar_lea.vmem %s475_s19, 16  ;;  %s3414_s24 = scalar_lea.vmem %s475_s19, 32 }
  0x9c   : > { %p3408_p0 = scmp.ne.s32.totalorder %s475_s19, %s3407_s22  ;;  %p3415_p7 = scmp.lt.s32.totalorder %s475_s19, %s475_s19 }
  0x9d   : > { %p3416_p9 = scmp.lt.s32.totalorder %s3414_s24, %s3407_s22 }
  0x9e   : > { %p3410_p2 = pnand %p3408_p0, %p3925_p8 }
  0x9f   : > { %p3417_p5 = por %p3416_p9, %p3415_p7 }
  0xa0   : > { %p3411_p4 = pneg %p3410_p2 }
  0xa2   : > { %p3418_p10 = pnand %p3417_p5, %p3411_p4 }
  0xa4   : > { %3421 = shalt.err (!%p3418_p10)
}
  0xa5   : > { %3169 = dma.hbm_to_vmem [thread:$0]  (!%p3909_p6), %s4630_s9, 16, %s475_s19, [#allocation20]  }
  0xa6   : > { %s3773_s16 = smov [#allocation12]   ;;  %s3774_s21 = smov [#allocation15]  }
  0xa7   : > { %s412_s13 = sshll.u32 %s3773_s16, 4  ;;  %s436_s12 = sshll.u32 %s3774_s21, 4  ;;  %s413_s13 = int_to_ptr.vmem [resolvable:$true] %s412_s13  ;;  %s437_s12 = int_to_ptr.vmem [resolvable:$true] %s436_s12 }
  0xa8   : > { %s4670_s4 = sld [smem:[#allocation44_spill]] }
  0xae   : > { %s3422_s20 = scalar_lea.hbm %s4670_s4, 512 }
  0xaf   : > { %p3423_p1 = scmp.ne.s32.totalorder %s4670_s4, %s3422_s20  ;;  %p3429_p12 = scmp.lt.u32.totalorder %s3422_s20, %s4670_s4 }
  0xb1   : > { %p3425_p3 = pnand %p3423_p1, %p3925_p8 }
  0xb3   : > { %p3426_p11 = pneg %p3425_p3 }
  0xb5   : > { %p3431_p13 = pnand %p3429_p12, %p3426_p11 }
  0xb7   : > { %3434 = shalt.err (!%p3431_p13)
}
  0xb8   : > { %s3435_s19 = scalar_lea.vmem %s413_s13, 512  ;;  %p3443_p7 = scmp.lt.s32.totalorder %s413_s13, %s413_s13 }
  0xb9   : > { %p3436_p0 = scmp.ne.s32.totalorder %s413_s13, %s3435_s19  ;;  %p3444_p9 = scmp.lt.s32.totalorder %s3435_s19, %s3435_s19 }
  0xbb   : > { %p3438_p2 = pnand %p3436_p0, %p3925_p8  ;;  %p3445_p5 = por %p3444_p9, %p3443_p7 }
  0xbd   : > { %p3439_p4 = pneg %p3438_p2 }
  0xbf   : > { %p3446_p10 = pnand %p3445_p5, %p3439_p4 }
  0xc1   : > { %3449 = shalt.err (!%p3446_p10)
}
  0xc2   : > { %s4671_s15 = smov 128   ;;  %s4672_s6 = sld [smem:[#allocation46_spill]] }
  0xc3   : > { %3154 = dma.hbm_to_vmem [thread:$0]  (!%p3909_p6), %s4670_s4, 512, %s413_s13, [#allocation11], %s4671_s15, %s4671_s15, %s3770_s23  }
  0xc8   : > { %s3450_s20 = scalar_lea.hbm %s4672_s6, 512 }
  0xc9   : > { %p3451_p1 = scmp.ne.s32.totalorder %s4672_s6, %s3450_s20  ;;  %p3457_p12 = scmp.lt.u32.totalorder %s3450_s20, %s4672_s6 }
  0xcb   : > { %p3453_p3 = pnand %p3451_p1, %p3925_p8 }
  0xcd   : > { %p3454_p11 = pneg %p3453_p3 }
  0xcf   : > { %p3459_p13 = pnand %p3457_p12, %p3454_p11 }
  0xd1   : > { %3462 = shalt.err (!%p3459_p13)
}
  0xd2   : > { %s3463_s19 = scalar_lea.vmem %s437_s12, 512  ;;  %p3471_p7 = scmp.lt.s32.totalorder %s437_s12, %s437_s12 }
  0xd3   : > { %p3464_p0 = scmp.ne.s32.totalorder %s437_s12, %s3463_s19  ;;  %p3472_p9 = scmp.lt.s32.totalorder %s3463_s19, %s3463_s19 }
  0xd5   : > { %p3466_p2 = pnand %p3464_p0, %p3925_p8  ;;  %p3473_p5 = por %p3472_p9, %p3471_p7 }
  0xd7   : > { %p3467_p4 = pneg %p3466_p2 }
  0xd9   : > { %p3474_p10 = pnand %p3473_p5, %p3467_p4 }
  0xdb   : > { %3477 = shalt.err (!%p3474_p10)
}
  0xdc   : > { %3160 = dma.hbm_to_vmem [thread:$0]  (!%p3909_p6), %s4672_s6, 512, %s437_s12, [#allocation14], %s4671_s15, %s4671_s15, %s3770_s23  }
  0xdd   : > { %s3775_s21 = smov [#allocation18]   ;;  %s3776_s1 = smov [#allocation21]  }
  0xde   : > { %s460_s17 = sshll.u32 %s3775_s21, 4  ;;  %s484_s20 = sshll.u32 %s3776_s1, 4  ;;  %s461_s17 = int_to_ptr.vmem [resolvable:$true] %s460_s17  ;;  %s485_s20 = int_to_ptr.vmem [resolvable:$true] %s484_s20 }
  0xdf   : > { %s3478_s24 = scalar_lea.hbm %s4629_s8, 512 }
  0xe0   : > { %p3479_p1 = scmp.ne.s32.totalorder %s4629_s8, %s3478_s24  ;;  %p3485_p12 = scmp.lt.u32.totalorder %s3478_s24, %s4629_s8 }
  0xe2   : > { %p3481_p3 = pnand %p3479_p1, %p3925_p8 }
  0xe4   : > { %p3482_p11 = pneg %p3481_p3 }
  0xe6   : > { %p3487_p13 = pnand %p3485_p12, %p3482_p11 }
  0xe8   : > { %3490 = shalt.err (!%p3487_p13)
}
  0xe9   : > { %s3491_s12 = scalar_lea.vmem %s461_s17, 512  ;;  %p3499_p7 = scmp.lt.s32.totalorder %s461_s17, %s461_s17 }
  0xea   : > { %p3492_p0 = scmp.ne.s32.totalorder %s461_s17, %s3491_s12  ;;  %p3500_p9 = scmp.lt.s32.totalorder %s3491_s12, %s3491_s12 }
  0xec   : > { %p3494_p2 = pnand %p3492_p0, %p3925_p8  ;;  %p3501_p5 = por %p3500_p9, %p3499_p7 }
  0xee   : > { %p3495_p4 = pneg %p3494_p2 }
  0xf0   : > { %p3502_p10 = pnand %p3501_p5, %p3495_p4 }
  0xf2   : > { %3505 = shalt.err (!%p3502_p10)
}
  0xf3   : > { %3166 = dma.hbm_to_vmem [thread:$0]  (!%p3909_p6), %s4629_s8, 512, %s461_s17, [#allocation17], %s4671_s15, %s4671_s15, %s3770_s23  }
  0xf4   : > { %s3506_s0 = scalar_lea.hbm %s4631_s10, 384 }
  0xf5   : > { %p3507_p1 = scmp.ne.s32.totalorder %s4631_s10, %s3506_s0  ;;  %p3513_p12 = scmp.lt.u32.totalorder %s3506_s0, %s4631_s10 }
  0xf7   : > { %p3509_p3 = pnand %p3507_p1, %p3925_p8 }
  0xf9   : > { %p3510_p11 = pneg %p3509_p3 }
  0xfb   : > { %p3515_p13 = pnand %p3513_p12, %p3510_p11 }
  0xfd   : > { %3518 = shalt.err (!%p3515_p13)
}
  0xfe   : > { %s3519_s13 = scalar_lea.vmem %s485_s20, 384  ;;  %p3527_p7 = scmp.lt.s32.totalorder %s485_s20, %s485_s20 }
  0xff   : > { %p3520_p0 = scmp.ne.s32.totalorder %s485_s20, %s3519_s13  ;;  %p3528_p9 = scmp.lt.s32.totalorder %s3519_s13, %s3519_s13 }
 0x101   : > { %p3522_p2 = pnand %p3520_p0, %p3925_p8  ;;  %p3529_p5 = por %p3528_p9, %p3527_p7 }
 0x103   : > { %p3523_p4 = pneg %p3522_p2 }
 0x105   : > { %p3530_p10 = pnand %p3529_p5, %p3523_p4 }
 0x107   : > { %3533 = shalt.err (!%p3530_p10)
}
 0x108   : > { %3172 = dma.hbm_to_vmem [thread:$0]  (!%p3909_p6), %s4631_s10, 384, %s485_s20, [#allocation20], %s4671_s15, %s4671_s15, %s3770_s23  }
 0x109   : > { %s3777_s2 = smov [#allocation22]   ;;  %s3534_s0 = scalar_lea.hbm %s4632_s11, 1024 }
 0x10a   : > { %s497_s16 = sshll.u32 %s3777_s2, 4  ;;  %p3535_p1 = scmp.ne.s32.totalorder %s4632_s11, %s3534_s0  ;;  %s498_s16 = int_to_ptr.vmem [resolvable:$true] %s497_s16 }
 0x10b   : > { %p3541_p12 = scmp.lt.u32.totalorder %s3534_s0, %s4632_s11 }
 0x10c   : > { %p3537_p3 = pnand %p3535_p1, %p3925_p8 }
 0x10e   : > { %p3538_p11 = pneg %p3537_p3 }
 0x110   : > { %p3543_p13 = pnand %p3541_p12, %p3538_p11 }
 0x112   : > { %3546 = shalt.err (!%p3543_p13)
}
 0x113   : > { %s3547_s23 = scalar_lea.vmem %s498_s16, 1024  ;;  %p3555_p7 = scmp.lt.s32.totalorder %s498_s16, %s498_s16 }
 0x114   : > { %p3548_p0 = scmp.ne.s32.totalorder %s498_s16, %s3547_s23  ;;  %p3556_p9 = scmp.lt.s32.totalorder %s3547_s23, %s3547_s23 }
 0x116   : > { %p3550_p2 = pnand %p3548_p0, %p3925_p8  ;;  %p3557_p5 = por %p3556_p9, %p3555_p7 }
 0x118   : > { %p3551_p4 = pneg %p3550_p2 }
 0x11a   : > { %p3558_p10 = pnand %p3557_p5, %p3551_p4 }
 0x11c   : > { %3561 = shalt.err (!%p3558_p10)
}
 0x11d   : > { %s3778_s15 = smov 512   ;;  %s4673_s20 = sld [smem:[#allocation38_spill]] }
 0x11e   : > { %s3779_s28 = smov 32   ;;  %s2609_s12 = sadd.s32 4294967294, %s3764_s30  }
 0x11f   : > { %3175 = dma.hbm_to_vmem [thread:$0]  (!%p3909_p6), %s4632_s11, 1024, %s498_s16, [#allocation23], %s3778_s15, %s3778_s15, %s3779_s28  }
 0x120   : > { %s53_s2 = sadd.s32 1, %s3760_s29  ;;  %s60_s21 = sadd.s32 1, %s3752_s27 }
 0x121   : > { %p55_p8 = scmp.ge.s32.totalorder %s53_s2, 2  ;;  %p67_p1 = scmp.ne.s32.totalorder %s3752_s27, %s3748_s26 }
 0x122   : > { %p68_p3 = scmp.eq.s32.totalorder %s3764_s30, 0  ;;  %p73_p12 = scmp.ne.s32.totalorder %s3748_s26, %s3744_s25 }
 0x123   : > { %s4714_s2 = smov (%p55_p8, %s53_s2), 0  ;;  %p335_p6 = scmp.eq.s32.totalorder %s4673_s20, 1 }
 0x124   : > { %p4138_p11 = por %p68_p3, %p67_p1  ;;  %s57_s18 = ssub.s32 %s3760_s29, %s4714_s2 }
 0x125   : > { %p58_p13 = scmp.eq.s32.totalorder %s57_s18, 0  ;;  %p4675_p0 = scmp.eq.s32.totalorder %s4673_s20, 0 }
 0x126   : > { %p4153_p4 = por %p335_p6, %p67_p1  ;;  %p341_p7 = scmp.eq.s32.totalorder %s2609_s12, 1 }
 0x127   : > { %p4149_p2 = por %p4675_p0, %p73_p12  ;;  %p3200_p5 = scmp.lt.s32.totalorder %s3764_s30, 2 }
 0x128   : > { %s4677_s0 = scalar_select %p4153_p4, 1, 0 }
 0x129   : > { %s4676_s16 = scalar_select %p4149_p2, 1, 0 }
 0x12a   : > { %s4158_s22 = scalar_select %p58_p13, %s3752_s27, %s60_s21  }
 0x12b   : > { %p4160_p9 = por %p341_p7, %p73_p12  ;;  %s4166_s14 = sand.u32 1, %s3752_s27  }
 0x12c   : > { %s2622_s19 = sshll.u32 %s3760_s29, 4  ;;  %s4679_s20 = sld [smem:[#allocation40_spill]] }
 0x12d   : > { %s4678_s24 = scalar_select %p4160_p9, 1, 0 }
 0x12e   : > { %s514_s13 = scalar_lea.vmem [#allocation4], %s4166_s14  ;;  %p4179_p10 = pnand %p3200_p5, %p4138_p11 }
 0x12f   : > { %s521_s17 = sshll.u32 %s514_s13, 4  ;;  %s512_s23 = scalar_lea.sflag [#allocation5], %s4166_s14  ;;  %s4175_s17 = int_to_ptr.vmem [resolvable:$true] %s521_s17 }
 0x130   : > { %p3564_p1 = pneg %p4179_p10 }
 0x132   : > { %s4172_s28 = scalar_lea.hbm %s4679_s20, %s2622_s19  ;;  %s3567_s1 = scalar_lea.hbm %s4679_s20, 32 }
 0x133   : > { %s3562_s19 = scalar_lea.hbm %s4172_s28, 16  ;;  %p3568_p11 = scmp.lt.u32.totalorder %s4172_s28, %s4679_s20 }
 0x134   : > { %p3563_p8 = scmp.ne.s32.totalorder %s4172_s28, %s3562_s19  ;;  %p3569_p6 = scmp.lt.u32.totalorder %s3567_s1, %s3562_s19 }
 0x135   : > { %p3571_p0 = scmp.lt.u32.totalorder %s3562_s19, %s4172_s28 }
 0x136   : > { %p3565_p3 = pnand %p3564_p1, %p3563_p8  ;;  %p3570_p13 = por %p3569_p6, %p3568_p11 }
 0x138   : > { %p3566_p12 = pneg %p3565_p3  ;;  %p3572_p7 = por %p3571_p0, %p3570_p13 }
 0x13a   : > { %p3573_p5 = pnand %p3572_p7, %p3566_p12 }
 0x13c   : > { %3576 = shalt.err (!%p3573_p5)
}
 0x13d   : > { %s3577_s21 = scalar_lea.vmem %s4175_s17, 16  ;;  %s3780_s15 = smov [#allocation4]  }
 0x13e   : > { %p3578_p8 = scmp.ne.s32.totalorder %s4175_s17, %s3577_s21  ;;  %s3582_s13 = sshll.u32 %s3780_s15, 4  ;;  %s3583_s13 = int_to_ptr.vmem [resolvable:$false] %s3582_s13 }
 0x13f   : > { %s3584_s3 = scalar_lea.vmem %s3583_s13, 32  ;;  %p3585_p4 = scmp.lt.s32.totalorder %s4175_s17, %s3583_s13 }
 0x140   : > { %p3580_p3 = pnand %p3578_p8, %p3564_p1  ;;  %p3586_p11 = scmp.lt.s32.totalorder %s3584_s3, %s3577_s21 }
 0x142   : > { %p3581_p9 = pneg %p3580_p3  ;;  %p3587_p6 = por %p3586_p11, %p3585_p4 }
 0x144   : > { %p3588_p13 = pnand %p3587_p6, %p3581_p9 }
 0x146   : > { %3591 = shalt.err (!%p3588_p13)
}
 0x147   : > { %3179 = dma.hbm_to_vmem [thread:$0]  (!%p4179_p10), %s4172_s28, 16, %s4175_s17, %s512_s23  }
 0x148   : > { %s2624_s4 = sshll.u32 %s3760_s29, 7  ;;  %s4681_s15 = sld [smem:[#allocation41_spill]] }
 0x149   : > { %s4682_s13 = sshll.u32 %s4166_s14, 3  ;;  %s4683_s5 = sand.u32 1, %s3764_s30  }
 0x14a   : > { %s532_s21 = scalar_lea.vmem [#allocation7], %s4682_s13  ;;  %s529_s6 = scalar_lea.sflag [#allocation8], %s4683_s5 }
 0x14b   : > { %s539_s3 = sshll.u32 %s532_s21, 4  ;;  %s540_s3 = int_to_ptr.vmem [resolvable:$true] %s539_s3 }
 0x14e   : > { %s4215_s18 = scalar_lea.hbm %s4681_s15, %s2624_s4  ;;  %s3597_s23 = scalar_lea.hbm %s4681_s15, 256 }
 0x14f   : > { %s3592_s7 = scalar_lea.hbm %s4215_s18, 128  ;;  %p3598_p0 = scmp.lt.u32.totalorder %s4215_s18, %s4681_s15 }
 0x150   : > { %p3593_p4 = scmp.ne.s32.totalorder %s4215_s18, %s3592_s7  ;;  %p3599_p7 = scmp.lt.u32.totalorder %s3597_s23, %s3592_s7 }
 0x151   : > { %p3601_p8 = scmp.lt.u32.totalorder %s3592_s7, %s4215_s18 }
 0x152   : > { %p3595_p9 = pnand %p3593_p4, %p3564_p1  ;;  %p3600_p5 = por %p3599_p7, %p3598_p0 }
 0x154   : > { %p3596_p12 = pneg %p3595_p9  ;;  %p3602_p3 = por %p3601_p8, %p3600_p5 }
 0x156   : > { %p3603_p11 = pnand %p3602_p3, %p3596_p12 }
 0x158   : > { %3606 = shalt.err (!%p3603_p11)
}
 0x159   : > { %s3607_s5 = scalar_lea.vmem %s540_s3, 128  ;;  %s3781_s19 = smov [#allocation7]  }
 0x15a   : > { %p3608_p6 = scmp.ne.s32.totalorder %s540_s3, %s3607_s5  ;;  %s3612_s1 = sshll.u32 %s3781_s19, 4  ;;  %s3613_s1 = int_to_ptr.vmem [resolvable:$false] %s3612_s1 }
 0x15b   : > { %s3614_s13 = scalar_lea.vmem %s3613_s1, 256  ;;  %p3615_p9 = scmp.lt.s32.totalorder %s540_s3, %s3613_s1 }
 0x15c   : > { %p3610_p13 = pnand %p3608_p6, %p3564_p1  ;;  %p3616_p2 = scmp.lt.s32.totalorder %s3614_s13, %s3607_s5 }
 0x15e   : > { %p3611_p4 = pneg %p3610_p13  ;;  %p3617_p0 = por %p3616_p2, %p3615_p9 }
 0x160   : > { %p3618_p7 = pnand %p3617_p0, %p3611_p4 }
 0x162   : > { %3621 = shalt.err (!%p3618_p7)
}
 0x163   : > { %3182 = dma.hbm_to_vmem [thread:$0]  (!%p4179_p10), %s4215_s18, 128, %s540_s3, %s529_s6  }
 0x164   : > { %s4684_s7 = sld [smem:[#allocation39_spill]] }
 0x16a   : > { %p4685_p12 = scmp.ne.s32.totalorder %s4684_s7, 0 }
 0x16b   : > { %s4243_s21 = sand.u32 (!%p4685_p12), 1, %s3748_s26   ;;  %p4686_p1 = scmp.ne.s32.totalorder (!%p4685_p12), %s4676_s16, 0 }
 0x16c   : > { %548 = sbr.rel (%p4685_p12) target bundleno = 1484 (0x5cc), region = 68  ;;  %s551_s28 = scalar_lea.sflag (!%p4685_p12), [#allocation5], %s4243_s21 }
 0x16d   : > { %s553_s17 = scalar_lea.vmem (!%p4685_p12), [#allocation4], %s4243_s21 }
 0x173   : > { %3703 = dma.done.wait (%p4686_p1), %s551_s28, 16  }
 0x174   : > { %3705 = vsyncadd (%p4686_p1), %s551_s28, 4294967280  ;;  %s4687_s23 = sld [smem:[#allocation38_spill]]  ;;  %s2626_s12 = sshll.u32 %s4243_s21, 3 }
 0x175   : > { %s4255_s3 = scalar_lea.vmem [#allocation7], %s2626_s12 }
 0x17a   : > { %s558_s6 = sand.u32 1, %s4687_s23  }
 0x17b   : > { %s559_s18 = scalar_lea.sflag [#allocation8], %s558_s6 }
 0x17c   : > { %3707 = dma.done.wait (%p4686_p1), %s559_s18, 128  }
 0x17d   : > { %3709 = vsyncadd (%p4686_p1), %s559_s18, 4294967168  ;;  %p4688_p2 = scmp.eq.s32.totalorder %s4687_s23, 0 }
 0x17f   : > { %3711 = dma.done.wait (%p4688_p2), [#allocation8], 512   ;;  %p4689_p10 = pmov %p4688_p2 }
 0x180   : > { %p4690_p5 = pmov %p4688_p2 }
 0x181   : > { %3713 = vsyncadd (%p4689_p10), [#allocation8], 4294966784 }
 0x182   : > { %3715 = dma.done.wait (%p4690_p5), [#allocation11], 528   ;;  %p4691_p8 = pmov %p4688_p2 }
 0x183   : > { %p4692_p3 = pmov %p4688_p2 }
 0x184   : > { %3717 = vsyncadd (%p4691_p8), [#allocation11], 4294966768 }
 0x185   : > { %3719 = dma.done.wait (%p4692_p3), [#allocation14], 528   ;;  %p4693_p11 = pmov %p4688_p2 }
 0x186   : > { %p4694_p6 = pmov %p4688_p2 }
 0x187   : > { %3721 = vsyncadd (%p4693_p11), [#allocation14], 4294966768 }
 0x188   : > { %3723 = dma.done.wait (%p4694_p6), [#allocation17], 528   ;;  %p4695_p13 = pmov %p4688_p2 }
 0x189   : > { %p4696_p4 = pmov %p4688_p2 }
 0x18a   : > { %3725 = vsyncadd (%p4695_p13), [#allocation17], 4294966768 }
 0x18b   : > { %3727 = dma.done.wait (%p4696_p4), [#allocation20], 400   ;;  %p4697_p9 = pmov %p4688_p2 }
 0x18c   : > { %p4698_p0 = pmov %p4688_p2 }
 0x18d   : > { %3729 = vsyncadd (%p4697_p9), [#allocation20], 4294966896 }
 0x18e   : > { %3731 = dma.done.wait (%p4698_p0), [#allocation23], 1024   ;;  %p4699_p7 = pmov %p4698_p0 }
 0x18f   : > { %v3782_v0 = vmov 0.0|0.0   ;;  %vm3783_vm0 = vmmov 0   ;;  %v3784_v1 = vmov 0.0   ;;  %v660_v2 = vld [vmem:[#allocation12] sm:$0xff]  ;;  %v661_v3 = vld [vmem:[#allocation12 + $0x8] sm:$0xff]  ;;  %v662_v4 = vld [vmem:[#allocation12 + $0x10] sm:$0xff] }
 0x190   : > { %3733 = vsyncadd (%p4699_p7), [#allocation23], 4294966272  ;;  %2959 = vmatprep.subr.bf16.mxu0 %v3782_v0  ;;  %2767 = vmatprep.mubr.msk.f32.mxu0 %vm3783_vm0, %v3784_v1  ;;  %v2960_v5 = vpack.c.bf16 %v661_v3, %v660_v2  ;;  %v663_v6 = vld [vmem:[#allocation12 + $0x18] sm:$0xff]  ;;  %v748_v8 = vld [vmem:[#allocation18] sm:$0xff]  ;;  %vm671_vm1 = vcmask 261120   ;;  %vm1097_vm2 = vcmask 1040384  }
 0x191   : > { %2965 = vmatprep.subr.bf16.mxu1 %v3782_v0  ;;  %2778 = vmatprep.mubr.msk.f32.mxu1 %vm3783_vm0, %v3784_v1  ;;  %v2963_v7 = vpack.c.bf16 %v663_v6, %v662_v4  ;;  %v749_v9 = vld [vmem:[#allocation18 + $0x8] sm:$0xff]  ;;  %v750_v10 = vld [vmem:[#allocation18 + $0x10] sm:$0xff]  ;;  %v918_v11 = vld [vmem:[#allocation9] sm:$0xff]  ;;  %vm1093_vm5 = vcmask 138240   ;;  %vm3785_vm7 = vmmov 1   ;;  %vm1282_vm10 = vcmask 72704  }
 0x192   : > { %2961 = vmatpush3.bf16.msra.mxu0 %v2960_v5  ;;  %v919_v12 = vld [vmem:[#allocation9 + $0x8] sm:$0xff]  ;;  %v2966_v13 = vpack.c.bf16 %v749_v9, %v748_v8  ;;  %v751_v14 = vld [vmem:[#allocation18 + $0x18] sm:$0xff]  ;;  %v920_v18 = vld [vmem:[#allocation9 + $0x10] sm:$0xff]  ;;  %vm864_vm11 = vcmask 64512   ;;  %vm1173_vm12 = vcmask 130048   ;;  %s4414_s16 = scalar_lea.vmem [#allocation24], %s2626_s12 }
 0x193   : > { %2962 = vmatprep.subr.bf16.mxu0 %v3782_v0  ;;  %v2969_v15 = vpack.c.bf16 %v751_v14, %v750_v10  ;;  %v659_v16 = vld [vmem:[%s4255_s3] sm:$0xff]  ;;  %v2972_v17 = vpack.c.bf16 %v919_v12, %v918_v11  ;;  %v1006_v21 = vld [vmem:[#allocation15] sm:$0xff]  ;;  %v2639_v31 = vld [vmem:[#allocation13] ss:$0 sm:$0xff]  ;;  %vm2056_vm15 = vcmask 1041408   ;;  %s4702_s14 = sld [smem:[#allocation37_spill]] }
 0x194   : > { %2967 = vmatpush3.bf16.msra.mxu1 %v2966_v13  ;;  %v921_v19 = vld [vmem:[#allocation9 + $0x18] sm:$0xff]  ;;  %v1007_v22 = vld [vmem:[#allocation15 + $0x8] sm:$0xff]  ;;  %v2643_v37 = vld [vmem:[#allocation10] ss:$0 sm:$0xff]  ;;  %s4703_s1 = sld [smem:[#allocation48_spill]]  ;;  %s2359_s7 = sshll.u32 %s4414_s16, 4  ;;  %s2360_s7 = int_to_ptr.vmem [resolvable:$true] %s2359_s7 }
 0x195   : > { %2968 = vmatprep.subr.bf16.mxu1 %v3782_v0  ;;  %v2975_v20 = vpack.c.bf16 %v921_v19, %v920_v18  ;;  %v2978_v23 = vpack.c.bf16 %v1007_v22, %v1006_v21  ;;  %v1008_v24 = vld [vmem:[#allocation15 + $0x10] sm:$0xff]  ;;  %v1009_v25 = vld [vmem:[#allocation15 + $0x18] sm:$0xff]  ;;  %v1090_v27 = vld [vmem:[#allocation21] sm:$0xff]  ;;  %s2340_s28 = scalar_lea.sflag [#allocation6], %s4243_s21  ;;  %p4704_p1 = scmp.ne.s32.totalorder %s4677_s0, 0 }
 0x196   : > { %2964 = vmatpush3.bf16.msra.mxu0 %v2963_v7  ;;  %v2981_v26 = vpack.c.bf16 %v1009_v25, %v1008_v24  ;;  %v1091_v28 = vld [vmem:[#allocation21 + $0x8] sm:$0xff]  ;;  %v1092_v30 = vld [vmem:[#allocation21 + $0x10] sm:$0x1]  ;;  %v2641_v45 = vld [vmem:[#allocation19] ss:$0 sm:$0xff]  ;;  %s3788_s23 = smov [#allocation24]  }
 0x197   : > { %2971 = vmatprep.subr.bf16.mxu0 %v3782_v0  ;;  %v2984_v29 = vpack.c.bf16 %v1091_v28, %v1090_v27  ;;  %v1277_v48 = vld [vmem:[#allocation22 + $0x18] sm:$0xff]  ;;  %v1276_v50 = vld [vmem:[#allocation22 + $0x10] sm:$0xff]  ;;  %vm4316_vm8 = vmpackc.low %vm1097_vm2, %vm3785_vm7  ;;  %s3626_s6 = sshll.u32 %s3788_s23, 4  ;;  %s3627_s6 = int_to_ptr.vmem [resolvable:$false] %s3626_s6 }
 0x198   : > { %2970 = vmatpush3.bf16.msra.mxu1 %v2969_v15  ;;  %v1281_v49 = vld [vmem:[#allocation22 + $0x38] sm:$0x1]  ;;  %v1280_v51 = vld [vmem:[#allocation22 + $0x30] sm:$0x1]  ;;  %v2645_v56 = vld [vmem:[#allocation16] ss:$0 sm:$0xff]  ;;  %p3629_p5 = scmp.lt.s32.totalorder %s2360_s7, %s3627_s6 }
 0x199   : > { %2768 = vmatmul.mubr.msk.f32.vlgmr.msra.gmra.mrb[0].mxu0 %vm671_vm1, %v659_v16  ;;  %2977 = vmatprep.subr.bf16.mxu1 %v3782_v0  ;;  %v2995_v54 = vpack.c.bf16 %v1281_v49, %v1277_v48  ;;  %v2998_v55 = vpack.c.bf16 %v1280_v51, %v1276_v50  ;;  %v1275_v2 = vld [vmem:[#allocation22 + $0x8] sm:$0xff]  ;;  %s2658_s4 = sshll.u32 %s4702_s14, 7  ;;  %s3628_s12 = scalar_lea.vmem %s3627_s6, 256 }
 0x19a   : > { %2973 = vmatpush3.bf16.msra.mxu0 %v2972_v17  ;;  %2789 = vmatprep.mubr.msk.f32.mxu0 %vm3783_vm0, %v3784_v1  ;;  %v1279_v3 = vld [vmem:[#allocation22 + $0x28] sm:$0x1]  ;;  %s4536_s13 = scalar_lea.hbm %s4703_s1, %s2658_s4 }
 0x19b   : > { %2974 = vmatprep.subr.bf16.mxu0 %v3782_v0  ;;  %2779 = vmatmul.mubr.msk.f32.vlgmr.msra.gmra.mrb[0].mxu1 %vm671_vm1, %v659_v16  ;;  %v2989_v6 = vpack.c.bf16 %v1279_v3, %v1275_v2 }
 0x19c   : > { %2800 = vmatprep.mubr.msk.f32.mxu1 %vm3783_vm0, %v3784_v1  ;;  %2979 = vmatpush3.bf16.msra.mxu1 %v2978_v23 }
 0x19d   : > { %2980 = vmatprep.subr.bf16.mxu1 %v3782_v0 }
 0x19e   : > { %2976 = vmatpush3.bf16.msra.mxu0 %v2975_v20 }
 0x19f   : > { %2983 = vmatprep.subr.bf16.mxu0 %v3782_v0 }
 0x1a0   : > { %2982 = vmatpush3.bf16.msra.mxu1 %v2981_v26 }
 0x1a1   : > { %2790 = vmatmul.mubr.msk.f32.vlgmr.msra.gmra.mrb[2].mxu0 %vm671_vm1, %v659_v16  ;;  %2986 = vmatprep.subr.bf16.mxu1 %v3782_v0 }
 0x1a2   : > { %2809 = vmatprep.mubr.msk.f32.mxu0 %vm3783_vm0, %v3784_v1  ;;  %2985 = vmatpush3.bf16.msra.mxu0 %v2984_v29 }
 0x1a3   : > { %2801 = vmatmul.mubr.msk.f32.vlgmr.msra.gmra.mrb[2].mxu1 %vm671_vm1, %v659_v16  ;;  %2807 = vmatprep.subr.mxu0 %v3784_v1 }
 0x1a4   : > { %2816 = vmatprep.mubr.msk.f32.mxu1 %vm3783_vm0, %v3784_v1 }
 0x1a6   : > { %2808 = vmatpush3.msk.msra.mxu0 %vm1097_vm2, %v1092_v30 }
 0x1a7   : > { %2997 = vmatprep.subr.msk.bf16.mxu0 %vm4316_vm8, %v2995_v54 }
 0x26c   : > { %v741_v32 = vpop.f32.mrb[0].mxu0 }
 0x26d   : > { %v742_v33 = vadd.f32 %v2639_v31, %v741_v32  ;;  %v2769_v34 = vpop.f32.mrb[1].mxu0 }
 0x26e   : > { %v825_v42 = vpop.f32.mrb[0].mxu1 }
 0x26f   : > { %vm745_vm3 = vcmp.gt.f32.partialorder %v742_v33, 0.0  ;;  %v746_v35 = vmul.f32 0.1, %v742_v33  ;;  %v2780_v43 = vpop.f32.mrb[1].mxu1  ;;  %v826_v46 = vadd.f32 %v2641_v45, %v825_v42 }
 0x271   : > { %v747_v36 = vsel %vm745_vm3, %v742_v33, %v746_v35  ;;  %vm829_vm6 = vcmp.gt.f32.partialorder %v826_v46, 0.0  ;;  %v830_v47 = vmul.f32 0.1, %v826_v46 }
 0x272   : > { %832 = vxpose.xlu0.b32.start.end [1/1] (short) (narrow) %v747_v36, 16 }
 0x273   : > { %v831_v52 = vsel %vm829_vm6, %v826_v46, %v830_v47  ;;  %v1274_v46 = vld [vmem:[#allocation22] sm:$0xff] }
 0x274   : > { %v999_v38 = vpop.f32.mrb[2].mxu0  ;;  %v1278_v47 = vld [vmem:[#allocation22 + $0x20] sm:$0x1] }
 0x275   : > { %v1000_v39 = vadd.f32 %v2643_v37, %v999_v38  ;;  %v2791_v40 = vpop.f32.mrb[3].mxu0  ;;  %v2992_v50 = vpack.c.bf16 %v1278_v47, %v1274_v46 }
 0x276   : > { %v1083_v57 = vpop.f32.mrb[2].mxu1 }
 0x277   : > { %vm1003_vm4 = vcmp.gt.f32.partialorder %v1000_v39, 0.0  ;;  %v1004_v41 = vmul.f32 0.1, %v1000_v39  ;;  %867 = vxpose.xlu0.b32.start.end [1/1] (short) %v831_v52, 128  ;;  %v1084_v58 = vadd.f32 %v2645_v56, %v1083_v57  ;;  %v2802_v59 = vpop.f32.mrb[3].mxu1  ;;  %v1247_v56 = vld [vmem:[%s553_s17] sm:$0x1] }
 0x278   : > { %vm1248_vm13 = vcmp.ne.s32.totalorder %v1247_v56, 0  ;;  %v3786_v59 = vmov 0   ;;  %s3622_s17 = scalar_lea.vmem %s2360_s7, 128 }
 0x279   : > { %v1005_v44 = vsel %vm1003_vm4, %v1000_v39, %v1004_v41  ;;  %vm1087_vm9 = vcmp.gt.f32.partialorder %v1084_v58, 0.0  ;;  %v1088_v60 = vmul.f32 0.1, %v1084_v58  ;;  %p3623_p12 = scmp.ne.s32.totalorder %s2360_s7, %s3622_s17  ;;  %p3630_p8 = scmp.lt.s32.totalorder %s3628_s12, %s3622_s17 }
 0x27a   : > { %2810 = vmatmul.mubr.msk.f32.vlgmr.msra.gmra.mrb[4].mxu0 %vm1093_vm5, %v1005_v44 }
 0x27b   : > { %1433 = vmatprep.mubr.f32.mxu0 %v3784_v1  ;;  %3000 = vmatpush1.bf16.msk.msra.mxu0 %vm4316_vm8, %v2998_v55  ;;  %v4325_v61 = vsel %vm1087_vm9, %v1084_v58, %v1088_v60  ;;  %v1250_v55 = vlaneseq  ;;  %v1249_v60 = vsel %vm1248_vm13, 1, %v3786_v59  ;;  %p3624_p2 = pnand %p3623_p12, %p4704_p1  ;;  %p3631_p3 = por %p3630_p8, %p3629_p5 }
 0x27c   : > { %3025 = vmatprep.subr.bf16.mxu0 %v3782_v0 }
 0x27d   : > { %v1251_v57 = vshrl.u32 %v1250_v55, 7  ;;  %p3625_p10 = pneg %p3624_p2 }
 0x27e   : > { %2655 = vmatmul.mubr.msk.f32.vlgmr.msra.gmra.mrb[6].mxu0 %vm1282_vm10, %v4325_v61 }
 0x27f   : > { %2886 = vmatprep.mubr.msk.f32.mxu0 %vm3783_vm0, %v3784_v1  ;;  %v4409_v58 = vsub.s32 0, %v1251_v57  ;;  %p3632_p11 = pnand %p3631_p3, %p3625_p10 }
 0x2f2   : > { %v848_v62 = vpop.trf.xlu0 }
 0x2f3   : > { %865 = vst.msk [vmem:[#allocation2] sm:$0xff] %vm864_vm11, %v848_v62 }
 0x2f6   : > { %v849_v63 = vpop.trf.xlu0 }
 0x2f7   : > { %866 = vst.msk [vmem:[#allocation2 + $0x8] sm:$0xff] %vm864_vm11, %v849_v63 }
 0x2fa   : > { %v1171_v4 = vld [vmem:[#allocation2] sm:$0xff]  ;;  %v883_v8 = vpop.trf.xlu0 }
 0x2fb   : > { %899 = vst.msk [vmem:[#allocation3] sm:$0xff] %vm864_vm11, %v883_v8 }
 0x2fe   : > { %v1172_v5 = vld [vmem:[#allocation2 + $0x8] sm:$0xff]  ;;  %v884_v9 = vpop.trf.xlu0 }
 0x2ff   : > { %v2987_v7 = vpack.c.bf16 %v1172_v5, %v1171_v4  ;;  %900 = vst.msk [vmem:[#allocation3 + $0x8] sm:$0xff] %vm864_vm11, %v884_v9 }
 0x301   : > { %2988 = vmatpush3.bf16.msra.mxu1 %v2987_v7 }
 0x302   : > { %2991 = vmatprep.subr.msk.bf16.mxu1 %vm4316_vm8, %v2989_v6  ;;  %v885_v10 = vpop.trf.xlu0  ;;  %v1258_v11 = vld [vmem:[#allocation3] sm:$0xff] }
 0x303   : > { %901 = vst.msk [vmem:[#allocation3 + $0x10] sm:$0xff] %vm864_vm11, %v885_v10 }
 0x306   : > { %v886_v12 = vpop.trf.xlu0  ;;  %v1259_v13 = vld [vmem:[#allocation3 + $0x8] sm:$0xff] }
 0x307   : > { %902 = vst.msk [vmem:[#allocation3 + $0x18] sm:$0xff] %vm864_vm11, %v886_v12  ;;  %v4339_v14 = vpack.c.bf16 %v1259_v13, %v1258_v11 }
 0x309   : > { %3027 = vmatpush3.bf16.msra.mxu0 %v4339_v14 }
 0x30a   : > { %v887_v15 = vpop.trf.xlu0  ;;  %3028 = vmatprep.subr.bf16.mxu0 %v3782_v0  ;;  %v1260_v16 = vld [vmem:[#allocation3 + $0x10] sm:$0xff] }
 0x30b   : > { %903 = vst.msk [vmem:[#allocation3 + $0x20] sm:$0xff] %vm864_vm11, %v887_v15 }
 0x30e   : > { %v888_v17 = vpop.trf.xlu0  ;;  %v1261_v18 = vld [vmem:[#allocation3 + $0x18] sm:$0xff] }
 0x30f   : > { %904 = vst.msk [vmem:[#allocation3 + $0x28] sm:$0xff] %vm864_vm11, %v888_v17  ;;  %v4345_v19 = vpack.c.bf16 %v1261_v18, %v1260_v16 }
 0x311   : > { %3030 = vmatpush3.bf16.msra.mxu0 %v4345_v19 }
 0x312   : > { %v889_v20 = vpop.trf.xlu0  ;;  %3031 = vmatprep.subr.bf16.mxu0 %v3782_v0  ;;  %v1262_v21 = vld [vmem:[#allocation3 + $0x20] sm:$0xff] }
 0x313   : > { %905 = vst.msk [vmem:[#allocation3 + $0x30] sm:$0xff] %vm864_vm11, %v889_v20 }
 0x316   : > { %v890_v22 = vpop.trf.xlu0  ;;  %v1263_v23 = vld [vmem:[#allocation3 + $0x28] sm:$0xff] }
 0x317   : > { %906 = vst.msk [vmem:[#allocation3 + $0x38] sm:$0xff] %vm864_vm11, %v890_v22  ;;  %v4351_v24 = vpack.c.bf16 %v1263_v23, %v1262_v21 }
 0x319   : > { %3033 = vmatpush3.bf16.msra.mxu0 %v4351_v24 }
 0x31a   : > { %v891_v25 = vpop.trf.xlu0  ;;  %3034 = vmatprep.subr.bf16.mxu0 %v3782_v0  ;;  %v1264_v26 = vld [vmem:[#allocation3 + $0x30] sm:$0xff] }
 0x31b   : > { %907 = vst.msk [vmem:[#allocation3 + $0x40] sm:$0xff] %vm864_vm11, %v891_v25 }
 0x31e   : > { %v892_v27 = vpop.trf.xlu0  ;;  %v1265_v28 = vld [vmem:[#allocation3 + $0x38] sm:$0xff] }
 0x31f   : > { %908 = vst.msk [vmem:[#allocation3 + $0x48] sm:$0xff] %vm864_vm11, %v892_v27  ;;  %v4357_v29 = vpack.c.bf16 %v1265_v28, %v1264_v26 }
 0x321   : > { %3036 = vmatpush3.bf16.msra.mxu0 %v4357_v29 }
 0x322   : > { %v893_v30 = vpop.trf.xlu0  ;;  %3037 = vmatprep.subr.bf16.mxu0 %v3782_v0  ;;  %v1266_v31 = vld [vmem:[#allocation3 + $0x40] sm:$0xff] }
 0x323   : > { %909 = vst.msk [vmem:[#allocation3 + $0x50] sm:$0xff] %vm864_vm11, %v893_v30 }
 0x326   : > { %v894_v32 = vpop.trf.xlu0  ;;  %v1267_v33 = vld [vmem:[#allocation3 + $0x48] sm:$0xff] }
 0x327   : > { %910 = vst.msk [vmem:[#allocation3 + $0x58] sm:$0xff] %vm864_vm11, %v894_v32  ;;  %v4363_v34 = vpack.c.bf16 %v1267_v33, %v1266_v31 }
 0x329   : > { %3039 = vmatpush3.bf16.msra.mxu0 %v4363_v34 }
 0x32a   : > { %v895_v35 = vpop.trf.xlu0  ;;  %3040 = vmatprep.subr.bf16.mxu0 %v3782_v0  ;;  %v1268_v36 = vld [vmem:[#allocation3 + $0x50] sm:$0xff] }
 0x32b   : > { %911 = vst.msk [vmem:[#allocation3 + $0x60] sm:$0xff] %vm864_vm11, %v895_v35 }
 0x32e   : > { %v896_v37 = vpop.trf.xlu0  ;;  %v1269_v38 = vld [vmem:[#allocation3 + $0x58] sm:$0xff] }
 0x32f   : > { %912 = vst.msk [vmem:[#allocation3 + $0x68] sm:$0xff] %vm864_vm11, %v896_v37  ;;  %v4369_v39 = vpack.c.bf16 %v1269_v38, %v1268_v36 }
 0x331   : > { %3042 = vmatpush3.bf16.msra.mxu0 %v4369_v39 }
 0x332   : > { %v897_v40 = vpop.trf.xlu0  ;;  %3043 = vmatprep.subr.bf16.mxu0 %v3782_v0  ;;  %v1270_v41 = vld [vmem:[#allocation3 + $0x60] sm:$0xff] }
 0x333   : > { %913 = vst.msk [vmem:[#allocation3 + $0x70] sm:$0xff] %vm864_vm11, %v897_v40 }
 0x336   : > { %v898_v42 = vpop.trf.xlu0  ;;  %v1271_v43 = vld [vmem:[#allocation3 + $0x68] sm:$0xff] }
 0x337   : > { %914 = vst.msk [vmem:[#allocation3 + $0x78] sm:$0xff] %vm864_vm11, %v898_v42  ;;  %v4375_v44 = vpack.c.bf16 %v1271_v43, %v1270_v41 }
 0x339   : > { %3045 = vmatpush3.bf16.msra.mxu0 %v4375_v44 }
 0x33a   : > { %3046 = vmatprep.subr.bf16.mxu0 %v3782_v0  ;;  %v1272_v45 = vld [vmem:[#allocation3 + $0x70] sm:$0xff] }
 0x33e   : > { %v1273_v48 = vld [vmem:[#allocation3 + $0x78] sm:$0xff] }
 0x33f   : > { %v4379_v49 = vpack.c.bf16 %v1273_v48, %v1272_v45 }
 0x341   : > { %3048 = vmatpush3.bf16.msra.mxu0 %v4379_v49 }
 0x342   : > { %3073 = vmatprep.subr.bf16.mxu0 %v3782_v0 }
 0x34d   : > { %v1167_v51 = vpop.f32.mrb[4].mxu0 }
 0x34e   : > { %v2811_v52 = vpop.f32.mrb[5].mxu0  ;;  %2817 = vmatmul.mubr.msk.f32.vlgmr.msra.gmra.mrb[4].mxu1 %vm1173_vm12, %v1167_v51 }
 0x34f   : > { %2994 = vmatpush1.bf16.msk.msra.mxu1 %vm4316_vm8, %v2992_v50  ;;  %1362 = vmatprep.mubr.f32.mxu1 %v3784_v1 }
 0x350   : > { %3001 = vmatprep.subr.bf16.mxu1 %v3782_v0 }
 0x351   : > { %v1435_v53 = vpop.f32.mrb[6].mxu0 }
 0x352   : > { %2652 = vmatmul.mubr.msk.f32.vlgmr.msra.gmra.mrb[6].mxu1 %vm1282_vm10, %v4325_v61  ;;  %v1437_v54 = vpop.f32.mrb[7].mxu0  ;;  %v1253_v61 = vrot.slane %v1249_v60, %v4409_v58 }
 0x353   : > { %3003 = vmatpush3.bf16.msra.mxu1 %v4339_v14  ;;  %2851 = vmatprep.mubr.msk.f32.mxu1 %vm3783_vm0, %v3784_v1 }
 0x354   : > { %3004 = vmatprep.subr.bf16.mxu1 %v3782_v0  ;;  %vm1254_vm14 = vcmp.eq.s32.totalorder %v1253_v61, 1 }
 0x357   : > { %3006 = vmatpush3.bf16.msra.mxu1 %v4345_v19 }
 0x358   : > { %3007 = vmatprep.subr.bf16.mxu1 %v3782_v0 }
 0x35b   : > { %3009 = vmatpush3.bf16.msra.mxu1 %v4351_v24 }
 0x35c   : > { %3010 = vmatprep.subr.bf16.mxu1 %v3782_v0 }
 0x35f   : > { %3012 = vmatpush3.bf16.msra.mxu1 %v4357_v29 }
 0x360   : > { %3013 = vmatprep.subr.bf16.mxu1 %v3782_v0 }
 0x363   : > { %3015 = vmatpush3.bf16.msra.mxu1 %v4363_v34 }
 0x364   : > { %3016 = vmatprep.subr.bf16.mxu1 %v3782_v0 }
 0x367   : > { %3018 = vmatpush3.bf16.msra.mxu1 %v4369_v39 }
 0x368   : > { %3019 = vmatprep.subr.bf16.mxu1 %v3782_v0 }
 0x36b   : > { %3021 = vmatpush3.bf16.msra.mxu1 %v4375_v44 }
 0x36c   : > { %3022 = vmatprep.subr.bf16.mxu1 %v3782_v0 }
 0x36f   : > { %3024 = vmatpush3.bf16.msra.mxu1 %v4379_v49 }
 0x370   : > { %3049 = vmatprep.subr.bf16.mxu1 %v3782_v0 }
 0x421   : > { %v1243_v62 = vpop.f32.mrb[4].mxu1 }
 0x422   : > { %v1255_v63 = vsel %vm1254_vm14, %v1243_v62, -inf  ;;  %v2818_v2 = vpop.f32.mrb[5].mxu1 }
 0x423   : > { %1257 = vst.msk [vmem:[%s4414_s16] sm:$0xff] %vm864_vm11, %v1255_v63 }
 0x425   : > { %v1364_v3 = vpop.f32.mrb[6].mxu1 }
 0x426   : > { %v1366_v4 = vpop.f32.mrb[7].mxu1  ;;  %2852 = vmatmul.mubr.f32.vlgmr.msra.gmra.mrb[8].mxu1 %v1364_v3 }
 0x427   : > { %3051 = vmatpush3.bf16.msra.mxu1 %v4339_v14  ;;  %2887 = vmatmul.mubr.f32.vlgmr.msra.gmra.mrb[8].mxu0 %v1366_v4 }
 0x428   : > { %3075 = vmatpush3.bf16.msra.mxu0 %v4339_v14  ;;  %3052 = vmatprep.subr.bf16.mxu1 %v3782_v0 }
 0x429   : > { %3076 = vmatprep.subr.bf16.mxu0 %v3782_v0  ;;  %2921 = vmatprep.mubr.msk.f32.mxu1 %vm3783_vm0, %v3784_v1 }
 0x42a   : > { %2956 = vmatprep.mubr.msk.f32.mxu0 %vm3783_vm0, %v3784_v1  ;;  %v3787_v1 = vmov 1966171168   ;;  %vm2065_vm0 = vcmask 1042432  }
 0x42b   : > { %3054 = vmatpush3.bf16.msra.mxu1 %v4345_v19  ;;  %v1723_v5 = vunpack.c.l.s4 %v3787_v1 }
 0x42c   : > { %3078 = vmatpush3.bf16.msra.mxu0 %v4345_v19  ;;  %3055 = vmatprep.subr.bf16.mxu1 %v3782_v0 }
 0x42d   : > { %3079 = vmatprep.subr.bf16.mxu0 %v3782_v0  ;;  %v1724_v6 = vunpack.c.0.s8 %v1723_v5 }
 0x42f   : > { %3057 = vmatpush3.bf16.msra.mxu1 %v4351_v24  ;;  %v4452_v7 = vsub.s32 %v1724_v6, %v1251_v57 }
 0x430   : > { %3081 = vmatpush3.bf16.msra.mxu0 %v4351_v24  ;;  %3058 = vmatprep.subr.bf16.mxu1 %v3782_v0 }
 0x431   : > { %3082 = vmatprep.subr.bf16.mxu0 %v3782_v0 }
 0x433   : > { %3060 = vmatpush3.bf16.msra.mxu1 %v4357_v29 }
 0x434   : > { %3084 = vmatpush3.bf16.msra.mxu0 %v4357_v29  ;;  %3061 = vmatprep.subr.bf16.mxu1 %v3782_v0 }
 0x435   : > { %3085 = vmatprep.subr.bf16.mxu0 %v3782_v0 }
 0x437   : > { %3063 = vmatpush3.bf16.msra.mxu1 %v4363_v34 }
 0x438   : > { %3087 = vmatpush3.bf16.msra.mxu0 %v4363_v34  ;;  %3064 = vmatprep.subr.bf16.mxu1 %v3782_v0 }
 0x439   : > { %3088 = vmatprep.subr.bf16.mxu0 %v3782_v0 }
 0x43b   : > { %3066 = vmatpush3.bf16.msra.mxu1 %v4369_v39 }
 0x43c   : > { %3090 = vmatpush3.bf16.msra.mxu0 %v4369_v39  ;;  %3067 = vmatprep.subr.bf16.mxu1 %v3782_v0 }
 0x43d   : > { %3091 = vmatprep.subr.bf16.mxu0 %v3782_v0 }
 0x43f   : > { %3069 = vmatpush3.bf16.msra.mxu1 %v4375_v44 }
 0x440   : > { %3093 = vmatpush3.bf16.msra.mxu0 %v4375_v44  ;;  %3070 = vmatprep.subr.bf16.mxu1 %v3782_v0 }
 0x441   : > { %3094 = vmatprep.subr.bf16.mxu0 %v3782_v0 }
 0x443   : > { %3072 = vmatpush3.bf16.msra.mxu1 %v4379_v49 }
 0x444   : > { %3096 = vmatpush3.bf16.msra.mxu0 %v4379_v49 }
 0x446   : > { %2922 = vmatmul.mubr.f32.vlgmr.msra.gmra.mrb[10].mxu1 %v1435_v53 }
 0x447   : > { %2957 = vmatmul.mubr.f32.vlgmr.msra.gmra.mrb[10].mxu0 %v1437_v54 }
 0x4f9   : > { %v1506_v8 = vpop.f32.mrb[8].mxu1 }
 0x4fa   : > { %v1721_v9 = vcombine.high %v1506_v8, %v1506_v8  ;;  %v1728_v10 = vrot.slane %v1506_v8, %v4452_v7  ;;  %v2853_v11 = vpop.f32.mrb[9].mxu1  ;;  %v1576_v12 = vpop.f32.mrb[8].mxu0 }
 0x4fb   : > { %v1779_v13 = vcombine.high %v1576_v12, %v1576_v12  ;;  %v1786_v0 = vrot.slane %v1576_v12, %v4452_v7  ;;  %v2888_v14 = vpop.f32.mrb[9].mxu0 }
 0x4fc   : > { %v1735_v15 = vrot.slane %v1721_v9, %v4452_v7  ;;  %v1736_v16 = vcombine.high %v1728_v10, %v1728_v10  ;;  %v1744_v17 = vrot.slane %v1728_v10, %v4452_v7 }
 0x4fd   : > { %v1793_v18 = vrot.slane %v1779_v13, %v4452_v7  ;;  %v1794_v19 = vcombine.high %v1786_v0, %v1786_v0  ;;  %v1802_v20 = vrot.slane %v1786_v0, %v4452_v7 }
 0x4fe   : > { %v1737_v21 = vcombine.high %v1735_v15, %v1735_v15  ;;  %v1758_v22 = vrot.slane %v1736_v16, %v4452_v7  ;;  %v1751_v27 = vrot.slane %v1735_v15, %v4452_v7  ;;  %v1766_v29 = vcombine.high %v1744_v17, %v1744_v17 }
 0x4ff   : > { %v1795_v23 = vcombine.high %v1793_v18, %v1793_v18  ;;  %v1809_v24 = vrot.slane %v1793_v18, %v4452_v7  ;;  %v1816_v25 = vrot.slane %v1794_v19, %v4452_v7  ;;  %v1824_v26 = vcombine.high %v1802_v20, %v1802_v20 }
 0x500   : > { %v1765_v28 = vrot.slane %v1737_v21, %v4452_v7  ;;  %v1931_v30 = vrot.slane %v1802_v20, %v4409_v58  ;;  %v1768_v35 = vcombine.high %v1758_v22, %v1758_v22  ;;  %v1767_v43 = vcombine.high %v1751_v27, %v1751_v27 }
 0x501   : > { %v1823_v31 = vrot.slane %v1795_v23, %v4452_v7  ;;  %v1825_v32 = vcombine.high %v1809_v24, %v1809_v24  ;;  %v1826_v33 = vcombine.high %v1816_v25, %v1816_v25  ;;  %v1935_v34 = vrot.slane %v1816_v25, %v4409_v58 }
 0x502   : > { %v1939_v36 = vrot.slane %v1824_v26, %v4409_v58  ;;  %v1947_v37 = vrot.slane %v1809_v24, %v4409_v58  ;;  %v2048_v38 = vsel %vm1097_vm2, %v1744_v17, %v1931_v30  ;;  %v1769_v49 = vcombine.high %v1765_v28, %v1765_v28 }
 0x503   : > { %v1827_v39 = vcombine.high %v1823_v31, %v1823_v31  ;;  %v2049_v40 = vsel %vm1097_vm2, %v1758_v22, %v1935_v34  ;;  %v1943_v41 = vrot.slane %v1826_v33, %v4409_v58  ;;  %v1951_v42 = vrot.slane %v1823_v31, %v4409_v58 }
 0x504   : > { %v2050_v44 = vsel %vm1097_vm2, %v1766_v29, %v1939_v36  ;;  %v2052_v45 = vsel %vm1097_vm2, %v1751_v27, %v1947_v37  ;;  %v1955_v46 = vrot.slane %v1825_v32, %v4409_v58 }
 0x505   : > { %v2051_v47 = vsel %vm1097_vm2, %v1768_v35, %v1943_v41  ;;  %v2053_v48 = vsel %vm1097_vm2, %v1765_v28, %v1951_v42  ;;  %v1959_v50 = vrot.slane %v1827_v39, %v4409_v58 }
 0x506   : > { %v4481_v51 = vsel %vm1097_vm2, %v1767_v43, %v1955_v46 }
 0x507   : > { %v4484_v52 = vsel %vm1097_vm2, %v1769_v49, %v1959_v50 }
 0x519   : > { %v1646_v53 = vpop.f32.mrb[10].mxu1 }
 0x51a   : > { %v1829_v54 = vcombine.high %v1646_v53, %v1646_v53  ;;  %v1836_v55 = vrot.slane %v1646_v53, %v4452_v7  ;;  %v2923_v56 = vpop.f32.mrb[11].mxu1  ;;  %v1716_v57 = vpop.f32.mrb[10].mxu0 }
 0x51b   : > { %v1879_v59 = vcombine.high %v1716_v57, %v1716_v57  ;;  %v1886_v60 = vrot.slane %v1716_v57, %v4452_v7  ;;  %v2958_v61 = vpop.f32.mrb[11].mxu0 }
 0x51c   : > { %v1843_v62 = vrot.slane %v1829_v54, %v4452_v7  ;;  %v1844_v63 = vcombine.high %v1836_v55, %v1836_v55  ;;  %v1852_v2 = vrot.slane %v1836_v55, %v4452_v7 }
 0x51d   : > { %v1893_v3 = vrot.slane %v1879_v59, %v4452_v7  ;;  %v1894_v4 = vcombine.high %v1886_v60, %v1886_v60  ;;  %v1902_v1 = vrot.slane %v1886_v60, %v4452_v7 }
 0x51e   : > { %v1845_v5 = vcombine.high %v1843_v62, %v1843_v62  ;;  %v1859_v6 = vrot.slane %v1843_v62, %v4452_v7  ;;  %v1866_v8 = vrot.slane %v1844_v63, %v4452_v7  ;;  %v1874_v9 = vcombine.high %v1852_v2, %v1852_v2 }
 0x51f   : > { %v1971_v10 = vrot.slane %v1852_v2, %v4409_v58  ;;  %v1895_v11 = vcombine.high %v1893_v3, %v1893_v3  ;;  %v1909_v12 = vrot.slane %v1893_v3, %v4452_v7  ;;  %v1916_v13 = vrot.slane %v1894_v4, %v4452_v7 }
 0x520   : > { %v1873_v0 = vrot.slane %v1845_v5, %v4452_v7  ;;  %v1875_v14 = vcombine.high %v1859_v6, %v1859_v6  ;;  %v1876_v15 = vcombine.high %v1866_v8, %v1866_v8  ;;  %v1924_v16 = vcombine.high %v1902_v1, %v1902_v1 }
 0x521   : > { %v2011_v17 = vrot.slane %v1902_v1, %v4409_v58  ;;  %v2057_v18 = vsel %vm2056_vm15, %v2048_v38, %v1971_v10  ;;  %v1975_v19 = vrot.slane %v1866_v8, %v4409_v58  ;;  %v2015_v20 = vrot.slane %v1916_v13, %v4409_v58 }
 0x522   : > { %v1926_v21 = vcombine.high %v1916_v13, %v1916_v13  ;;  %v1983_v22 = vrot.slane %v1876_v15, %v4409_v58  ;;  %v1979_v23 = vrot.slane %v1874_v9, %v4409_v58  ;;  %v2019_v24 = vrot.slane %v1924_v16, %v4409_v58 }
 0x523   : > { %v2066_v25 = vsel %vm2065_vm0, %v2057_v18, %v2011_v17  ;;  %v2058_v26 = vsel %vm2056_vm15, %v2049_v40, %v1975_v19  ;;  %v1987_v27 = vrot.slane %v1859_v6, %v4409_v58  ;;  %v2027_v28 = vrot.slane %v1909_v12, %v4409_v58 }
 0x524   : > { %2074 = vxpose.xlu1.b32.start.end [1/1] (short) (narrow) %v2066_v25, 8  ;;  %v2067_v29 = vsel %vm2065_vm0, %v2058_v26, %v2015_v20  ;;  %v2023_v30 = vrot.slane %v1926_v21, %v4409_v58  ;;  %v2060_v31 = vsel %vm2056_vm15, %v2051_v47, %v1983_v22  ;;  %v2059_v32 = vsel %vm2056_vm15, %v2050_v44, %v1979_v23 }
 0x525   : > { %v2068_v33 = vsel %vm2065_vm0, %v2059_v32, %v2019_v24  ;;  %v2061_v34 = vsel %vm2056_vm15, %v2052_v45, %v1987_v27  ;;  %v1923_v35 = vrot.slane %v1895_v11, %v4452_v7  ;;  %v1991_v36 = vrot.slane %v1873_v0, %v4409_v58 }
 0x526   : > { %v2069_v37 = vsel %vm2065_vm0, %v2060_v31, %v2023_v30  ;;  %v2070_v38 = vsel %vm2065_vm0, %v2061_v34, %v2027_v28  ;;  %v1925_v39 = vcombine.high %v1909_v12, %v1909_v12  ;;  %v1995_v40 = vrot.slane %v1875_v14, %v4409_v58 }
 0x527   : > { %2170 = vxpose.xlu0.b32.start.end [1/1] (short) (narrow) %v2069_v37, 8  ;;  %v2031_v41 = vrot.slane %v1923_v35, %v4409_v58  ;;  %v2062_v42 = vsel %vm2056_vm15, %v2053_v48, %v1991_v36  ;;  %v1877_v43 = vcombine.high %v1873_v0, %v1873_v0  ;;  %v1927_v44 = vcombine.high %v1923_v35, %v1923_v35 }
 0x528   : > { %2106 = vxpose.xlu1.b32.start.end [1/1] (short) (narrow) %v2067_v29, 8  ;;  %v2035_v7 = vrot.slane %v1925_v39, %v4409_v58  ;;  %v2063_v45 = vsel %vm2056_vm15, %v4481_v51, %v1995_v40 }
 0x529   : > { %v2071_v46 = vsel %vm2065_vm0, %v2062_v42, %v2031_v41  ;;  %v1999_v47 = vrot.slane %v1877_v43, %v4409_v58  ;;  %v2039_v49 = vrot.slane %v1927_v44, %v4409_v58 }
 0x52a   : > { %v2072_v48 = vsel %vm2065_vm0, %v2063_v45, %v2035_v7 }
 0x52b   : > { %v2064_v50 = vsel %vm2056_vm15, %v4484_v52, %v1999_v47 }
 0x52c   : > { %2138 = vxpose.xlu1.b32.start.end [1/1] (short) (narrow) %v2068_v33, 8  ;;  %v2073_v53 = vsel %vm2065_vm0, %v2064_v50, %v2039_v49 }
 0x530   : > { %2202 = vxpose.xlu1.b32.start.end [1/1] (short) (narrow) %v2070_v38, 8 }
 0x534   : > { %2234 = vxpose.xlu1.b32.start.end [1/1] (short) (narrow) %v2071_v46, 8 }
 0x538   : > { %2266 = vxpose.xlu1.b32.start.end [1/1] (short) (narrow) %v2072_v48, 8 }
 0x53c   : > { %2298 = vxpose.xlu1.b32.start.end [1/1] (short) (narrow) %v2073_v53, 8 }
 0x53d   : > { %3635 = shalt.err (!%p3632_p11)
}
 0x53e   : > { %s3636_s18 = scalar_lea.hbm %s4536_s13, 128  ;;  %s3640_s4 = scalar_lea.hbm %s4703_s1, 256 }
 0x53f   : > { %p3637_p6 = scmp.ne.s32.totalorder %s4536_s13, %s3636_s18  ;;  %p3641_p9 = scmp.lt.u32.totalorder %s4536_s13, %s4703_s1 }
 0x540   : > { %p3642_p0 = scmp.lt.u32.totalorder %s3640_s4, %s3636_s18  ;;  %p3644_p12 = scmp.lt.u32.totalorder %s3636_s18, %s4536_s13 }
 0x541   : > { %p3638_p13 = pnand %p3637_p6, %p4704_p1 }
 0x542   : > { %p3643_p7 = por %p3642_p0, %p3641_p9 }
 0x543   : > { %p3639_p4 = pneg %p3638_p13 }
 0x544   : > { %p3645_p2 = por %p3644_p12, %p3643_p7 }
 0x546   : > { %p3646_p10 = pnand %p3645_p2, %p3639_p4 }
 0x548   : > { %3649 = shalt.err (!%p3646_p10)
}
 0x549   : > { %3141 = dma.vmem_to_hbm [thread:$0]  (%p4704_p1), %s2360_s7, 128, %s4536_s13, %s2340_s28   ;;  %vm2330_vm1 = vcmask 31744  }
 0x54a   : > { %s2638_s17 = sshll.u32 %s4243_s21, 6  ;;  %s2663_s7 = sshll.u32 %s4702_s14, 10 }
 0x54b   : > { %s653_s23 = scalar_lea.vmem [#allocation25], %s2638_s17  ;;  %s4705_s12 = sld [smem:[#allocation49_spill]] }
 0x54c   : > { %s2374_s13 = sshll.u32 %s653_s23, 4  ;;  %s2345_s3 = scalar_lea.sflag [#allocation26], %s4243_s21  ;;  %s4565_s13 = int_to_ptr.vmem [resolvable:$true] %s2374_s13 }
 0x54d   : > { %s3650_s16 = scalar_lea.vmem %s4565_s13, 1024  ;;  %s3789_s14 = smov [#allocation25]  }
 0x54e   : > { %p3651_p5 = scmp.ne.s32.totalorder %s4565_s13, %s3650_s16  ;;  %s3654_s4 = sshll.u32 %s3789_s14, 4  ;;  %s3655_s4 = int_to_ptr.vmem [resolvable:$false] %s3654_s4 }
 0x54f   : > { %s3656_s5 = scalar_lea.vmem %s3655_s4, 2048  ;;  %p3657_p11 = scmp.lt.s32.totalorder %s4565_s13, %s3655_s4 }
 0x550   : > { %p3652_p8 = pnand %p3651_p5, %p4704_p1  ;;  %p3658_p6 = scmp.lt.s32.totalorder %s3656_s5, %s3650_s16 }
 0x551   : > { %s4571_s18 = scalar_lea.hbm %s4705_s12, %s2663_s7 }
 0x552   : > { %p3653_p3 = pneg %p3652_p8  ;;  %p3659_p13 = por %p3658_p6, %p3657_p11 }
 0x554   : > { %p3660_p4 = pnand %p3659_p13, %p3653_p3 }
 0x5a4   : > { %v2090_v58 = vpop.trf.xlu1 }
 0x5a5   : > { %2331 = vst.msk [vmem:[%s653_s23] sm:$0xff] %vm2330_vm1, %v2090_v58 }
 0x5a7   : > { %v2186_v51 = vpop.trf.xlu0 }
 0x5a8   : > { %v2122_v52 = vpop.trf.xlu1  ;;  %2334 = vst.msk [vmem:[%s653_s23 + $0x18] sm:$0xff] %vm2330_vm1, %v2186_v51 }
 0x5a9   : > { %2332 = vst.msk [vmem:[%s653_s23 + $0x8] sm:$0xff] %vm2330_vm1, %v2122_v52 }
 0x5ac   : > { %v2154_v54 = vpop.trf.xlu1 }
 0x5ad   : > { %2333 = vst.msk [vmem:[%s653_s23 + $0x10] sm:$0xff] %vm2330_vm1, %v2154_v54 }
 0x5b0   : > { %v2218_v55 = vpop.trf.xlu1 }
 0x5b1   : > { %2335 = vst.msk [vmem:[%s653_s23 + $0x20] sm:$0xff] %vm2330_vm1, %v2218_v55 }
 0x5b4   : > { %v2250_v56 = vpop.trf.xlu1 }
 0x5b5   : > { %2336 = vst.msk [vmem:[%s653_s23 + $0x28] sm:$0xff] %vm2330_vm1, %v2250_v56 }
 0x5b8   : > { %v2282_v57 = vpop.trf.xlu1 }
 0x5b9   : > { %2337 = vst.msk [vmem:[%s653_s23 + $0x30] sm:$0xff] %vm2330_vm1, %v2282_v57 }
 0x5bc   : > { %v2314_v59 = vpop.trf.xlu1 }
 0x5bd   : > { %2338 = vst.msk [vmem:[%s653_s23 + $0x38] sm:$0xff] %vm2330_vm1, %v2314_v59 }
 0x5be   : > { %3663 = shalt.err (!%p3660_p4)
}
 0x5bf   : > { %s3664_s19 = scalar_lea.hbm %s4571_s18, 1024  ;;  %s3668_s7 = scalar_lea.hbm %s4705_s12, 2048 }
 0x5c0   : > { %p3665_p9 = scmp.ne.s32.totalorder %s4571_s18, %s3664_s19  ;;  %p3669_p12 = scmp.lt.u32.totalorder %s4571_s18, %s4705_s12 }
 0x5c1   : > { %p3670_p2 = scmp.lt.u32.totalorder %s3668_s7, %s3664_s19  ;;  %p3672_p5 = scmp.lt.u32.totalorder %s3664_s19, %s4571_s18 }
 0x5c2   : > { %p3666_p0 = pnand %p3665_p9, %p4704_p1 }
 0x5c3   : > { %p3671_p10 = por %p3670_p2, %p3669_p12 }
 0x5c4   : > { %p3667_p7 = pneg %p3666_p0 }
 0x5c5   : > { %p3673_p8 = por %p3672_p5, %p3671_p10 }
 0x5c7   : > { %p3674_p3 = pnand %p3673_p8, %p3667_p7 }
 0x5c9   : > { %3677 = shalt.err (!%p3674_p3)
}
 0x5ca   : > { %s3790_s16 = smov 128   ;;  %s3791_s14 = smov 8  }
 0x5cb   : > { %3142 = dma.vmem_to_hbm [thread:$0]  (%p4704_p1), %s4565_s13, 1024, %s4571_s18, %s2345_s3, %s3790_s16, %s3790_s16, %s3791_s14  }
 0x5cc PF: > { %s2389_s4 = sand.u32 1, %s3744_s25   ;;  %p4706_p11 = scmp.ne.s32.totalorder %s4678_s24, 0 }
 0x5cd   : > { %p4707_p6 = scmp.ge.s32.totalorder %s3764_s30, 2  ;;  %s2390_s5 = scalar_lea.sflag [#allocation6], %s2389_s4 }
 0x5cf   : > { %p3184_p13 = pnand %p4707_p6, %p4706_p11 }
 0x5d1   : > { %3735 = dma.done.wait (!%p3184_p13), %s2390_s5, 128  }
 0x5d2   : > { %3737 = vsyncadd (!%p3184_p13), %s2390_s5, 4294967168  ;;  %s2399_s19 = scalar_lea.sflag [#allocation26], %s2389_s4 }
 0x5d3   : > { %3739 = dma.done.wait (!%p3184_p13), %s2399_s19, 1024  }
 0x5d4   : > { %3741 = vsyncadd (!%p3184_p13), %s2399_s19, 4294966272  ;;  %s41_s30 = sadd.s32 1, %s3764_s30   ;;  %s4708_s25 = smov %s3748_s26 }
 0x5d5   : > { %p38_p4 = scmp.ge.s32.totalorder %s41_s30, 4   ;;  %s4709_s26 = smov %s3752_s27 }
 0x5d6   : > { %s4710_s27 = smov %s4158_s22  ;;  %s4711_s28 = smov %s3760_s29 }
 0x5d7   : > { %s4712_s29 = smov %s4714_s2  ;;  %40 = sbr.rel (!%p38_p4) target bundleno = 26 (0x1a), region = 188 }
 0x5de   :  { %2404 = vsyncpa [#allocation5], 1 }
 0x5df   :  { %2406 = vsyncpa [#allocation5 + $0x1], 1 }
 0x5e0   :  { %2407 = vsyncpa [#allocation8], 1 }
 0x5e1   :  { %2409 = vsyncpa [#allocation8 + $0x1], 1 }
 0x5e2   :  { %2410 = vsyncpa [#allocation11], 1 }
 0x5e3   :  { %2411 = vsyncpa [#allocation14], 1 }
 0x5e4   :  { %2412 = vsyncpa [#allocation17], 1 }
 0x5e5   :  { %2413 = vsyncpa [#allocation20], 1 }
 0x5e6   :  { %2414 = vsyncpa [#allocation23], 1 }
 0x5e7   :  { %2415 = vsyncpa [#allocation6], 1 }
 0x5e8   :  { %2417 = vsyncpa [#allocation6 + $0x1], 1 }
 0x5e9   :  { %2418 = vsyncpa [#allocation26], 1 }
 0x5ea   :  { %2420 = vsyncpa [#allocation26 + $0x1], 1 }

// kernel: tpu_custom_call.1
= control target key start
LH: loop header
LB: loop body
LE: loop exit
PB: predicated region body
PF: predicated region fallthrough
CT: control target
= control target key end

     0   :  { %s3649_s0 = inlined_call_operand.hbm [shape: s32[2,1,8], index: 0, kind: input, shape index: {}]   ;;  %s3650_s1 = inlined_call_operand.hbm [shape: f32[2,8,32], index: 1, kind: input, shape index: {}]   ;;  %s3651_s2 = inlined_call_operand.hbm [shape: f32[32,17], index: 2, kind: input, shape index: {}]   ;;  %s3652_s3 = inlined_call_operand.hbm [shape: f32[1,17], index: 3, kind: input, shape index: {}]   ;;  %s3653_s4 = inlined_call_operand.hbm [shape: f32[32,16], index: 4, kind: input, shape index: {}]   ;;  %s3654_s5 = inlined_call_operand.hbm [shape: f32[1,16], index: 5, kind: input, shape index: {}]   ;;  %s3655_s6 = inlined_call_operand.hbm [shape: f32[32,9], index: 6, kind: input, shape index: {}]   ;;  %s3656_s7 = inlined_call_operand.hbm [shape: f32[1,9], index: 7, kind: input, shape index: {}]   ;;  %s3657_s8 = inlined_call_operand.hbm [shape: f32[32,128], index: 8, kind: input, shape index: {}]   ;;  %s3658_s9 = inlined_call_operand.hbm [shape: f32[1,128], index: 9, kind: input, shape index: {}]   ;;  %s3659_s10 = inlined_call_operand.hbm [shape: f32[17,16], index: 10, kind: input, shape index: {}]   ;;  %s3660_s11 = inlined_call_operand.hbm [shape: f32[9,512], index: 11, kind: input, shape index: {}]   ;;  %s3661_s12 = inlined_call_operand.hbm [shape: f32[2,8,8], index: 12, kind: output, shape index: {0}]   ;;  %s3662_s13 = inlined_call_operand.hbm [shape: f32[2,4,8,8], index: 13, kind: output, shape index: {1}]  }
   0x1   :  { %3678 = sst [smem:[#allocation40_spill]] %s3649_s0 }
   0x2   :  { %3679 = sst [smem:[#allocation41_spill]] %s3650_s1 }
   0x3   :  { %3680 = sst [smem:[#allocation42_spill]] %s3651_s2 }
   0x4   :  { %3681 = sst [smem:[#allocation43_spill]] %s3652_s3 }
   0x5   :  { %3682 = sst [smem:[#allocation44_spill]] %s3653_s4 }
   0x6   :  { %3683 = sst [smem:[#allocation45_spill]] %s3654_s5 }
   0x7   :  { %3684 = sst [smem:[#allocation46_spill]] %s3655_s6 }
   0x8   :  { %3685 = sst [smem:[#allocation47_spill]] %s3656_s7 }
   0x9   :  { %3686 = sst [smem:[#allocation48_spill]] %s3661_s12 }
   0xa   :  { %3687 = sst [smem:[#allocation49_spill]] %s3662_s13 }
   0xb   :  { %19 = vsyncpa [#allocation5], 0 }
   0xc   :  { %21 = vsyncpa [#allocation5 + $0x1], 0 }
   0xd   :  { %22 = vsyncpa [#allocation8], 0 }
   0xe   :  { %24 = vsyncpa [#allocation8 + $0x1], 0 }
   0xf   :  { %25 = vsyncpa [#allocation11], 0 }
  0x10   :  { %26 = vsyncpa [#allocation14], 0 }
  0x11   :  { %27 = vsyncpa [#allocation17], 0 }
  0x12   :  { %28 = vsyncpa [#allocation20], 0 }
  0x13   :  { %29 = vsyncpa [#allocation23], 0 }
  0x14   :  { %30 = vsyncpa [#allocation6], 0 }
  0x15   :  { %32 = vsyncpa [#allocation6 + $0x1], 0 }
  0x16   :  { %33 = vsyncpa [#allocation26], 0 }
  0x17   :  { %35 = vsyncpa [#allocation26 + $0x1], 0  ;;  %s3058_s25 = smov 0   ;;  %s3060_s26 = smov 0  }
  0x18   :  { %s3062_s27 = smov 0   ;;  %s3064_s28 = smov 0  }
  0x19   :  { %s3066_s29 = smov 0   ;;  %s3068_s30 = smov 0  }
  0x1a LB: > { %3688 = sst [smem:[#allocation37_spill]] %s2953_s28  ;;  %s3089_s14 = sadd.s32 4294967295, %s2961_s30   ;;  %s2961_s30 = sphi %s3068_s30, %s41_s30   ;;  %s2957_s29 = sphi %s3066_s29, %s3741_s29   ;;  %s2953_s28 = sphi %s3064_s28, %s3740_s28   ;;  %s2949_s27 = sphi %s3062_s27, %s3739_s27   ;;  %s2945_s26 = sphi %s3060_s26, %s3738_s26   ;;  %s2941_s25 = sphi %s3058_s25, %s3737_s25  }
  0x1b   : > { %3689 = sst [smem:[#allocation38_spill]] %s3089_s14  ;;  %p2040_p0 = scmp.ge.s32.totalorder %s2961_s30, 1 }
  0x1c   : > { %p3672_p1 = scmp.eq.s32.totalorder %s3089_s14, 0  ;;  %p376_p2 = scmp.lt.s32.totalorder %s2961_s30, 3 }
  0x1d   : > { %s2963_s16 = smov [#allocation9]   ;;  %s2964_s19 = smov [#allocation10]  }
  0x1e   : > { %p3094_p3 = pnand %p2040_p0, %p376_p2  ;;  %s388_s17 = sshll.u32 %s2963_s16, 4  ;;  %s3098_s17 = int_to_ptr.vmem [resolvable:$true] %s388_s17 }
  0x1f   : > { %s402_s20 = sshll.u32 %s2964_s19, 4  ;;  %s2965_s21 = smov [#allocation13]   ;;  %s3109_s20 = int_to_ptr.vmem [resolvable:$true] %s402_s20 }
  0x20   : > { %s3690_s15 = scalar_select %p3094_p3, 1, 0 }
  0x21   : > { %p2343_p4 = pneg %p3094_p3  ;;  %s3111_s22 = sshll.u32 %s2965_s21, 4  ;;  %s427_s22 = int_to_ptr.vmem [resolvable:$true] %s3111_s22 }
  0x22   : > { %3691 = sst [smem:[#allocation39_spill]] %s3690_s15  ;;  %s3693_s2 = sld [smem:[#allocation42_spill]] }
  0x23   : > { %p3105_p6 = pnand %p2343_p4, %p3672_p1 }
  0x25   : > { %p3121_p8 = pneg %p3105_p6 }
  0x28   : > { %s2479_s16 = scalar_lea.hbm %s3693_s2, 512 }
  0x29   : > { %p2480_p7 = scmp.ne.s32.totalorder %s3693_s2, %s2479_s16  ;;  %p2486_p11 = scmp.lt.u32.totalorder %s2479_s16, %s3693_s2 }
  0x2b   : > { %p2482_p9 = pnand %p3121_p8, %p2480_p7 }
  0x2d   : > { %p2483_p10 = pneg %p2482_p9 }
  0x2f   : > { %p2488_p12 = pnand %p2486_p11, %p2483_p10 }
  0x31   : > { %2491 = shalt.err (!%p2488_p12)
}
  0x32   : > { %s2492_s12 = scalar_lea.vmem %s3098_s17, 512  ;;  %p2500_p4 = scmp.lt.s32.totalorder %s3098_s17, %s3098_s17 }
  0x33   : > { %p2493_p13 = scmp.ne.s32.totalorder %s3098_s17, %s2492_s12  ;;  %p2501_p5 = scmp.lt.s32.totalorder %s2492_s12, %s2492_s12 }
  0x35   : > { %p2495_p0 = pnand %p2493_p13, %p3121_p8  ;;  %p2502_p7 = por %p2501_p5, %p2500_p4 }
  0x37   : > { %p2496_p2 = pneg %p2495_p0 }
  0x39   : > { %p2503_p9 = pnand %p2502_p7, %p2496_p2 }
  0x3b   : > { %2506 = shalt.err (!%p2503_p9)
}
  0x3c   : > { %s3674_s13 = smov 128   ;;  %s2967_s23 = smov 8  }
  0x3d   : > { %2346 = dma.hbm_to_vmem [thread:$0]  (!%p3105_p6), %s3693_s2, 512, %s3098_s17, [#allocation8], %s3674_s13, %s3674_s13, %s2967_s23  }
  0x3e   : > { %s3695_s3 = sld [smem:[#allocation43_spill]] }
  0x44   : > { %s2507_s12 = scalar_lea.hbm %s3695_s3, 16 }
  0x45   : > { %p2508_p5 = scmp.ne.s32.totalorder %s3695_s3, %s2507_s12  ;;  %p2514_p12 = scmp.lt.u32.totalorder %s2507_s12, %s3695_s3 }
  0x47   : > { %p2510_p10 = pnand %p2508_p5, %p3121_p8 }
  0x49   : > { %p2511_p11 = pneg %p2510_p10 }
  0x4b   : > { %p2516_p13 = pnand %p2514_p12, %p2511_p11 }
  0x4d   : > { %2519 = shalt.err (!%p2516_p13)
}
  0x4e   : > { %s2520_s17 = scalar_lea.vmem %s3109_s20, 16  ;;  %s2527_s1 = scalar_lea.vmem %s3109_s20, 32 }
  0x4f   : > { %p2521_p0 = scmp.ne.s32.totalorder %s3109_s20, %s2520_s17  ;;  %p2528_p7 = scmp.lt.s32.totalorder %s3109_s20, %s3109_s20 }
  0x50   : > { %p2529_p9 = scmp.lt.s32.totalorder %s2527_s1, %s2520_s17 }
  0x51   : > { %p2523_p2 = pnand %p2521_p0, %p3121_p8 }
  0x52   : > { %p2530_p5 = por %p2529_p9, %p2528_p7 }
  0x53   : > { %p2524_p4 = pneg %p2523_p2 }
  0x55   : > { %p2531_p10 = pnand %p2530_p5, %p2524_p4 }
  0x57   : > { %2534 = shalt.err (!%p2531_p10)
}
  0x58   : > { %2349 = dma.hbm_to_vmem [thread:$0]  (!%p3105_p6), %s3695_s3, 16, %s3109_s20, [#allocation11]  }
  0x59   : > { %s3696_s5 = sld [smem:[#allocation45_spill]] }
  0x5f   : > { %s2535_s16 = scalar_lea.hbm %s3696_s5, 16 }
  0x60   : > { %p2536_p11 = scmp.ne.s32.totalorder %s3696_s5, %s2535_s16  ;;  %p2542_p0 = scmp.lt.u32.totalorder %s2535_s16, %s3696_s5 }
  0x62   : > { %p2538_p12 = pnand %p2536_p11, %p3121_p8 }
  0x64   : > { %p2539_p13 = pneg %p2538_p12 }
  0x66   : > { %p2544_p2 = pnand %p2542_p0, %p2539_p13 }
  0x68   : > { %2547 = shalt.err (!%p2544_p2)
}
  0x69   : > { %s2548_s1 = scalar_lea.vmem %s427_s22, 16  ;;  %s2555_s20 = scalar_lea.vmem %s427_s22, 32 }
  0x6a   : > { %p2549_p4 = scmp.ne.s32.totalorder %s427_s22, %s2548_s1  ;;  %p2556_p5 = scmp.lt.s32.totalorder %s427_s22, %s427_s22 }
  0x6b   : > { %p2557_p10 = scmp.lt.s32.totalorder %s2555_s20, %s2548_s1 }
  0x6c   : > { %p2551_p7 = pnand %p2549_p4, %p3121_p8 }
  0x6d   : > { %p2558_p1 = por %p2557_p10, %p2556_p5 }
  0x6e   : > { %p2552_p9 = pneg %p2551_p7 }
  0x70   : > { %p2559_p3 = pnand %p2558_p1, %p2552_p9 }
  0x72   : > { %2562 = shalt.err (!%p2559_p3)
}
  0x73   : > { %2355 = dma.hbm_to_vmem [thread:$0]  (!%p3105_p6), %s3696_s5, 16, %s427_s22, [#allocation14]  }
  0x74   : > { %s2968_s15 = smov [#allocation16]   ;;  %s2969_s16 = smov [#allocation19]  }
  0x75   : > { %s450_s24 = sshll.u32 %s2968_s15, 4  ;;  %s474_s19 = sshll.u32 %s2969_s16, 4  ;;  %s451_s24 = int_to_ptr.vmem [resolvable:$true] %s450_s24  ;;  %s475_s19 = int_to_ptr.vmem [resolvable:$true] %s474_s19 }
  0x76   : > { %s3697_s7 = sld [smem:[#allocation47_spill]] }
  0x7c   : > { %s2563_s17 = scalar_lea.hbm %s3697_s7, 16 }
  0x7d   : > { %p2564_p1 = scmp.ne.s32.totalorder %s3697_s7, %s2563_s17  ;;  %p2570_p12 = scmp.lt.u32.totalorder %s2563_s17, %s3697_s7 }
  0x7f   : > { %p2566_p3 = pnand %p2564_p1, %p3121_p8 }
  0x81   : > { %p2567_p11 = pneg %p2566_p3 }
  0x83   : > { %p2572_p13 = pnand %p2570_p12, %p2567_p11 }
  0x85   : > { %2575 = shalt.err (!%p2572_p13)
}
  0x86   : > { %s2576_s22 = scalar_lea.vmem %s451_s24, 16  ;;  %s2583_s14 = scalar_lea.vmem %s451_s24, 32 }
  0x87   : > { %p2577_p0 = scmp.ne.s32.totalorder %s451_s24, %s2576_s22  ;;  %p2584_p7 = scmp.lt.s32.totalorder %s451_s24, %s451_s24 }
  0x88   : > { %p2585_p9 = scmp.lt.s32.totalorder %s2583_s14, %s2576_s22 }
  0x89   : > { %p2579_p2 = pnand %p2577_p0, %p3121_p8 }
  0x8a   : > { %p2586_p5 = por %p2585_p9, %p2584_p7 }
  0x8b   : > { %p2580_p4 = pneg %p2579_p2 }
  0x8d   : > { %p2587_p10 = pnand %p2586_p5, %p2580_p4 }
  0x8f   : > { %2590 = shalt.err (!%p2587_p10)
}
  0x90   : > { %2361 = dma.hbm_to_vmem [thread:$0]  (!%p3105_p6), %s3697_s7, 16, %s451_s24, [#allocation17]  }
  0x91   : > { %s2591_s12 = scalar_lea.hbm %s3658_s9, 16 }
  0x92   : > { %p2592_p1 = scmp.ne.s32.totalorder %s3658_s9, %s2591_s12  ;;  %p2598_p12 = scmp.lt.u32.totalorder %s2591_s12, %s3658_s9 }
  0x94   : > { %p2594_p3 = pnand %p2592_p1, %p3121_p8 }
  0x96   : > { %p2595_p11 = pneg %p2594_p3 }
  0x98   : > { %p2600_p13 = pnand %p2598_p12, %p2595_p11 }
  0x9a   : > { %2603 = shalt.err (!%p2600_p13)
}
  0x9b   : > { %s2604_s22 = scalar_lea.vmem %s475_s19, 16  ;;  %s2611_s24 = scalar_lea.vmem %s475_s19, 32 }
  0x9c   : > { %p2605_p0 = scmp.ne.s32.totalorder %s475_s19, %s2604_s22  ;;  %p2612_p7 = scmp.lt.s32.totalorder %s475_s19, %s475_s19 }
  0x9d   : > { %p2613_p9 = scmp.lt.s32.totalorder %s2611_s24, %s2604_s22 }
  0x9e   : > { %p2607_p2 = pnand %p2605_p0, %p3121_p8 }
  0x9f   : > { %p2614_p5 = por %p2613_p9, %p2612_p7 }
  0xa0   : > { %p2608_p4 = pneg %p2607_p2 }
  0xa2   : > { %p2615_p10 = pnand %p2614_p5, %p2608_p4 }
  0xa4   : > { %2618 = shalt.err (!%p2615_p10)
}
  0xa5   : > { %2367 = dma.hbm_to_vmem [thread:$0]  (!%p3105_p6), %s3658_s9, 16, %s475_s19, [#allocation20]  }
  0xa6   : > { %s2970_s16 = smov [#allocation12]   ;;  %s2971_s21 = smov [#allocation15]  }
  0xa7   : > { %s412_s13 = sshll.u32 %s2970_s16, 4  ;;  %s436_s12 = sshll.u32 %s2971_s21, 4  ;;  %s413_s13 = int_to_ptr.vmem [resolvable:$true] %s412_s13  ;;  %s437_s12 = int_to_ptr.vmem [resolvable:$true] %s436_s12 }
  0xa8   : > { %s3698_s4 = sld [smem:[#allocation44_spill]] }
  0xae   : > { %s2619_s20 = scalar_lea.hbm %s3698_s4, 512 }
  0xaf   : > { %p2620_p1 = scmp.ne.s32.totalorder %s3698_s4, %s2619_s20  ;;  %p2626_p12 = scmp.lt.u32.totalorder %s2619_s20, %s3698_s4 }
  0xb1   : > { %p2622_p3 = pnand %p2620_p1, %p3121_p8 }
  0xb3   : > { %p2623_p11 = pneg %p2622_p3 }
  0xb5   : > { %p2628_p13 = pnand %p2626_p12, %p2623_p11 }
  0xb7   : > { %2631 = shalt.err (!%p2628_p13)
}
  0xb8   : > { %s2632_s19 = scalar_lea.vmem %s413_s13, 512  ;;  %p2640_p7 = scmp.lt.s32.totalorder %s413_s13, %s413_s13 }
  0xb9   : > { %p2633_p0 = scmp.ne.s32.totalorder %s413_s13, %s2632_s19  ;;  %p2641_p9 = scmp.lt.s32.totalorder %s2632_s19, %s2632_s19 }
  0xbb   : > { %p2635_p2 = pnand %p2633_p0, %p3121_p8  ;;  %p2642_p5 = por %p2641_p9, %p2640_p7 }
  0xbd   : > { %p2636_p4 = pneg %p2635_p2 }
  0xbf   : > { %p2643_p10 = pnand %p2642_p5, %p2636_p4 }
  0xc1   : > { %2646 = shalt.err (!%p2643_p10)
}
  0xc2   : > { %s3699_s15 = smov 128   ;;  %s3700_s6 = sld [smem:[#allocation46_spill]] }
  0xc3   : > { %2352 = dma.hbm_to_vmem [thread:$0]  (!%p3105_p6), %s3698_s4, 512, %s413_s13, [#allocation11], %s3699_s15, %s3699_s15, %s2967_s23  }
  0xc8   : > { %s2647_s20 = scalar_lea.hbm %s3700_s6, 512 }
  0xc9   : > { %p2648_p1 = scmp.ne.s32.totalorder %s3700_s6, %s2647_s20  ;;  %p2654_p12 = scmp.lt.u32.totalorder %s2647_s20, %s3700_s6 }
  0xcb   : > { %p2650_p3 = pnand %p2648_p1, %p3121_p8 }
  0xcd   : > { %p2651_p11 = pneg %p2650_p3 }
  0xcf   : > { %p2656_p13 = pnand %p2654_p12, %p2651_p11 }
  0xd1   : > { %2659 = shalt.err (!%p2656_p13)
}
  0xd2   : > { %s2660_s19 = scalar_lea.vmem %s437_s12, 512  ;;  %p2668_p7 = scmp.lt.s32.totalorder %s437_s12, %s437_s12 }
  0xd3   : > { %p2661_p0 = scmp.ne.s32.totalorder %s437_s12, %s2660_s19  ;;  %p2669_p9 = scmp.lt.s32.totalorder %s2660_s19, %s2660_s19 }
  0xd5   : > { %p2663_p2 = pnand %p2661_p0, %p3121_p8  ;;  %p2670_p5 = por %p2669_p9, %p2668_p7 }
  0xd7   : > { %p2664_p4 = pneg %p2663_p2 }
  0xd9   : > { %p2671_p10 = pnand %p2670_p5, %p2664_p4 }
  0xdb   : > { %2674 = shalt.err (!%p2671_p10)
}
  0xdc   : > { %2358 = dma.hbm_to_vmem [thread:$0]  (!%p3105_p6), %s3700_s6, 512, %s437_s12, [#allocation14], %s3699_s15, %s3699_s15, %s2967_s23  }
  0xdd   : > { %s2972_s21 = smov [#allocation18]   ;;  %s2973_s1 = smov [#allocation21]  }
  0xde   : > { %s460_s17 = sshll.u32 %s2972_s21, 4  ;;  %s484_s20 = sshll.u32 %s2973_s1, 4  ;;  %s461_s17 = int_to_ptr.vmem [resolvable:$true] %s460_s17  ;;  %s485_s20 = int_to_ptr.vmem [resolvable:$true] %s484_s20 }
  0xdf   : > { %s2675_s24 = scalar_lea.hbm %s3657_s8, 512 }
  0xe0   : > { %p2676_p1 = scmp.ne.s32.totalorder %s3657_s8, %s2675_s24  ;;  %p2682_p12 = scmp.lt.u32.totalorder %s2675_s24, %s3657_s8 }
  0xe2   : > { %p2678_p3 = pnand %p2676_p1, %p3121_p8 }
  0xe4   : > { %p2679_p11 = pneg %p2678_p3 }
  0xe6   : > { %p2684_p13 = pnand %p2682_p12, %p2679_p11 }
  0xe8   : > { %2687 = shalt.err (!%p2684_p13)
}
  0xe9   : > { %s2688_s12 = scalar_lea.vmem %s461_s17, 512  ;;  %p2696_p7 = scmp.lt.s32.totalorder %s461_s17, %s461_s17 }
  0xea   : > { %p2689_p0 = scmp.ne.s32.totalorder %s461_s17, %s2688_s12  ;;  %p2697_p9 = scmp.lt.s32.totalorder %s2688_s12, %s2688_s12 }
  0xec   : > { %p2691_p2 = pnand %p2689_p0, %p3121_p8  ;;  %p2698_p5 = por %p2697_p9, %p2696_p7 }
  0xee   : > { %p2692_p4 = pneg %p2691_p2 }
  0xf0   : > { %p2699_p10 = pnand %p2698_p5, %p2692_p4 }
  0xf2   : > { %2702 = shalt.err (!%p2699_p10)
}
  0xf3   : > { %2364 = dma.hbm_to_vmem [thread:$0]  (!%p3105_p6), %s3657_s8, 512, %s461_s17, [#allocation17], %s3699_s15, %s3699_s15, %s2967_s23  }
  0xf4   : > { %s2703_s0 = scalar_lea.hbm %s3659_s10, 384 }
  0xf5   : > { %p2704_p1 = scmp.ne.s32.totalorder %s3659_s10, %s2703_s0  ;;  %p2710_p12 = scmp.lt.u32.totalorder %s2703_s0, %s3659_s10 }
  0xf7   : > { %p2706_p3 = pnand %p2704_p1, %p3121_p8 }
  0xf9   : > { %p2707_p11 = pneg %p2706_p3 }
  0xfb   : > { %p2712_p13 = pnand %p2710_p12, %p2707_p11 }
  0xfd   : > { %2715 = shalt.err (!%p2712_p13)
}
  0xfe   : > { %s2716_s13 = scalar_lea.vmem %s485_s20, 384  ;;  %p2724_p7 = scmp.lt.s32.totalorder %s485_s20, %s485_s20 }
  0xff   : > { %p2717_p0 = scmp.ne.s32.totalorder %s485_s20, %s2716_s13  ;;  %p2725_p9 = scmp.lt.s32.totalorder %s2716_s13, %s2716_s13 }
 0x101   : > { %p2719_p2 = pnand %p2717_p0, %p3121_p8  ;;  %p2726_p5 = por %p2725_p9, %p2724_p7 }
 0x103   : > { %p2720_p4 = pneg %p2719_p2 }
 0x105   : > { %p2727_p10 = pnand %p2726_p5, %p2720_p4 }
 0x107   : > { %2730 = shalt.err (!%p2727_p10)
}
 0x108   : > { %2370 = dma.hbm_to_vmem [thread:$0]  (!%p3105_p6), %s3659_s10, 384, %s485_s20, [#allocation20], %s3699_s15, %s3699_s15, %s2967_s23  }
 0x109   : > { %s2974_s2 = smov [#allocation22]   ;;  %s2731_s0 = scalar_lea.hbm %s3660_s11, 1024 }
 0x10a   : > { %s497_s16 = sshll.u32 %s2974_s2, 4  ;;  %p2732_p1 = scmp.ne.s32.totalorder %s3660_s11, %s2731_s0  ;;  %s498_s16 = int_to_ptr.vmem [resolvable:$true] %s497_s16 }
 0x10b   : > { %p2738_p12 = scmp.lt.u32.totalorder %s2731_s0, %s3660_s11 }
 0x10c   : > { %p2734_p3 = pnand %p2732_p1, %p3121_p8 }
 0x10e   : > { %p2735_p11 = pneg %p2734_p3 }
 0x110   : > { %p2740_p13 = pnand %p2738_p12, %p2735_p11 }
 0x112   : > { %2743 = shalt.err (!%p2740_p13)
}
 0x113   : > { %s2744_s23 = scalar_lea.vmem %s498_s16, 1024  ;;  %p2752_p7 = scmp.lt.s32.totalorder %s498_s16, %s498_s16 }
 0x114   : > { %p2745_p0 = scmp.ne.s32.totalorder %s498_s16, %s2744_s23  ;;  %p2753_p9 = scmp.lt.s32.totalorder %s2744_s23, %s2744_s23 }
 0x116   : > { %p2747_p2 = pnand %p2745_p0, %p3121_p8  ;;  %p2754_p5 = por %p2753_p9, %p2752_p7 }
 0x118   : > { %p2748_p4 = pneg %p2747_p2 }
 0x11a   : > { %p2755_p10 = pnand %p2754_p5, %p2748_p4 }
 0x11c   : > { %2758 = shalt.err (!%p2755_p10)
}
 0x11d   : > { %s2975_s15 = smov 512   ;;  %s3701_s20 = sld [smem:[#allocation38_spill]] }
 0x11e   : > { %s2976_s28 = smov 32   ;;  %s2039_s12 = sadd.s32 4294967294, %s2961_s30  }
 0x11f   : > { %2373 = dma.hbm_to_vmem [thread:$0]  (!%p3105_p6), %s3660_s11, 1024, %s498_s16, [#allocation23], %s2975_s15, %s2975_s15, %s2976_s28  }
 0x120   : > { %s53_s2 = sadd.s32 1, %s2957_s29  ;;  %s60_s21 = sadd.s32 1, %s2949_s27 }
 0x121   : > { %p55_p8 = scmp.ge.s32.totalorder %s53_s2, 2  ;;  %p67_p1 = scmp.ne.s32.totalorder %s2949_s27, %s2945_s26 }
 0x122   : > { %p68_p3 = scmp.eq.s32.totalorder %s2961_s30, 0  ;;  %p73_p12 = scmp.ne.s32.totalorder %s2945_s26, %s2941_s25 }
 0x123   : > { %s3743_s2 = smov (%p55_p8, %s53_s2), 0  ;;  %p335_p6 = scmp.eq.s32.totalorder %s3701_s20, 1 }
 0x124   : > { %p3334_p11 = por %p68_p3, %p67_p1  ;;  %s57_s18 = ssub.s32 %s2957_s29, %s3743_s2 }
 0x125   : > { %p58_p13 = scmp.eq.s32.totalorder %s57_s18, 0  ;;  %p3703_p0 = scmp.eq.s32.totalorder %s3701_s20, 0 }
 0x126   : > { %p3349_p4 = por %p335_p6, %p67_p1  ;;  %p341_p7 = scmp.eq.s32.totalorder %s2039_s12, 1 }
 0x127   : > { %p3345_p2 = por %p3703_p0, %p73_p12  ;;  %p2398_p5 = scmp.lt.s32.totalorder %s2961_s30, 2 }
 0x128   : > { %s3705_s0 = scalar_select %p3349_p4, 1, 0 }
 0x129   : > { %s3704_s16 = scalar_select %p3345_p2, 1, 0 }
 0x12a   : > { %s3354_s22 = scalar_select %p58_p13, %s2949_s27, %s60_s21  }
 0x12b   : > { %p3356_p9 = por %p341_p7, %p73_p12  ;;  %s3362_s14 = sand.u32 1, %s2949_s27  }
 0x12c   : > { %s2052_s19 = sshll.u32 %s2957_s29, 4  ;;  %s3707_s20 = sld [smem:[#allocation40_spill]] }
 0x12d   : > { %s3706_s24 = scalar_select %p3356_p9, 1, 0 }
 0x12e   : > { %s514_s13 = scalar_lea.vmem [#allocation4], %s3362_s14  ;;  %p3375_p10 = pnand %p2398_p5, %p3334_p11 }
 0x12f   : > { %s521_s17 = sshll.u32 %s514_s13, 4  ;;  %s512_s23 = scalar_lea.sflag [#allocation5], %s3362_s14  ;;  %s3371_s17 = int_to_ptr.vmem [resolvable:$true] %s521_s17 }
 0x130   : > { %p2761_p1 = pneg %p3375_p10 }
 0x132   : > { %s3368_s28 = scalar_lea.hbm %s3707_s20, %s2052_s19  ;;  %s2764_s1 = scalar_lea.hbm %s3707_s20, 32 }
 0x133   : > { %s2759_s19 = scalar_lea.hbm %s3368_s28, 16  ;;  %p2765_p11 = scmp.lt.u32.totalorder %s3368_s28, %s3707_s20 }
 0x134   : > { %p2760_p8 = scmp.ne.s32.totalorder %s3368_s28, %s2759_s19  ;;  %p2766_p6 = scmp.lt.u32.totalorder %s2764_s1, %s2759_s19 }
 0x135   : > { %p2768_p0 = scmp.lt.u32.totalorder %s2759_s19, %s3368_s28 }
 0x136   : > { %p2762_p3 = pnand %p2761_p1, %p2760_p8  ;;  %p2767_p13 = por %p2766_p6, %p2765_p11 }
 0x138   : > { %p2763_p12 = pneg %p2762_p3  ;;  %p2769_p7 = por %p2768_p0, %p2767_p13 }
 0x13a   : > { %p2770_p5 = pnand %p2769_p7, %p2763_p12 }
 0x13c   : > { %2773 = shalt.err (!%p2770_p5)
}
 0x13d   : > { %s2774_s21 = scalar_lea.vmem %s3371_s17, 16  ;;  %s2977_s15 = smov [#allocation4]  }
 0x13e   : > { %p2775_p8 = scmp.ne.s32.totalorder %s3371_s17, %s2774_s21  ;;  %s2779_s13 = sshll.u32 %s2977_s15, 4  ;;  %s2780_s13 = int_to_ptr.vmem [resolvable:$false] %s2779_s13 }
 0x13f   : > { %s2781_s3 = scalar_lea.vmem %s2780_s13, 32  ;;  %p2782_p4 = scmp.lt.s32.totalorder %s3371_s17, %s2780_s13 }
 0x140   : > { %p2777_p3 = pnand %p2775_p8, %p2761_p1  ;;  %p2783_p11 = scmp.lt.s32.totalorder %s2781_s3, %s2774_s21 }
 0x142   : > { %p2778_p9 = pneg %p2777_p3  ;;  %p2784_p6 = por %p2783_p11, %p2782_p4 }
 0x144   : > { %p2785_p13 = pnand %p2784_p6, %p2778_p9 }
 0x146   : > { %2788 = shalt.err (!%p2785_p13)
}
 0x147   : > { %2377 = dma.hbm_to_vmem [thread:$0]  (!%p3375_p10), %s3368_s28, 16, %s3371_s17, %s512_s23  }
 0x148   : > { %s2054_s4 = sshll.u32 %s2957_s29, 7  ;;  %s3709_s15 = sld [smem:[#allocation41_spill]] }
 0x149   : > { %s3710_s13 = sshll.u32 %s3362_s14, 3  ;;  %s3711_s5 = sand.u32 1, %s2961_s30  }
 0x14a   : > { %s532_s21 = scalar_lea.vmem [#allocation7], %s3710_s13  ;;  %s529_s6 = scalar_lea.sflag [#allocation8], %s3711_s5 }
 0x14b   : > { %s539_s3 = sshll.u32 %s532_s21, 4  ;;  %s540_s3 = int_to_ptr.vmem [resolvable:$true] %s539_s3 }
 0x14e   : > { %s3411_s18 = scalar_lea.hbm %s3709_s15, %s2054_s4  ;;  %s2794_s23 = scalar_lea.hbm %s3709_s15, 256 }
 0x14f   : > { %s2789_s7 = scalar_lea.hbm %s3411_s18, 128  ;;  %p2795_p0 = scmp.lt.u32.totalorder %s3411_s18, %s3709_s15 }
 0x150   : > { %p2790_p4 = scmp.ne.s32.totalorder %s3411_s18, %s2789_s7  ;;  %p2796_p7 = scmp.lt.u32.totalorder %s2794_s23, %s2789_s7 }
 0x151   : > { %p2798_p8 = scmp.lt.u32.totalorder %s2789_s7, %s3411_s18 }
 0x152   : > { %p2792_p9 = pnand %p2790_p4, %p2761_p1  ;;  %p2797_p5 = por %p2796_p7, %p2795_p0 }
 0x154   : > { %p2793_p12 = pneg %p2792_p9  ;;  %p2799_p3 = por %p2798_p8, %p2797_p5 }
 0x156   : > { %p2800_p11 = pnand %p2799_p3, %p2793_p12 }
 0x158   : > { %2803 = shalt.err (!%p2800_p11)
}
 0x159   : > { %s2804_s5 = scalar_lea.vmem %s540_s3, 128  ;;  %s2978_s19 = smov [#allocation7]  }
 0x15a   : > { %p2805_p6 = scmp.ne.s32.totalorder %s540_s3, %s2804_s5  ;;  %s2809_s1 = sshll.u32 %s2978_s19, 4  ;;  %s2810_s1 = int_to_ptr.vmem [resolvable:$false] %s2809_s1 }
 0x15b   : > { %s2811_s13 = scalar_lea.vmem %s2810_s1, 256  ;;  %p2812_p9 = scmp.lt.s32.totalorder %s540_s3, %s2810_s1 }
 0x15c   : > { %p2807_p13 = pnand %p2805_p6, %p2761_p1  ;;  %p2813_p2 = scmp.lt.s32.totalorder %s2811_s13, %s2804_s5 }
 0x15e   : > { %p2808_p4 = pneg %p2807_p13  ;;  %p2814_p0 = por %p2813_p2, %p2812_p9 }
 0x160   : > { %p2815_p7 = pnand %p2814_p0, %p2808_p4 }
 0x162   : > { %2818 = shalt.err (!%p2815_p7)
}
 0x163   : > { %2380 = dma.hbm_to_vmem [thread:$0]  (!%p3375_p10), %s3411_s18, 128, %s540_s3, %s529_s6  }
 0x164   : > { %s3712_s7 = sld [smem:[#allocation39_spill]] }
 0x16a   : > { %p3713_p12 = scmp.ne.s32.totalorder %s3712_s7, 0 }
 0x16b   : > { %s3439_s21 = sand.u32 (!%p3713_p12), 1, %s2945_s26   ;;  %p3714_p1 = scmp.ne.s32.totalorder (!%p3713_p12), %s3704_s16, 0 }
 0x16c   : > { %548 = sbr.rel (%p3713_p12) target bundleno = 1301 (0x515), region = 68  ;;  %s551_s28 = scalar_lea.sflag (!%p3713_p12), [#allocation5], %s3439_s21 }
 0x16d   : > { %s553_s17 = scalar_lea.vmem (!%p3713_p12), [#allocation4], %s3439_s21 }
 0x173   : > { %2900 = dma.done.wait (%p3714_p1), %s551_s28, 16  }
 0x174   : > { %2902 = vsyncadd (%p3714_p1), %s551_s28, 4294967280  ;;  %s3715_s23 = sld [smem:[#allocation38_spill]]  ;;  %s2056_s12 = sshll.u32 %s3439_s21, 3 }
 0x175   : > { %s3451_s3 = scalar_lea.vmem [#allocation7], %s2056_s12 }
 0x17a   : > { %s558_s6 = sand.u32 1, %s3715_s23  }
 0x17b   : > { %s559_s18 = scalar_lea.sflag [#allocation8], %s558_s6 }
 0x17c   : > { %2904 = dma.done.wait (%p3714_p1), %s559_s18, 128  }
 0x17d   : > { %2906 = vsyncadd (%p3714_p1), %s559_s18, 4294967168  ;;  %p3716_p2 = scmp.eq.s32.totalorder %s3715_s23, 0 }
 0x17f   : > { %2908 = dma.done.wait (%p3716_p2), [#allocation8], 512   ;;  %p3717_p10 = pmov %p3716_p2 }
 0x180   : > { %p3718_p5 = pmov %p3716_p2 }
 0x181   : > { %2910 = vsyncadd (%p3717_p10), [#allocation8], 4294966784 }
 0x182   : > { %2912 = dma.done.wait (%p3718_p5), [#allocation11], 528   ;;  %p3719_p8 = pmov %p3716_p2 }
 0x183   : > { %p3720_p3 = pmov %p3716_p2 }
 0x184   : > { %2914 = vsyncadd (%p3719_p8), [#allocation11], 4294966768 }
 0x185   : > { %2916 = dma.done.wait (%p3720_p3), [#allocation14], 528   ;;  %p3721_p11 = pmov %p3716_p2 }
 0x186   : > { %p3722_p6 = pmov %p3716_p2 }
 0x187   : > { %2918 = vsyncadd (%p3721_p11), [#allocation14], 4294966768 }
 0x188   : > { %2920 = dma.done.wait (%p3722_p6), [#allocation17], 528   ;;  %p3723_p13 = pmov %p3716_p2 }
 0x189   : > { %p3724_p4 = pmov %p3716_p2 }
 0x18a   : > { %2922 = vsyncadd (%p3723_p13), [#allocation17], 4294966768 }
 0x18b   : > { %2924 = dma.done.wait (%p3724_p4), [#allocation20], 400   ;;  %p3725_p9 = pmov %p3716_p2 }
 0x18c   : > { %p3726_p0 = pmov %p3716_p2 }
 0x18d   : > { %2926 = vsyncadd (%p3725_p9), [#allocation20], 4294966896 }
 0x18e   : > { %2928 = dma.done.wait (%p3726_p0), [#allocation23], 1024   ;;  %p3727_p7 = pmov %p3726_p0 }
 0x18f   : > { %v2979_v0 = vmov 0.0|0.0   ;;  %vm2980_vm0 = vmmov 0   ;;  %v2981_v1 = vmov 0.0   ;;  %v659_v2 = vld [vmem:[#allocation12] sm:$0xff]  ;;  %v660_v3 = vld [vmem:[#allocation12 + $0x8] sm:$0xff]  ;;  %v661_v4 = vld [vmem:[#allocation12 + $0x10] sm:$0xff] }
 0x190   : > { %2930 = vsyncadd (%p3727_p7), [#allocation23], 4294966272  ;;  %2252 = vmatprep.subr.bf16.mxu0 %v2979_v0  ;;  %2154 = vmatprep.mubr.msk.f32.mxu0 %vm2980_vm0, %v2981_v1  ;;  %v2253_v5 = vpack.c.bf16 %v660_v3, %v659_v2  ;;  %v662_v6 = vld [vmem:[#allocation12 + $0x18] sm:$0xff]  ;;  %v747_v8 = vld [vmem:[#allocation18] sm:$0xff]  ;;  %vm670_vm1 = vcmask 261120   ;;  %vm1016_vm2 = vcmask 1040384  }
 0x191   : > { %2258 = vmatprep.subr.bf16.mxu1 %v2979_v0  ;;  %2165 = vmatprep.mubr.msk.f32.mxu1 %vm2980_vm0, %v2981_v1  ;;  %v2256_v7 = vpack.c.bf16 %v662_v6, %v661_v4  ;;  %v748_v9 = vld [vmem:[#allocation18 + $0x8] sm:$0xff]  ;;  %v749_v10 = vld [vmem:[#allocation18 + $0x10] sm:$0xff]  ;;  %v837_v11 = vld [vmem:[#allocation9] sm:$0xff]  ;;  %vm831_vm4 = vcmask 130048   ;;  %vm1012_vm7 = vcmask 138240   ;;  %vm2982_vm8 = vmmov 1  }
 0x192   : > { %2254 = vmatpush3.bf16.msra.mxu0 %v2253_v5  ;;  %v838_v12 = vld [vmem:[#allocation9 + $0x8] sm:$0xff]  ;;  %v2259_v13 = vpack.c.bf16 %v748_v9, %v747_v8  ;;  %v750_v14 = vld [vmem:[#allocation18 + $0x18] sm:$0xff]  ;;  %v839_v18 = vld [vmem:[#allocation9 + $0x10] sm:$0xff]  ;;  %vm1182_vm11 = vcmask 72704   ;;  %v1171_v9 = vlaneseq  ;;  %vm1177_vm14 = vcmask 64512   ;;  %s646_s16 = scalar_lea.vmem [#allocation24], %s2056_s12 }
 0x193   : > { %2255 = vmatprep.subr.bf16.mxu0 %v2979_v0  ;;  %v2262_v15 = vpack.c.bf16 %v750_v14, %v749_v10  ;;  %v658_v16 = vld [vmem:[%s3451_s3] sm:$0xff]  ;;  %v2265_v17 = vpack.c.bf16 %v838_v12, %v837_v11  ;;  %v925_v21 = vld [vmem:[#allocation15] sm:$0xff]  ;;  %v2069_v31 = vld [vmem:[#allocation13] ss:$0 sm:$0xff]  ;;  %s3730_s14 = sld [smem:[#allocation37_spill]]  ;;  %s3731_s1 = sld [smem:[#allocation48_spill]] }
 0x194   : > { %2260 = vmatpush3.bf16.msra.mxu1 %v2259_v13  ;;  %v840_v19 = vld [vmem:[#allocation9 + $0x18] sm:$0xff]  ;;  %v926_v22 = vld [vmem:[#allocation15 + $0x8] sm:$0xff]  ;;  %v2071_v35 = vld [vmem:[#allocation19] ss:$0 sm:$0xff]  ;;  %v1172_v11 = vshrl.u32 %v1171_v9, 7  ;;  %v2983_v13 = vmov 0  }
 0x195   : > { %2261 = vmatprep.subr.bf16.mxu1 %v2979_v0  ;;  %v2268_v20 = vpack.c.bf16 %v840_v19, %v839_v18  ;;  %v2271_v23 = vpack.c.bf16 %v926_v22, %v925_v21  ;;  %v927_v24 = vld [vmem:[#allocation15 + $0x10] sm:$0xff]  ;;  %v928_v25 = vld [vmem:[#allocation15 + $0x18] sm:$0xff]  ;;  %v1009_v27 = vld [vmem:[#allocation21] sm:$0xff]  ;;  %s1791_s7 = sshll.u32 %s646_s16, 4  ;;  %s1772_s28 = scalar_lea.sflag [#allocation6], %s3439_s21  ;;  %s1792_s7 = int_to_ptr.vmem [resolvable:$true] %s1791_s7 }
 0x196   : > { %2257 = vmatpush3.bf16.msra.mxu0 %v2256_v7  ;;  %v2274_v26 = vpack.c.bf16 %v928_v25, %v927_v24  ;;  %v1010_v28 = vld [vmem:[#allocation21 + $0x8] sm:$0xff]  ;;  %v1011_v30 = vld [vmem:[#allocation21 + $0x10] sm:$0x1]  ;;  %v2073_v41 = vld [vmem:[#allocation10] ss:$0 sm:$0xff]  ;;  %v1173_v12 = vsub.s32 0, %v1172_v11 }
 0x197   : > { %2264 = vmatprep.subr.bf16.mxu0 %v2979_v0  ;;  %v2277_v29 = vpack.c.bf16 %v1010_v28, %v1009_v27  ;;  %v2075_v52 = vld [vmem:[#allocation16] ss:$0 sm:$0xff]  ;;  %v1181_v54 = vld [vmem:[#allocation22 + $0x20] sm:$0x1]  ;;  %vm3521_vm9 = vmpackc.low %vm1016_vm2, %vm2982_vm8  ;;  %p3732_p1 = scmp.ne.s32.totalorder %s3705_s0, 0  ;;  %s2984_s23 = smov [#allocation24]  }
 0x198   : > { %2263 = vmatpush3.bf16.msra.mxu1 %v2262_v15  ;;  %v1180_v53 = vld [vmem:[#allocation22] sm:$0xff]  ;;  %v1330_v58 = vld [vmem:[#allocation22 + $0x8] sm:$0xff]  ;;  %v1477_v2 = vld [vmem:[#allocation22 + $0x10] sm:$0xff]  ;;  %s2823_s6 = sshll.u32 %s2984_s23, 4  ;;  %s2824_s6 = int_to_ptr.vmem [resolvable:$false] %s2823_s6 }
 0x199   : > { %2155 = vmatmul.mubr.msk.f32.vlgmr.msra.gmra.mrb[0].mxu0 %vm670_vm1, %v658_v16  ;;  %2270 = vmatprep.subr.bf16.mxu1 %v2979_v0  ;;  %v2280_v56 = vpack.c.bf16 %v1181_v54, %v1180_v53  ;;  %v1331_v59 = vld [vmem:[#allocation22 + $0x28] sm:$0x1]  ;;  %v1478_v3 = vld [vmem:[#allocation22 + $0x30] sm:$0x1]  ;;  %v1624_v6 = vld [vmem:[#allocation22 + $0x18] sm:$0xff]  ;;  %s2094_s4 = sshll.u32 %s3730_s14, 7  ;;  %p2826_p5 = scmp.lt.s32.totalorder %s1792_s7, %s2824_s6 }
 0x19a   : > { %2266 = vmatpush3.bf16.msra.mxu0 %v2265_v17  ;;  %2176 = vmatprep.mubr.msk.f32.mxu0 %vm2980_vm0, %v2981_v1  ;;  %v2284_v63 = vpack.c.bf16 %v1331_v59, %v1330_v58  ;;  %v2288_v5 = vpack.c.bf16 %v1478_v3, %v1477_v2  ;;  %v1625_v7 = vld [vmem:[#allocation22 + $0x38] sm:$0x1]  ;;  %v1168_v10 = vld [vmem:[%s553_s17] sm:$0x1]  ;;  %s3569_s13 = scalar_lea.hbm %s3731_s1, %s2094_s4  ;;  %s2819_s17 = scalar_lea.vmem %s1792_s7, 128 }
 0x19b   : > { %2267 = vmatprep.subr.bf16.mxu0 %v2979_v0  ;;  %2166 = vmatmul.mubr.msk.f32.vlgmr.msra.gmra.mrb[0].mxu1 %vm670_vm1, %v658_v16  ;;  %v2292_v8 = vpack.c.bf16 %v1625_v7, %v1624_v6  ;;  %vm1169_vm12 = vcmp.ne.s32.totalorder %v1168_v10, 0  ;;  %p2820_p12 = scmp.ne.s32.totalorder %s1792_s7, %s2819_s17  ;;  %s2825_s12 = scalar_lea.vmem %s2824_s6, 256 }
 0x19c   : > { %2187 = vmatprep.mubr.msk.f32.mxu1 %vm2980_vm0, %v2981_v1  ;;  %2272 = vmatpush3.bf16.msra.mxu1 %v2271_v23  ;;  %v1170_v14 = vsel %vm1169_vm12, 1, %v2983_v13  ;;  %p2827_p8 = scmp.lt.s32.totalorder %s2825_s12, %s2819_s17 }
 0x19d   : > { %2273 = vmatprep.subr.bf16.mxu1 %v2979_v0  ;;  %p2821_p2 = pnand %p2820_p12, %p3732_p1 }
 0x19e   : > { %2269 = vmatpush3.bf16.msra.mxu0 %v2268_v20  ;;  %p2828_p3 = por %p2827_p8, %p2826_p5 }
 0x19f   : > { %2276 = vmatprep.subr.bf16.mxu0 %v2979_v0  ;;  %p2822_p10 = pneg %p2821_p2 }
 0x1a0   : > { %2275 = vmatpush3.bf16.msra.mxu1 %v2274_v26 }
 0x1a1   : > { %2177 = vmatmul.mubr.msk.f32.vlgmr.msra.gmra.mrb[2].mxu0 %vm670_vm1, %v658_v16  ;;  %2199 = vmatprep.subr.mxu1 %v2981_v1  ;;  %p2829_p11 = pnand %p2828_p3, %p2822_p10 }
 0x1a2   : > { %2196 = vmatprep.mubr.msk.f32.mxu0 %vm2980_vm0, %v2981_v1  ;;  %2278 = vmatpush3.bf16.msra.mxu0 %v2277_v29 }
 0x1a3   : > { %2188 = vmatmul.mubr.msk.f32.vlgmr.msra.gmra.mrb[2].mxu1 %vm670_vm1, %v658_v16  ;;  %2194 = vmatprep.subr.mxu0 %v2981_v1 }
 0x1a4   : > { %2201 = vmatprep.mubr.msk.f32.mxu1 %vm2980_vm0, %v2981_v1 }
 0x1a6   : > { %2195 = vmatpush3.msk.msra.mxu0 %vm1016_vm2, %v1011_v30 }
 0x1a7   : > { %2211 = vmatprep.subr.mxu0 %v2981_v1 }
 0x26c   : > { %v740_v32 = vpop.f32.mrb[0].mxu0 }
 0x26d   : > { %v741_v33 = vadd.f32 %v2069_v31, %v740_v32  ;;  %v2156_v34 = vpop.f32.mrb[1].mxu0 }
 0x26e   : > { %v824_v37 = vpop.f32.mrb[0].mxu1 }
 0x26f   : > { %vm744_vm3 = vcmp.gt.f32.partialorder %v741_v33, 0.0  ;;  %v745_v36 = vmul.f32 0.1, %v741_v33  ;;  %v825_v38 = vadd.f32 %v2071_v35, %v824_v37  ;;  %v2167_v39 = vpop.f32.mrb[1].mxu1 }
 0x271   : > { %v746_v40 = vsel %vm744_vm3, %v741_v33, %v745_v36  ;;  %v829_v43 = vmul.f32 0.1, %v825_v38  ;;  %vm828_vm5 = vcmp.gt.f32.partialorder %v825_v38, 0.0 }
 0x272   : > { %832 = vst.msk [vmem:[#allocation2] sm:$0xff] %vm831_vm4, %v746_v40 }
 0x273   : > { %v3512_v47 = vsel %vm828_vm5, %v825_v38, %v829_v43 }
 0x274   : > { %v918_v42 = vpop.f32.mrb[2].mxu0 }
 0x275   : > { %v919_v44 = vadd.f32 %v2073_v41, %v918_v42  ;;  %v2178_v45 = vpop.f32.mrb[3].mxu0 }
 0x276   : > { %v1002_v50 = vpop.f32.mrb[2].mxu1 }
 0x277   : > { %vm922_vm6 = vcmp.gt.f32.partialorder %v919_v44, 0.0  ;;  %v923_v46 = vmul.f32 0.1, %v919_v44  ;;  %v2189_v51 = vpop.f32.mrb[3].mxu1  ;;  %v1003_v55 = vadd.f32 %v2075_v52, %v1002_v50 }
 0x279   : > { %v924_v48 = vsel %vm922_vm6, %v919_v44, %v923_v46  ;;  %v1090_v49 = vld [vmem:[#allocation2] sm:$0xff]  ;;  %v1007_v60 = vmul.f32 0.1, %v1003_v55  ;;  %vm1006_vm10 = vcmp.gt.f32.partialorder %v1003_v55, 0.0 }
 0x27a   : > { %2197 = vmatmul.mubr.msk.f32.vlgmr.msra.gmra.mrb[4].mxu0 %vm1012_vm7, %v924_v48  ;;  %2200 = vmatpush3.xpose.msk.msra.mxu1 %vm831_vm4, %v1090_v49 }
 0x27b   : > { %2212 = vmatpush3.xpose.msra.mxu0 %v3512_v47  ;;  %2279 = vmatprep.subr.bf16.mxu1 %v2979_v0  ;;  %v1008_v4 = vsel %vm1006_vm10, %v1003_v55, %v1007_v60 }
 0x27c   : > { %2213 = vmatprep.mubr.msk.f32.mxu0 %vm2980_vm0, %v2981_v1  ;;  %2223 = vmatprep.subr.mxu0 %v2981_v1 }
 0x34d   : > { %v1086_v61 = vpop.f32.mrb[4].mxu0 }
 0x34e   : > { %v2198_v62 = vpop.f32.mrb[5].mxu0  ;;  %2202 = vmatmul.mubr.msk.f32.vlgmr.msra.gmra.mrb[4].mxu1 %vm831_vm4, %v1086_v61 }
 0x34f   : > { %2282 = vmatpush3.bf16.msk.msra.mxu1 %vm3521_vm9, %v2280_v56  ;;  %2208 = vmatprep.mubr.msk.f32.mxu1 %vm2980_vm0, %v2981_v1 }
 0x350   : > { %2283 = vmatprep.subr.bf16.mxu1 %v2979_v0 }
 0x352   : > { %2209 = vmatmul.mubr.msk.f32.vlgmr.msra.gmra.mrb[6].mxu1 %vm1182_vm11, %v1008_v4 }
 0x353   : > { %2286 = vmatpush3.bf16.msk.msra.mxu1 %vm3521_vm9, %v2284_v63  ;;  %2220 = vmatprep.mubr.msk.f32.mxu1 %vm2980_vm0, %v2981_v1 }
 0x354   : > { %2287 = vmatprep.subr.bf16.mxu1 %v2979_v0 }
 0x356   : > { %2221 = vmatmul.mubr.msk.f32.vlgmr.msra.gmra.mrb[8].mxu1 %vm1182_vm11, %v1008_v4 }
 0x357   : > { %2290 = vmatpush3.bf16.msk.msra.mxu1 %vm3521_vm9, %v2288_v5  ;;  %2232 = vmatprep.mubr.msk.f32.mxu1 %vm2980_vm0, %v2981_v1 }
 0x358   : > { %2291 = vmatprep.subr.bf16.mxu1 %v2979_v0  ;;  %v1174_v0 = vrot.slane %v1170_v14, %v1173_v12 }
 0x35a   : > { %2233 = vmatmul.mubr.msk.f32.vlgmr.msra.gmra.mrb[10].mxu1 %vm1182_vm11, %v1008_v4  ;;  %vm1175_vm13 = vcmp.eq.s32.totalorder %v1174_v0, 1 }
 0x35b   : > { %2294 = vmatpush3.bf16.msk.msra.mxu1 %vm3521_vm9, %v2292_v8  ;;  %2244 = vmatprep.mubr.msk.f32.mxu1 %vm2980_vm0, %v2981_v1 }
 0x35e   : > { %2245 = vmatmul.mubr.msk.f32.vlgmr.msra.gmra.mrb[12].mxu1 %vm1182_vm11, %v1008_v4 }
 0x421   : > { %v1164_v15 = vpop.f32.mrb[4].mxu1 }
 0x422   : > { %v1176_v16 = vsel %vm1175_vm13, %v1164_v15, -inf  ;;  %v2203_v17 = vpop.f32.mrb[5].mxu1 }
 0x423   : > { %1178 = vst.msk [vmem:[%s646_s16] sm:$0xff] %vm1177_vm14, %v1176_v16 }
 0x425   : > { %v1255_v18 = vpop.f32.mrb[6].mxu1 }
 0x426   : > { %v2210_v19 = vpop.f32.mrb[7].mxu1  ;;  %2214 = vmatmul.mubr.f32.vlgmr.msra.gmra.mrb[6].mxu0 %v1255_v18 }
 0x427   : > { %2224 = vmatpush3.xpose.msra.mxu0 %v3512_v47  ;;  %2225 = vmatprep.mubr.msk.f32.mxu0 %vm2980_vm0, %v2981_v1 }
 0x428   : > { %2235 = vmatprep.subr.mxu0 %v2981_v1 }
 0x429   : > { %v1401_v20 = vpop.f32.mrb[8].mxu1 }
 0x42a   : > { %v2222_v21 = vpop.f32.mrb[9].mxu1  ;;  %2226 = vmatmul.mubr.f32.vlgmr.msra.gmra.mrb[8].mxu0 %v1401_v20 }
 0x42b   : > { %2236 = vmatpush3.xpose.msra.mxu0 %v3512_v47  ;;  %2237 = vmatprep.mubr.msk.f32.mxu0 %vm2980_vm0, %v2981_v1 }
 0x42c   : > { %2247 = vmatprep.subr.mxu0 %v2981_v1 }
 0x42d   : > { %v1548_v22 = vpop.f32.mrb[10].mxu1 }
 0x42e   : > { %v2234_v23 = vpop.f32.mrb[11].mxu1  ;;  %2238 = vmatmul.mubr.f32.vlgmr.msra.gmra.mrb[10].mxu0 %v1548_v22 }
 0x42f   : > { %2248 = vmatpush3.xpose.msra.mxu0 %v3512_v47  ;;  %2249 = vmatprep.mubr.msk.f32.mxu0 %vm2980_vm0, %v2981_v1 }
 0x431   : > { %v1695_v24 = vpop.f32.mrb[12].mxu1 }
 0x432   : > { %v2246_v25 = vpop.f32.mrb[13].mxu1  ;;  %2250 = vmatmul.mubr.f32.vlgmr.msra.gmra.mrb[12].mxu0 %v1695_v24 }
 0x433   : > { %2832 = shalt.err (!%p2829_p11)
}
 0x434   : > { %s2833_s18 = scalar_lea.hbm %s3569_s13, 128  ;;  %s2837_s4 = scalar_lea.hbm %s3731_s1, 256 }
 0x435   : > { %p2834_p6 = scmp.ne.s32.totalorder %s3569_s13, %s2833_s18  ;;  %p2838_p9 = scmp.lt.u32.totalorder %s3569_s13, %s3731_s1 }
 0x436   : > { %p2839_p0 = scmp.lt.u32.totalorder %s2837_s4, %s2833_s18  ;;  %p2841_p12 = scmp.lt.u32.totalorder %s2833_s18, %s3569_s13 }
 0x437   : > { %p2835_p13 = pnand %p2834_p6, %p3732_p1 }
 0x438   : > { %p2840_p7 = por %p2839_p0, %p2838_p9 }
 0x439   : > { %p2836_p4 = pneg %p2835_p13 }
 0x43a   : > { %p2842_p2 = por %p2841_p12, %p2840_p7 }
 0x43c   : > { %p2843_p10 = pnand %p2842_p2, %p2836_p4 }
 0x43e   : > { %2846 = shalt.err (!%p2843_p10)
}
 0x43f   : > { %2339 = dma.vmem_to_hbm [thread:$0]  (%p3732_p1), %s1792_s7, 128, %s3569_s13, %s1772_s28  }
 0x440   : > { %s2068_s17 = sshll.u32 %s3439_s21, 5  ;;  %s2099_s12 = sshll.u32 %s3730_s14, 9 }
 0x441   : > { %s653_s23 = scalar_lea.vmem [#allocation25], %s2068_s17  ;;  %s3733_s28 = sld [smem:[#allocation49_spill]] }
 0x442   : > { %s1805_s6 = sshll.u32 %s653_s23, 4  ;;  %s1777_s16 = scalar_lea.sflag [#allocation26], %s3439_s21  ;;  %s3593_s6 = int_to_ptr.vmem [resolvable:$true] %s1805_s6 }
 0x443   : > { %s2847_s4 = scalar_lea.vmem %s3593_s6, 512  ;;  %s2985_s14 = smov [#allocation25]  }
 0x444   : > { %p2848_p5 = scmp.ne.s32.totalorder %s3593_s6, %s2847_s4  ;;  %s2851_s5 = sshll.u32 %s2985_s14, 4  ;;  %s2852_s5 = int_to_ptr.vmem [resolvable:$false] %s2851_s5 }
 0x445   : > { %s2853_s19 = scalar_lea.vmem %s2852_s5, 1024  ;;  %p2854_p11 = scmp.lt.s32.totalorder %s3593_s6, %s2852_s5 }
 0x446   : > { %p2849_p8 = pnand %p2848_p5, %p3732_p1  ;;  %p2855_p6 = scmp.lt.s32.totalorder %s2853_s19, %s2847_s4 }
 0x447   : > { %s3734_s18 = smov %s3733_s28  ;;  %s3599_s3 = scalar_lea.hbm %s3733_s28, %s2099_s12 }
 0x448   : > { %p2850_p3 = pneg %p2849_p8  ;;  %p2856_p13 = por %p2855_p6, %p2854_p11 }
 0x44a   : > { %p2857_p4 = pnand %p2856_p13, %p2850_p3 }
 0x4f9   : > { %v1325_v1 = vpop.f32.mrb[6].mxu0 }
 0x4fa   : > { %1329 = vst.msk [vmem:[%s653_s23] sm:$0xff] %vm1177_vm14, %v1325_v1  ;;  %v2215_v26 = vpop.f32.mrb[7].mxu0 }
 0x4fd   : > { %v1471_v27 = vpop.f32.mrb[8].mxu0 }
 0x4fe   : > { %2085 = vst.msk [vmem:[%s653_s23 + $0x8] sm:$0xff] %vm1177_vm14, %v1471_v27  ;;  %v2227_v28 = vpop.f32.mrb[9].mxu0 }
 0x501   : > { %v1618_v29 = vpop.f32.mrb[10].mxu0 }
 0x502   : > { %2088 = vst.msk [vmem:[%s653_s23 + $0x10] sm:$0xff] %vm1177_vm14, %v1618_v29  ;;  %v2239_v30 = vpop.f32.mrb[11].mxu0 }
 0x505   : > { %v1765_v31 = vpop.f32.mrb[12].mxu0 }
 0x506   : > { %2091 = vst.msk [vmem:[%s653_s23 + $0x18] sm:$0xff] %vm1177_vm14, %v1765_v31  ;;  %v2251_v32 = vpop.f32.mrb[13].mxu0 }
 0x507   : > { %2860 = shalt.err (!%p2857_p4)
}
 0x508   : > { %s2861_s17 = scalar_lea.hbm %s3599_s3, 512  ;;  %s2865_s13 = scalar_lea.hbm %s3734_s18, 1024 }
 0x509   : > { %p2862_p9 = scmp.ne.s32.totalorder %s3599_s3, %s2861_s17  ;;  %p2866_p12 = scmp.lt.u32.totalorder %s3599_s3, %s3734_s18 }
 0x50a   : > { %p2867_p2 = scmp.lt.u32.totalorder %s2865_s13, %s2861_s17  ;;  %p2869_p5 = scmp.lt.u32.totalorder %s2861_s17, %s3599_s3 }
 0x50b   : > { %p2863_p0 = pnand %p2862_p9, %p3732_p1 }
 0x50c   : > { %p2868_p10 = por %p2867_p2, %p2866_p12 }
 0x50d   : > { %p2864_p7 = pneg %p2863_p0 }
 0x50e   : > { %p2870_p8 = por %p2869_p5, %p2868_p10 }
 0x510   : > { %p2871_p3 = pnand %p2870_p8, %p2864_p7 }
 0x512   : > { %2874 = shalt.err (!%p2871_p3)
}
 0x513   : > { %s2986_s4 = smov 128   ;;  %s2987_s14 = smov 8  }
 0x514   : > { %2340 = dma.vmem_to_hbm [thread:$0]  (%p3732_p1), %s3593_s6, 512, %s3599_s3, %s1777_s16, %s2986_s4, %s2986_s4, %s2987_s14  }
 0x515 PF: > { %s1820_s5 = sand.u32 1, %s2941_s25   ;;  %p3735_p11 = scmp.ne.s32.totalorder %s3706_s24, 0 }
 0x516   : > { %p3736_p6 = scmp.ge.s32.totalorder %s2961_s30, 2  ;;  %s1821_s19 = scalar_lea.sflag [#allocation6], %s1820_s5 }
 0x518   : > { %p2382_p13 = pnand %p3736_p6, %p3735_p11 }
 0x51a   : > { %2932 = dma.done.wait (!%p2382_p13), %s1821_s19, 128  }
 0x51b   : > { %2934 = vsyncadd (!%p2382_p13), %s1821_s19, 4294967168  ;;  %s1830_s17 = scalar_lea.sflag [#allocation26], %s1820_s5 }
 0x51c   : > { %2936 = dma.done.wait (!%p2382_p13), %s1830_s17, 512  }
 0x51d   : > { %2938 = vsyncadd (!%p2382_p13), %s1830_s17, 4294966784  ;;  %s41_s30 = sadd.s32 1, %s2961_s30   ;;  %s3737_s25 = smov %s2945_s26 }
 0x51e   : > { %p38_p4 = scmp.ge.s32.totalorder %s41_s30, 4   ;;  %s3738_s26 = smov %s2949_s27 }
 0x51f   : > { %s3739_s27 = smov %s3354_s22  ;;  %s3740_s28 = smov %s2957_s29 }
 0x520   : > { %s3741_s29 = smov %s3743_s2  ;;  %40 = sbr.rel (!%p38_p4) target bundleno = 26 (0x1a), region = 191 }
 0x527   :  { %1835 = vsyncpa [#allocation5], 1 }
 0x528   :  { %1837 = vsyncpa [#allocation5 + $0x1], 1 }
 0x529   :  { %1838 = vsyncpa [#allocation8], 1 }
 0x52a   :  { %1840 = vsyncpa [#allocation8 + $0x1], 1 }
 0x52b   :  { %1841 = vsyncpa [#allocation11], 1 }
 0x52c   :  { %1842 = vsyncpa [#allocation14], 1 }
 0x52d   :  { %1843 = vsyncpa [#allocation17], 1 }
 0x52e   :  { %1844 = vsyncpa [#allocation20], 1 }
 0x52f   :  { %1845 = vsyncpa [#allocation23], 1 }
 0x530   :  { %1846 = vsyncpa [#allocation6], 1 }
 0x531   :  { %1848 = vsyncpa [#allocation6 + $0x1], 1 }
 0x532   :  { %1849 = vsyncpa [#allocation26], 1 }
 0x533   :  { %1851 = vsyncpa [#allocation26 + $0x1], 1 }

</bundles_post_ra>
